<compile_context>
chip_gen: v6e
topology: v6e:2x2x1
jax: 0.10.0
libtpu: 0.0.40
codegen_flags: <defaults>
</compile_context>

<pallas_src>
import functools

import jax
import jax.numpy as jnp
from jax.experimental import pallas as pl
from jax.experimental.pallas import tpu as pltpu


_LANE = 128        # TPU lane width
_ROW_TILE = 256    # rows (N*H*W) per grid step; multiple of 8


def _round_up(x, m):
    return ((x + m - 1) // m) * m


def _tiles(m):
    tm = min(_ROW_TILE, _round_up(m, 8))
    return tm, _round_up(m, tm)


def _cparams():
    return pltpu.CompilerParams(
        dimension_semantics=("parallel",),
        vmem_limit_bytes=32 * 1024 * 1024,
    )


# --------------------------------------------------------------------------
# Pallas kernels
# --------------------------------------------------------------------------

def _matmul_kernel(x_ref, w_ref, b_ref, o_ref, *, relu):
    # x: (TM, Kd) bf16, w: (Kd, Cp) bf16, b: (1, Cp) f32, o: (TM, Cp) f32
    acc = jnp.dot(x_ref[...], w_ref[...], preferred_element_type=jnp.float32)
    acc = acc + b_ref[...]
    if relu:
        acc = jnp.maximum(acc, 0.0)
    o_ref[...] = acc


def _matmul_edge_kernel(x_ref, w_ref, b_ref, y_ref, yrev_ref, fe_ref, fbp_ref):
    # Fused: fbp = relu(conv(x)); edge = sigmoid(y)*sigmoid(y_rev);
    #        feature_edge = fbp*edge; feature_bp = fbp + feature_edge
    fbp = jnp.dot(x_ref[...], w_ref[...], preferred_element_type=jnp.float32)
    fbp = jnp.maximum(fbp + b_ref[...], 0.0)                  # (TM, Cp)
    edge = jax.nn.sigmoid(y_ref[...]) * jax.nn.sigmoid(yrev_ref[...])  # (TM, 1)
    fe = fbp * edge
    fe_ref[...] = fe
    fbp_ref[...] = fbp + fe


def _affine_relu_kernel(x_ref, a_ref, b_ref, o_ref):
    # BatchNorm apply (pre-folded scale/shift) + ReLU
    o_ref[...] = jnp.maximum(x_ref[...] * a_ref[...] + b_ref[...], 0.0)


def _affine_relu_axpy_kernel(x_ref, a_ref, b_ref, s_ref, r_ref, o_ref):
    # out = residual + scale * relu(BN(x))  (fuses IB residual adds / lambda terms)
    act = jnp.maximum(x_ref[...] * a_ref[...] + b_ref[...], 0.0)
    o_ref[...] = r_ref[...] + s_ref[...] * act


# --------------------------------------------------------------------------
# Conv wrappers (im2col in XLA, single deep matmul in Pallas)
# --------------------------------------------------------------------------

def _im2col(x, K, dilation):
    """x: (N,H,W,C) -> (N*H*W, K*K*C) 'same'-padded patch matrix."""
    N, H, W, C = x.shape
    if K == 1:
        return x.reshape(N * H * W, C)
    pad = dilation * (K - 1) // 2
    xp = jnp.pad(x, ((0, 0), (pad, pad), (pad, pad), (0, 0)))
    taps = [xp[:, kh * dilation:kh * dilation + H,
               kw * dilation:kw * dilation + W, :]
            for kh in range(K) for kw in range(K)]
    return jnp.concatenate(taps, axis=-1).reshape(N * H * W, K * K * C)


def _prep_conv(x, w, b, dilation):
    """Common im2col / padding / bf16 cast. Returns operands + geometry."""
    N, H, W, Cin = x.shape
    K = w.shape[0]
    Cout = w.shape[-1]
    Kd = K * K * Cin
    M = N * H * W
    tm, Mp = _tiles(M)
    Cp = _round_up(Cout, _LANE)                       # lane-dense output
    patches = _im2col(x, K, dilation)                 # (M, Kd)
    xb = jnp.pad(patches, ((0, Mp - M), (0, 0))).astype(jnp.bfloat16)
    wb = jnp.pad(w.reshape(Kd, Cout).astype(jnp.bfloat16),
                 ((0, 0), (0, Cp - Cout)))
    bb = jnp.pad(b.astype(jnp.float32), (0, Cp - Cout)).reshape(1, Cp)
    return xb, wb, bb, (N, H, W, Cout, Kd, M, Mp, Cp, tm)


def _conv_matmul(x, w, b, *, dilation, relu):
    """Returns (padded (Mp, Cp) f32 conv output, geometry tuple)."""
    xb, wb, bb, geo = _prep_conv(x, w, b, dilation)
    _, _, _, _, Kd, _, Mp, Cp, tm = geo
    out = pl.pallas_call(
        functools.partial(_matmul_kernel, relu=relu),
        out_shape=jax.ShapeDtypeStruct((Mp, Cp), jnp.float32),
        grid=(Mp // tm,),
        in_specs=[pl.BlockSpec((tm, Kd), lambda i: (i, 0)),
                  pl.BlockSpec((Kd, Cp), lambda i: (0, 0)),   # weights resident
                  pl.BlockSpec((1, Cp), lambda i: (0, 0))],
        out_specs=pl.BlockSpec((tm, Cp), lambda i: (i, 0)),
        compiler_params=_cparams(),
    )(xb, wb, bb)
    return out, geo


def conv2d(x, w, b, *, dilation=1, relu=False):
    """nn.Conv2d(..., padding='same', dilation) (+ optional fused ReLU)."""
    out, geo = _conv_matmul(x, w, b, dilation=dilation, relu=relu)
    N, H, W, Cout, _, M, _, _, _ = geo
    return out[:M, :Cout].reshape(N, H, W, Cout)


def conv_relu_edge(x, w, b, y, y_rev):
    """BPM fg2 conv + ReLU fused with edge gating and residual add.

    Returns (feature_edge, feature_bp) as NHWC tensors."""
    xb, wb, bb, geo = _prep_conv(x, w, b, 1)
    N, H, W, Cout, Kd, M, Mp, Cp, tm = geo
    yf = jnp.pad(y.reshape(M, 1), ((0, Mp - M), (0, 0)))
    yrf = jnp.pad(y_rev.reshape(M, 1), ((0, Mp - M), (0, 0)))
    fe, fbp = pl.pallas_call(
        _matmul_edge_kernel,
        out_shape=(jax.ShapeDtypeStruct((Mp, Cp), jnp.float32),
                   jax.ShapeDtypeStruct((Mp, Cp), jnp.float32)),
        grid=(Mp // tm,),
        in_specs=[pl.BlockSpec((tm, Kd), lambda i: (i, 0)),
                  pl.BlockSpec((Kd, Cp), lambda i: (0, 0)),
                  pl.BlockSpec((1, Cp), lambda i: (0, 0)),
                  pl.BlockSpec((tm, 1), lambda i: (i, 0)),
                  pl.BlockSpec((tm, 1), lambda i: (i, 0))],
        out_specs=(pl.BlockSpec((tm, Cp), lambda i: (i, 0)),
                   pl.BlockSpec((tm, Cp), lambda i: (i, 0))),
        compiler_params=_cparams(),
    )(xb, wb, bb, yf, yrf)
    fe = fe[:M, :Cout].reshape(N, H, W, Cout)
    fbp = fbp[:M, :Cout].reshape(N, H, W, Cout)
    return fe, fbp


# --------------------------------------------------------------------------
# BatchNorm (+ReLU, + optional fused "residual + scale*act") wrappers
# --------------------------------------------------------------------------
# TODO(synk): BN batch statistics (per-channel mean/var over N*H*W) are tiny
# reductions computed in XLA; the full-tensor normalize+ReLU is Pallas.

_BN_EPS = 1e-5


def _bn_fold(h2d, gamma, beta):
    """Train-mode (batch-statistics, biased variance) BN folded to x*a + b."""
    mean = jnp.mean(h2d, axis=0)
    var = jnp.mean(jnp.square(h2d - mean), axis=0)
    a = gamma * jax.lax.rsqrt(var + _BN_EPS)
    return a, beta - mean * a


def _affine_relu(x_pad, a_pad, b_pad, tm, residual_pad=None, scale=None):
    Mp, Cp = x_pad.shape
    grid = (Mp // tm,)
    if residual_pad is None:
        return pl.pallas_call(
            _affine_relu_kernel,
            out_shape=jax.ShapeDtypeStruct((Mp, Cp), jnp.float32),
            grid=grid,
            in_specs=[pl.BlockSpec((tm, Cp), lambda i: (i, 0)),
                      pl.BlockSpec((1, Cp), lambda i: (0, 0)),
                      pl.BlockSpec((1, Cp), lambda i: (0, 0))],
            out_specs=pl.BlockSpec((tm, Cp), lambda i: (i, 0)),
            compiler_params=_cparams(),
        )(x_pad, a_pad, b_pad)
    s = jnp.asarray(scale, jnp.float32).reshape(1, 1)
    return pl.pallas_call(
        _affine_relu_axpy_kernel,
        out_shape=jax.ShapeDtypeStruct((Mp, Cp), jnp.float32),
        grid=grid,
        in_specs=[pl.BlockSpec((tm, Cp), lambda i: (i, 0)),
                  pl.BlockSpec((1, Cp), lambda i: (0, 0)),
                  pl.BlockSpec((1, Cp), lambda i: (0, 0)),
                  pl.BlockSpec((1, 1), lambda i: (0, 0)),
                  pl.BlockSpec((tm, Cp), lambda i: (i, 0))],
        out_specs=pl.BlockSpec((tm, Cp), lambda i: (i, 0)),
        compiler_params=_cparams(),
    )(x_pad, a_pad, b_pad, s, residual_pad)


def conv_bn_relu(x, p, dilation=1, *, residual=None, scale=1.0):
    """relu(BN(conv(x)))   or   residual + scale * relu(BN(conv(x)))."""
    h_pad, geo = _conv_matmul(x, p["conv"]["w"], p["conv"]["b"],
                              dilation=dilation, relu=False)
    N, H, W, C, _, M, Mp, Cp, tm = geo
    a, b = _bn_fold(h_pad[:M, :C], p["bn"]["gamma"], p["bn"]["beta"])
    a_pad = jnp.pad(a, (0, Cp - C)).reshape(1, Cp)
    b_pad = jnp.pad(b, (0, Cp - C)).reshape(1, Cp)
    r_pad = None
    if residual is not None:
        r_pad = jnp.pad(residual.reshape(M, C), ((0, Mp - M), (0, Cp - C)))
    out = _affine_relu(h_pad, a_pad, b_pad, tm, r_pad, scale)
    return out[:M, :C].reshape(N, H, W, C)


def bn_relu(x, gamma, beta):
    """Standalone train-mode BatchNorm + ReLU (for IPM's bn1/bn2)."""
    N, H, W, C = x.shape
    M = N * H * W
    xf = x.reshape(M, C)
    a, b = _bn_fold(xf, gamma, beta)
    tm, Mp = _tiles(M)
    x_pad = jnp.pad(xf, ((0, Mp - M), (0, 0)))
    out = _affine_relu(x_pad, a.reshape(1, C), b.reshape(1, C), tm)
    return out[:M].reshape(N, H, W, C)


# --------------------------------------------------------------------------
# Bilinear up-sampling (matches torch semantics)
# TODO(synk): gather-based interpolation has no clean Pallas equivalent; kept in plain JAX.
# --------------------------------------------------------------------------

def upsample_bilinear(x, out_h, out_w, align_corners):
    N, H, W, C = x.shape
    if align_corners:
        ys = jnp.arange(out_h, dtype=jnp.float32) * ((H - 1) / max(out_h - 1, 1))
        xs = jnp.arange(out_w, dtype=jnp.float32) * ((W - 1) / max(out_w - 1, 1))
    else:
        ys = jnp.clip((jnp.arange(out_h, dtype=jnp.float32) + 0.5) * (H / out_h) - 0.5,
                      0.0, H - 1)
        xs = jnp.clip((jnp.arange(out_w, dtype=jnp.float32) + 0.5) * (W / out_w) - 0.5,
                      0.0, W - 1)
    y0 = jnp.floor(ys).astype(jnp.int32)
    y1 = jnp.minimum(y0 + 1, H - 1)
    x0 = jnp.floor(xs).astype(jnp.int32)
    x1 = jnp.minimum(x0 + 1, W - 1)
    wy = (ys - y0.astype(jnp.float32)).reshape(1, out_h, 1, 1)
    wx = (xs - x0.astype(jnp.float32)).reshape(1, 1, out_w, 1)

    def g(yi, xi):
        return x[:, yi][:, :, xi]                    # (N, out_h, out_w, C)

    top = g(y0, x0) * (1.0 - wx) + g(y0, x1) * wx
    bot = g(y1, x0) * (1.0 - wx) + g(y1, x1) * wx
    return top * (1.0 - wy) + bot * wy


# --------------------------------------------------------------------------
# Deterministic parameter init (PyTorch-like uniform; gamma=1, beta=0 for BN)
# --------------------------------------------------------------------------

class KeyGen:
    def __init__(self, key):
        self.key = key

    def __call__(self):
        self.key, sub = jax.random.split(self.key)
        return sub


def init_conv(kg, K, cin, cout):
    bound = (cin * K * K) ** -0.5
    w = jax.random.uniform(kg(), (K, K, cin, cout), jnp.float32, -bound, bound)
    b = jax.random.uniform(kg(), (cout,), jnp.float32, -bound, bound)
    return {"w": w, "b": b}


def init_bn(c):
    return {"gamma": jnp.ones((c,), jnp.float32), "beta": jnp.zeros((c,), jnp.float32)}


def init_ib(kg, c):
    mid = c // 4
    p = {}
    for i in range(1, 5):
        p[f"b{i}1"] = {"conv": init_conv(kg, 3, c, mid), "bn": init_bn(mid)}
        p[f"b{i}2"] = {"conv": init_conv(kg, 3, mid, mid), "bn": init_bn(mid)}
        p[f"b{i}3"] = {"conv": init_conv(kg, 3, mid, mid), "bn": init_bn(mid)}
    p["fusion"] = {"conv": init_conv(kg, 3, c, c), "bn": init_bn(c)}
    return p


def init_ipm(kg, c1, c2):
    return {
        "up_conv": init_conv(kg, 7, c2, c1),
        "up_bn": init_bn(c1),
        "output_map": init_conv(kg, 7, c1, 1),   # present in __init__, unused in forward
        "ib1": init_ib(kg, c1),
        "ib2": init_ib(kg, c1),
        "lambda1": jnp.ones((1,), jnp.float32),
        "lambda2": jnp.ones((1,), jnp.float32),
        "bn1": init_bn(c1),
        "bn2": init_bn(c1),
    }


def init_bpm(kg, c_in, c_mid):
    return {
        "bg1": init_conv(kg, 3, c_in + 1, c_mid),
        "bg2": init_conv(kg, 1, c_mid, 1),
        "fg1": init_conv(kg, 3, c_in + 1, c_mid),
        "fg2": init_conv(kg, 3, c_mid, c_mid),
        "out": init_conv(kg, 3, c_in, 1),
    }


def init_block(kg, c1, c2):
    return {"ipm": init_ipm(kg, c1, c2), "bpm": init_bpm(kg, c1, c2)}


# --------------------------------------------------------------------------
# Forward passes (NHWC)
# --------------------------------------------------------------------------

def ib_forward(p, x, *, residual=None, scale=1.0):
    """IB block.  If `residual` is given, the final fusion layer directly
    returns residual + scale * fusion(x) (fused in the BN/ReLU kernel)."""
    b11 = conv_bn_relu(x, p["b11"], 1)
    b12 = conv_bn_relu(b11, p["b12"], 2)
    b13 = conv_bn_relu(b12, p["b13"], 4)
    b21 = conv_bn_relu(x, p["b21"], 1, residual=b13)          # + b13 fused
    b22 = conv_bn_relu(b21, p["b22"], 2)
    b23 = conv_bn_relu(b22, p["b23"], 4)
    b31 = conv_bn_relu(x, p["b31"], 1, residual=b23)          # + b23 fused
    b32 = conv_bn_relu(b31, p["b32"], 2)
    b33 = conv_bn_relu(b32, p["b33"], 4)
    b41 = conv_bn_relu(x, p["b41"], 1, residual=b33)          # + b33 fused
    b42 = conv_bn_relu(b41, p["b42"], 2)
    b43 = conv_bn_relu(b42, p["b43"], 4)
    cat = jnp.concatenate([b13, b23, b33, b43], axis=-1)
    return conv_bn_relu(cat, p["fusion"], 1, residual=residual, scale=scale)


def ipm_forward(p, feature_c, feature_h, y, y_rev, is_upsampling=True):
    if is_upsampling:
        fh = conv_bn_relu(feature_h, {"conv": p["up_conv"], "bn": p["up_bn"]}, 1)
        feature_h = upsample_bilinear(fh, 2 * fh.shape[1], 2 * fh.shape[2],
                                      align_corners=True)
        y = jax.nn.sigmoid(upsample_bilinear(y, 2 * y.shape[1], 2 * y.shape[2],
                                             align_corners=True))
        y_rev = jax.nn.sigmoid(upsample_bilinear(y_rev, 2 * y_rev.shape[1],
                                                 2 * y_rev.shape[2],
                                                 align_corners=True))
    feature_f = feature_c * y
    feature_b = feature_c * y_rev
    # ib2 fusion layer fuses:  feature_ip1_pre = feature_h - lambda2 * feature_bi
    ip1_pre = ib_forward(p["ib2"], feature_b,
                         residual=feature_h, scale=-p["lambda2"])
    feature_ip1 = bn_relu(ip1_pre, p["bn1"]["gamma"], p["bn1"]["beta"])
    # ib1 fusion layer fuses:  feature_ip2_pre = feature_ip1 + lambda1 * feature_fi
    ip2_pre = ib_forward(p["ib1"], feature_f,
                         residual=feature_ip1, scale=p["lambda1"])
    feature_ip2 = bn_relu(ip2_pre, p["bn2"]["gamma"], p["bn2"]["beta"])
    return feature_ip2


def bpm_forward(p, feature_ip, y):
    N, H, W, _ = feature_ip.shape
    y = upsample_bilinear(y, H, W, align_corners=False)       # upsampleLike
    feature = jnp.concatenate([feature_ip, y], axis=-1)
    # background branch first: its output feeds the fused fg2+edge kernel.
    # (ReLU before the sigmoid gate matches the reference conv_bg Sequential.)
    y_rev = conv2d(feature, p["bg1"]["w"], p["bg1"]["b"], relu=True)
    y_rev = conv2d(y_rev, p["bg2"]["w"], p["bg2"]["b"], relu=True)
    # foreground branch; fg2 conv fused with edge gating + residual add.
    fbp1 = conv2d(feature, p["fg1"]["w"], p["fg1"]["b"], relu=True)
    feature_edge, feature_bp = conv_relu_edge(fbp1, p["fg2"]["w"], p["fg2"]["b"],
                                              y, y_rev)
    y_bp = conv2d(feature_edge, p["out"]["w"], p["out"]["b"], relu=False)
    y_out = y + y_bp
    return feature_bp, y_out, y_rev


def block_forward(params, feature_c, feature_h, y, y_rev, is_upsampling=True):
    y_refine = ipm_forward(params["ipm"], feature_c, feature_h, y, y_rev,
                           is_upsampling)
    return bpm_forward(params["bpm"], y_refine, y)


# --------------------------------------------------------------------------
# Main
# --------------------------------------------------------------------------

if __name__ == "__main__":
    # Block(channel1, channel2): BPM's `out` conv requires channel1 == channel2.
    C1 = C2 = 8
    B, H2, W2 = 2, 8, 8          # low-res inputs; feature_c is 2x spatial

    key = jax.random.PRNGKey(0)
    k_in, k_par = jax.random.split(key)
    k1, k2, k3, k4 = jax.random.split(k_in, 4)
    # NCHW inputs (PyTorch convention)
    feature_c = jax.random.normal(k1, (B, C1, 2 * H2, 2 * W2), jnp.float32)
    feature_h = jax.random.normal(k2, (B, C2, H2, W2), jnp.float32)
    y = jax.random.normal(k3, (B, 1, H2, W2), jnp.float32)
    y_rev = jax.random.normal(k4, (B, 1, H2, W2), jnp.float32)

    params = init_block(KeyGen(k_par), C1, C2)

    @jax.jit
    def run(fc, fh, yy, yr):
        to_nhwc = lambda a: jnp.transpose(a, (0, 2, 3, 1))
        to_nchw = lambda a: jnp.transpose(a, (0, 3, 1, 2))
        fo, yo, yro = block_forward(params, to_nhwc(fc), to_nhwc(fh),
                                    to_nhwc(yy), to_nhwc(yr))
        return to_nchw(fo), to_nchw(yo), to_nchw(yro)

    feature_out, y_out, y_rev_out = run(feature_c, feature_h, y, y_rev)
    jax.block_until_ready((feature_out, y_out, y_rev_out))

    assert feature_out.shape == (B, C2, 2 * H2, 2 * W2)
    assert y_out.shape == (B, 1, 2 * H2, 2 * W2)
    assert y_rev_out.shape == (B, 1, 2 * H2, 2 * W2)
    assert bool(jnp.all(jnp.isfinite(feature_out)))
    print("KERNEL_OK")
</pallas_src>

<mosaic_0001>
module attributes {stable_mosaic.version = 11 : i64} {
  func.func @_matmul_kernel(%arg0: i32, %arg1: memref<128x392xbf16, #tpu.memory_space<vmem>>, %arg2: memref<392x128xbf16, #tpu.memory_space<vmem>>, %arg3: memref<1x128xf32, #tpu.memory_space<vmem>>, %arg4: memref<128x128xf32, #tpu.memory_space<vmem>>) attributes {dimension_semantics = [#tpu.dimension_semantics<parallel>], iteration_bounds = array<i64: 1>, scalar_prefetch = 0 : i64, scratch_operands = 0 : i64, tpu.core_type = #tpu.core_type<tc>, window_params = [{transform_indices = @transform_0, window_bounds = array<i64: 128, 392>}, {pipeline_mode = #tpu.pipeline_mode<synchronous>, transform_indices = @transform_1, window_bounds = array<i64: 392, 128>}, {pipeline_mode = #tpu.pipeline_mode<synchronous>, transform_indices = @transform_2, window_bounds = array<i64: 1, 128>}, {transform_indices = @transform_3, window_bounds = array<i64: 128, 128>}]} {
    %c0 = arith.constant 0 : index
    %c0_0 = arith.constant 0 : index
    %0 = vector.load %arg1[%c0, %c0_0] : memref<128x392xbf16, #tpu.memory_space<vmem>>, vector<128x392xbf16>
    %c0_1 = arith.constant 0 : index
    %c0_2 = arith.constant 0 : index
    %1 = vector.load %arg2[%c0_1, %c0_2] : memref<392x128xbf16, #tpu.memory_space<vmem>>, vector<392x128xbf16>
    %cst = arith.constant dense<0.000000e+00> : vector<128x128xf32>
    %2 = tpu.matmul %0, %1, %cst {dimension_numbers = #tpu.dot_dimension_numbers<[1], [0], [0], [1], [0, 0, 1, 1], [], []>} : vector<128x392xbf16>, vector<392x128xbf16>, vector<128x128xf32> -> vector<128x128xf32>
    %c0_3 = arith.constant 0 : index
    %c0_4 = arith.constant 0 : index
    %3 = vector.load %arg3[%c0_3, %c0_4] : memref<1x128xf32, #tpu.memory_space<vmem>>, vector<1x128xf32>
    %4 = vector.broadcast %3 : vector<1x128xf32> to vector<128x128xf32>
    %5 = arith.addf %2, %4 : vector<128x128xf32>
    %c0_5 = arith.constant 0 : index
    %c0_6 = arith.constant 0 : index
    %6 = vector.load %arg4[%c0_5, %c0_6] : memref<128x128xf32, #tpu.memory_space<vmem>>, vector<128x128xf32>
    tpu.vector_store %arg4[%c0_5, %c0_6], %5 {strides = array<i32>} : memref<128x128xf32, #tpu.memory_space<vmem>>, vector<128x128xf32>,
    return
  }
  func.func @transform_0(%arg0: i32) -> (i32, i32) {
    %c0_i32 = arith.constant 0 : i32
    %c0_i32_0 = arith.constant 0 : i32
    return %arg0, %c0_i32 : i32, i32
  }
  func.func @transform_1(%arg0: i32) -> (i32, i32) {
    %c0_i32 = arith.constant 0 : i32
    %c0_i32_0 = arith.constant 0 : i32
    %c0_i32_1 = arith.constant 0 : i32
    return %c0_i32, %c0_i32_0 : i32, i32
  }
  func.func @transform_2(%arg0: i32) -> (i32, i32) {
    %c0_i32 = arith.constant 0 : i32
    %c0_i32_0 = arith.constant 0 : i32
    %c0_i32_1 = arith.constant 0 : i32
    return %c0_i32, %c0_i32_0 : i32, i32
  }
  func.func @transform_3(%arg0: i32) -> (i32, i32) {
    %c0_i32 = arith.constant 0 : i32
    %c0_i32_0 = arith.constant 0 : i32
    return %arg0, %c0_i32 : i32, i32
  }
}

module attributes {stable_mosaic.version = 11 : i64} {
  func.func @_affine_relu_kernel(%arg0: i32, %arg1: memref<128x128xf32, #tpu.memory_space<vmem>>, %arg2: memref<1x128xf32, #tpu.memory_space<vmem>>, %arg3: memref<1x128xf32, #tpu.memory_space<vmem>>, %arg4: memref<128x128xf32, #tpu.memory_space<vmem>>) attributes {dimension_semantics = [#tpu.dimension_semantics<parallel>], iteration_bounds = array<i64: 1>, scalar_prefetch = 0 : i64, scratch_operands = 0 : i64, tpu.core_type = #tpu.core_type<tc>, window_params = [{transform_indices = @transform_0, window_bounds = array<i64: 128, 128>}, {pipeline_mode = #tpu.pipeline_mode<synchronous>, transform_indices = @transform_1, window_bounds = array<i64: 1, 128>}, {pipeline_mode = #tpu.pipeline_mode<synchronous>, transform_indices = @transform_2, window_bounds = array<i64: 1, 128>}, {transform_indices = @transform_3, window_bounds = array<i64: 128, 128>}]} {
    %c0 = arith.constant 0 : index
    %c0_0 = arith.constant 0 : index
    %0 = vector.load %arg1[%c0, %c0_0] : memref<128x128xf32, #tpu.memory_space<vmem>>, vector<128x128xf32>
    %c0_1 = arith.constant 0 : index
    %c0_2 = arith.constant 0 : index
    %1 = vector.load %arg2[%c0_1, %c0_2] : memref<1x128xf32, #tpu.memory_space<vmem>>, vector<1x128xf32>
    %2 = vector.broadcast %1 : vector<1x128xf32> to vector<128x128xf32>
    %3 = arith.mulf %0, %2 : vector<128x128xf32>
    %c0_3 = arith.constant 0 : index
    %c0_4 = arith.constant 0 : index
    %4 = vector.load %arg3[%c0_3, %c0_4] : memref<1x128xf32, #tpu.memory_space<vmem>>, vector<1x128xf32>
    %5 = vector.broadcast %4 : vector<1x128xf32> to vector<128x128xf32>
    %6 = arith.addf %3, %5 : vector<128x128xf32>
    %cst = arith.constant 0.000000e+00 : f32
    %7 = vector.broadcast %cst : f32 to vector<128x128xf32>
    %8 = arith.maximumf %6, %7 : vector<128x128xf32>
    %c0_5 = arith.constant 0 : index
    %c0_6 = arith.constant 0 : index
    %9 = vector.load %arg4[%c0_5, %c0_6] : memref<128x128xf32, #tpu.memory_space<vmem>>, vector<128x128xf32>
    tpu.vector_store %arg4[%c0_5, %c0_6], %8 {strides = array<i32>} : memref<128x128xf32, #tpu.memory_space<vmem>>, vector<128x128xf32>,
    return
  }
  func.func @transform_0(%arg0: i32) -> (i32, i32) {
    %c0_i32 = arith.constant 0 : i32
    %c0_i32_0 = arith.constant 0 : i32
    return %arg0, %c0_i32 : i32, i32
  }
  func.func @transform_1(%arg0: i32) -> (i32, i32) {
    %c0_i32 = arith.constant 0 : i32
    %c0_i32_0 = arith.constant 0 : i32
    %c0_i32_1 = arith.constant 0 : i32
    return %c0_i32, %c0_i32_0 : i32, i32
  }
  func.func @transform_2(%arg0: i32) -> (i32, i32) {
    %c0_i32 = arith.constant 0 : i32
    %c0_i32_0 = arith.constant 0 : i32
    %c0_i32_1 = arith.constant 0 : i32
    return %c0_i32, %c0_i32_0 : i32, i32
  }
  func.func @transform_3(%arg0: i32) -> (i32, i32) {
    %c0_i32 = arith.constant 0 : i32
    %c0_i32_0 = arith.constant 0 : i32
    return %arg0, %c0_i32 : i32, i32
  }
}

module attributes {stable_mosaic.version = 11 : i64} {
  func.func @_matmul_kernel(%arg0: i32, %arg1: memref<256x72xbf16, #tpu.memory_space<vmem>>, %arg2: memref<72x128xbf16, #tpu.memory_space<vmem>>, %arg3: memref<1x128xf32, #tpu.memory_space<vmem>>, %arg4: memref<256x128xf32, #tpu.memory_space<vmem>>) attributes {dimension_semantics = [#tpu.dimension_semantics<parallel>], iteration_bounds = array<i64: 2>, scalar_prefetch = 0 : i64, scratch_operands = 0 : i64, tpu.core_type = #tpu.core_type<tc>, window_params = [{transform_indices = @transform_0, window_bounds = array<i64: 256, 72>}, {pipeline_mode = #tpu.pipeline_mode<synchronous>, transform_indices = @transform_1, window_bounds = array<i64: 72, 128>}, {pipeline_mode = #tpu.pipeline_mode<synchronous>, transform_indices = @transform_2, window_bounds = array<i64: 1, 128>}, {transform_indices = @transform_3, window_bounds = array<i64: 256, 128>}]} {
    %c0 = arith.constant 0 : index
    %c0_0 = arith.constant 0 : index
    %0 = vector.load %arg1[%c0, %c0_0] : memref<256x72xbf16, #tpu.memory_space<vmem>>, vector<256x72xbf16>
    %c0_1 = arith.constant 0 : index
    %c0_2 = arith.constant 0 : index
    %1 = vector.load %arg2[%c0_1, %c0_2] : memref<72x128xbf16, #tpu.memory_space<vmem>>, vector<72x128xbf16>
    %cst = arith.constant dense<0.000000e+00> : vector<256x128xf32>
    %2 = tpu.matmul %0, %1, %cst {dimension_numbers = #tpu.dot_dimension_numbers<[1], [0], [0], [1], [0, 0, 1, 1], [], []>} : vector<256x72xbf16>, vector<72x128xbf16>, vector<256x128xf32> -> vector<256x128xf32>
    %c0_3 = arith.constant 0 : index
    %c0_4 = arith.constant 0 : index
    %3 = vector.load %arg3[%c0_3, %c0_4] : memref<1x128xf32, #tpu.memory_space<vmem>>, vector<1x128xf32>
    %4 = vector.broadcast %3 : vector<1x128xf32> to vector<256x128xf32>
    %5 = arith.addf %2, %4 : vector<256x128xf32>
    %c0_5 = arith.constant 0 : index
    %c0_6 = arith.constant 0 : index
    %6 = vector.load %arg4[%c0_5, %c0_6] : memref<256x128xf32, #tpu.memory_space<vmem>>, vector<256x128xf32>
    tpu.vector_store %arg4[%c0_5, %c0_6], %5 {strides = array<i32>} : memref<256x128xf32, #tpu.memory_space<vmem>>, vector<256x128xf32>,
    return
  }
  func.func @transform_0(%arg0: i32) -> (i32, i32) {
    %c0_i32 = arith.constant 0 : i32
    %c0_i32_0 = arith.constant 0 : i32
    return %arg0, %c0_i32 : i32, i32
  }
  func.func @transform_1(%arg0: i32) -> (i32, i32) {
    %c0_i32 = arith.constant 0 : i32
    %c0_i32_0 = arith.constant 0 : i32
    %c0_i32_1 = arith.constant 0 : i32
    return %c0_i32, %c0_i32_0 : i32, i32
  }
  func.func @transform_2(%arg0: i32) -> (i32, i32) {
    %c0_i32 = arith.constant 0 : i32
    %c0_i32_0 = arith.constant 0 : i32
    %c0_i32_1 = arith.constant 0 : i32
    return %c0_i32, %c0_i32_0 : i32, i32
  }
  func.func @transform_3(%arg0: i32) -> (i32, i32) {
    %c0_i32 = arith.constant 0 : i32
    %c0_i32_0 = arith.constant 0 : i32
    return %arg0, %c0_i32 : i32, i32
  }
}

module attributes {stable_mosaic.version = 11 : i64} {
  func.func @_affine_relu_kernel(%arg0: i32, %arg1: memref<256x128xf32, #tpu.memory_space<vmem>>, %arg2: memref<1x128xf32, #tpu.memory_space<vmem>>, %arg3: memref<1x128xf32, #tpu.memory_space<vmem>>, %arg4: memref<256x128xf32, #tpu.memory_space<vmem>>) attributes {dimension_semantics = [#tpu.dimension_semantics<parallel>], iteration_bounds = array<i64: 2>, scalar_prefetch = 0 : i64, scratch_operands = 0 : i64, tpu.core_type = #tpu.core_type<tc>, window_params = [{transform_indices = @transform_0, window_bounds = array<i64: 256, 128>}, {pipeline_mode = #tpu.pipeline_mode<synchronous>, transform_indices = @transform_1, window_bounds = array<i64: 1, 128>}, {pipeline_mode = #tpu.pipeline_mode<synchronous>, transform_indices = @transform_2, window_bounds = array<i64: 1, 128>}, {transform_indices = @transform_3, window_bounds = array<i64: 256, 128>}]} {
    %c0 = arith.constant 0 : index
    %c0_0 = arith.constant 0 : index
    %0 = vector.load %arg1[%c0, %c0_0] : memref<256x128xf32, #tpu.memory_space<vmem>>, vector<256x128xf32>
    %c0_1 = arith.constant 0 : index
    %c0_2 = arith.constant 0 : index
    %1 = vector.load %arg2[%c0_1, %c0_2] : memref<1x128xf32, #tpu.memory_space<vmem>>, vector<1x128xf32>
    %2 = vector.broadcast %1 : vector<1x128xf32> to vector<256x128xf32>
    %3 = arith.mulf %0, %2 : vector<256x128xf32>
    %c0_3 = arith.constant 0 : index
    %c0_4 = arith.constant 0 : index
    %4 = vector.load %arg3[%c0_3, %c0_4] : memref<1x128xf32, #tpu.memory_space<vmem>>, vector<1x128xf32>
    %5 = vector.broadcast %4 : vector<1x128xf32> to vector<256x128xf32>
    %6 = arith.addf %3, %5 : vector<256x128xf32>
    %cst = arith.constant 0.000000e+00 : f32
    %7 = vector.broadcast %cst : f32 to vector<256x128xf32>
    %8 = arith.maximumf %6, %7 : vector<256x128xf32>
    %c0_5 = arith.constant 0 : index
    %c0_6 = arith.constant 0 : index
    %9 = vector.load %arg4[%c0_5, %c0_6] : memref<256x128xf32, #tpu.memory_space<vmem>>, vector<256x128xf32>
    tpu.vector_store %arg4[%c0_5, %c0_6], %8 {strides = array<i32>} : memref<256x128xf32, #tpu.memory_space<vmem>>, vector<256x128xf32>,
    return
  }
  func.func @transform_0(%arg0: i32) -> (i32, i32) {
    %c0_i32 = arith.constant 0 : i32
    %c0_i32_0 = arith.constant 0 : i32
    return %arg0, %c0_i32 : i32, i32
  }
  func.func @transform_1(%arg0: i32) -> (i32, i32) {
    %c0_i32 = arith.constant 0 : i32
    %c0_i32_0 = arith.constant 0 : i32
    %c0_i32_1 = arith.constant 0 : i32
    return %c0_i32, %c0_i32_0 : i32, i32
  }
  func.func @transform_2(%arg0: i32) -> (i32, i32) {
    %c0_i32 = arith.constant 0 : i32
    %c0_i32_0 = arith.constant 0 : i32
    %c0_i32_1 = arith.constant 0 : i32
    return %c0_i32, %c0_i32_0 : i32, i32
  }
  func.func @transform_3(%arg0: i32) -> (i32, i32) {
    %c0_i32 = arith.constant 0 : i32
    %c0_i32_0 = arith.constant 0 : i32
    return %arg0, %c0_i32 : i32, i32
  }
}

module attributes {stable_mosaic.version = 11 : i64} {
  func.func @_matmul_kernel(%arg0: i32, %arg1: memref<256x18xbf16, #tpu.memory_space<vmem>>, %arg2: memref<18x128xbf16, #tpu.memory_space<vmem>>, %arg3: memref<1x128xf32, #tpu.memory_space<vmem>>, %arg4: memref<256x128xf32, #tpu.memory_space<vmem>>) attributes {dimension_semantics = [#tpu.dimension_semantics<parallel>], iteration_bounds = array<i64: 2>, scalar_prefetch = 0 : i64, scratch_operands = 0 : i64, tpu.core_type = #tpu.core_type<tc>, window_params = [{transform_indices = @transform_0, window_bounds = array<i64: 256, 18>}, {pipeline_mode = #tpu.pipeline_mode<synchronous>, transform_indices = @transform_1, window_bounds = array<i64: 18, 128>}, {pipeline_mode = #tpu.pipeline_mode<synchronous>, transform_indices = @transform_2, window_bounds = array<i64: 1, 128>}, {transform_indices = @transform_3, window_bounds = array<i64: 256, 128>}]} {
    %c0 = arith.constant 0 : index
    %c0_0 = arith.constant 0 : index
    %0 = vector.load %arg1[%c0, %c0_0] : memref<256x18xbf16, #tpu.memory_space<vmem>>, vector<256x18xbf16>
    %c0_1 = arith.constant 0 : index
    %c0_2 = arith.constant 0 : index
    %1 = vector.load %arg2[%c0_1, %c0_2] : memref<18x128xbf16, #tpu.memory_space<vmem>>, vector<18x128xbf16>
    %cst = arith.constant dense<0.000000e+00> : vector<256x128xf32>
    %2 = tpu.matmul %0, %1, %cst {dimension_numbers = #tpu.dot_dimension_numbers<[1], [0], [0], [1], [0, 0, 1, 1], [], []>} : vector<256x18xbf16>, vector<18x128xbf16>, vector<256x128xf32> -> vector<256x128xf32>
    %c0_3 = arith.constant 0 : index
    %c0_4 = arith.constant 0 : index
    %3 = vector.load %arg3[%c0_3, %c0_4] : memref<1x128xf32, #tpu.memory_space<vmem>>, vector<1x128xf32>
    %4 = vector.broadcast %3 : vector<1x128xf32> to vector<256x128xf32>
    %5 = arith.addf %2, %4 : vector<256x128xf32>
    %c0_5 = arith.constant 0 : index
    %c0_6 = arith.constant 0 : index
    %6 = vector.load %arg4[%c0_5, %c0_6] : memref<256x128xf32, #tpu.memory_space<vmem>>, vector<256x128xf32>
    tpu.vector_store %arg4[%c0_5, %c0_6], %5 {strides = array<i32>} : memref<256x128xf32, #tpu.memory_space<vmem>>, vector<256x128xf32>,
    return
  }
  func.func @transform_0(%arg0: i32) -> (i32, i32) {
    %c0_i32 = arith.constant 0 : i32
    %c0_i32_0 = arith.constant 0 : i32
    return %arg0, %c0_i32 : i32, i32
  }
  func.func @transform_1(%arg0: i32) -> (i32, i32) {
    %c0_i32 = arith.constant 0 : i32
    %c0_i32_0 = arith.constant 0 : i32
    %c0_i32_1 = arith.constant 0 : i32
    return %c0_i32, %c0_i32_0 : i32, i32
  }
  func.func @transform_2(%arg0: i32) -> (i32, i32) {
    %c0_i32 = arith.constant 0 : i32
    %c0_i32_0 = arith.constant 0 : i32
    %c0_i32_1 = arith.constant 0 : i32
    return %c0_i32, %c0_i32_0 : i32, i32
  }
  func.func @transform_3(%arg0: i32) -> (i32, i32) {
    %c0_i32 = arith.constant 0 : i32
    %c0_i32_0 = arith.constant 0 : i32
    return %arg0, %c0_i32 : i32, i32
  }
}

module attributes {stable_mosaic.version = 11 : i64} {
  func.func @_affine_relu_axpy_kernel(%arg0: i32, %arg1: memref<256x128xf32, #tpu.memory_space<vmem>>, %arg2: memref<1x128xf32, #tpu.memory_space<vmem>>, %arg3: memref<1x128xf32, #tpu.memory_space<vmem>>, %arg4: memref<1x1xf32, #tpu.memory_space<vmem>>, %arg5: memref<256x128xf32, #tpu.memory_space<vmem>>, %arg6: memref<256x128xf32, #tpu.memory_space<vmem>>) attributes {dimension_semantics = [#tpu.dimension_semantics<parallel>], iteration_bounds = array<i64: 2>, scalar_prefetch = 0 : i64, scratch_operands = 0 : i64, tpu.core_type = #tpu.core_type<tc>, window_params = [{transform_indices = @transform_0, window_bounds = array<i64: 256, 128>}, {pipeline_mode = #tpu.pipeline_mode<synchronous>, transform_indices = @transform_1, window_bounds = array<i64: 1, 128>}, {pipeline_mode = #tpu.pipeline_mode<synchronous>, transform_indices = @transform_2, window_bounds = array<i64: 1, 128>}, {pipeline_mode = #tpu.pipeline_mode<synchronous>, transform_indices = @transform_3, window_bounds = array<i64: 1, 1>}, {transform_indices = @transform_4, window_bounds = array<i64: 256, 128>}, {transform_indices = @transform_5, window_bounds = array<i64: 256, 128>}]} {
    %c0 = arith.constant 0 : index
    %c0_0 = arith.constant 0 : index
    %0 = vector.load %arg1[%c0, %c0_0] : memref<256x128xf32, #tpu.memory_space<vmem>>, vector<256x128xf32>
    %c0_1 = arith.constant 0 : index
    %c0_2 = arith.constant 0 : index
    %1 = vector.load %arg2[%c0_1, %c0_2] : memref<1x128xf32, #tpu.memory_space<vmem>>, vector<1x128xf32>
    %2 = vector.broadcast %1 : vector<1x128xf32> to vector<256x128xf32>
    %3 = arith.mulf %0, %2 : vector<256x128xf32>
    %c0_3 = arith.constant 0 : index
    %c0_4 = arith.constant 0 : index
    %4 = vector.load %arg3[%c0_3, %c0_4] : memref<1x128xf32, #tpu.memory_space<vmem>>, vector<1x128xf32>
    %5 = vector.broadcast %4 : vector<1x128xf32> to vector<256x128xf32>
    %6 = arith.addf %3, %5 : vector<256x128xf32>
    %cst = arith.constant 0.000000e+00 : f32
    %7 = vector.broadcast %cst : f32 to vector<256x128xf32>
    %8 = arith.maximumf %6, %7 : vector<256x128xf32>
    %c0_5 = arith.constant 0 : index
    %c0_6 = arith.constant 0 : index
    %9 = vector.load %arg5[%c0_5, %c0_6] : memref<256x128xf32, #tpu.memory_space<vmem>>, vector<256x128xf32>
    %c0_7 = arith.constant 0 : index
    %c0_8 = arith.constant 0 : index
    %10 = vector.load %arg4[%c0_7, %c0_8] : memref<1x1xf32, #tpu.memory_space<vmem>>, vector<1x1xf32>
    %11 = vector.broadcast %10 : vector<1x1xf32> to vector<256x128xf32>
    %12 = arith.mulf %11, %8 : vector<256x128xf32>
    %13 = arith.addf %9, %12 : vector<256x128xf32>
    %c0_9 = arith.constant 0 : index
    %c0_10 = arith.constant 0 : index
    %14 = vector.load %arg6[%c0_9, %c0_10] : memref<256x128xf32, #tpu.memory_space<vmem>>, vector<256x128xf32>
    tpu.vector_store %arg6[%c0_9, %c0_10], %13 {strides = array<i32>} : memref<256x128xf32, #tpu.memory_space<vmem>>, vector<256x128xf32>,
    return
  }
  func.func @transform_0(%arg0: i32) -> (i32, i32) {
    %c0_i32 = arith.constant 0 : i32
    %c0_i32_0 = arith.constant 0 : i32
    return %arg0, %c0_i32 : i32, i32
  }
  func.func @transform_1(%arg0: i32) -> (i32, i32) {
    %c0_i32 = arith.constant 0 : i32
    %c0_i32_0 = arith.constant 0 : i32
    %c0_i32_1 = arith.constant 0 : i32
    return %c0_i32, %c0_i32_0 : i32, i32
  }
  func.func @transform_2(%arg0: i32) -> (i32, i32) {
    %c0_i32 = arith.constant 0 : i32
    %c0_i32_0 = arith.constant 0 : i32
    %c0_i32_1 = arith.constant 0 : i32
    return %c0_i32, %c0_i32_0 : i32, i32
  }
  func.func @transform_3(%arg0: i32) -> (i32, i32) {
    %c0_i32 = arith.constant 0 : i32
    %c0_i32_0 = arith.constant 0 : i32
    %c0_i32_1 = arith.constant 0 : i32
    return %c0_i32, %c0_i32_0 : i32, i32
  }
  func.func @transform_4(%arg0: i32) -> (i32, i32) {
    %c0_i32 = arith.constant 0 : i32
    %c0_i32_0 = arith.constant 0 : i32
    return %arg0, %c0_i32 : i32, i32
  }
  func.func @transform_5(%arg0: i32) -> (i32, i32) {
    %c0_i32 = arith.constant 0 : i32
    %c0_i32_0 = arith.constant 0 : i32
    return %arg0, %c0_i32 : i32, i32
  }
}

module attributes {stable_mosaic.version = 11 : i64} {
  func.func @_affine_relu_kernel(%arg0: i32, %arg1: memref<256x8xf32, #tpu.memory_space<vmem>>, %arg2: memref<1x8xf32, #tpu.memory_space<vmem>>, %arg3: memref<1x8xf32, #tpu.memory_space<vmem>>, %arg4: memref<256x8xf32, #tpu.memory_space<vmem>>) attributes {dimension_semantics = [#tpu.dimension_semantics<parallel>], iteration_bounds = array<i64: 2>, scalar_prefetch = 0 : i64, scratch_operands = 0 : i64, tpu.core_type = #tpu.core_type<tc>, window_params = [{transform_indices = @transform_0, window_bounds = array<i64: 256, 8>}, {pipeline_mode = #tpu.pipeline_mode<synchronous>, transform_indices = @transform_1, window_bounds = array<i64: 1, 8>}, {pipeline_mode = #tpu.pipeline_mode<synchronous>, transform_indices = @transform_2, window_bounds = array<i64: 1, 8>}, {transform_indices = @transform_3, window_bounds = array<i64: 256, 8>}]} {
    %c0 = arith.constant 0 : index
    %c0_0 = arith.constant 0 : index
    %0 = vector.load %arg1[%c0, %c0_0] : memref<256x8xf32, #tpu.memory_space<vmem>>, vector<256x8xf32>
    %c0_1 = arith.constant 0 : index
    %c0_2 = arith.constant 0 : index
    %1 = vector.load %arg2[%c0_1, %c0_2] : memref<1x8xf32, #tpu.memory_space<vmem>>, vector<1x8xf32>
    %2 = vector.broadcast %1 : vector<1x8xf32> to vector<256x8xf32>
    %3 = arith.mulf %0, %2 : vector<256x8xf32>
    %c0_3 = arith.constant 0 : index
    %c0_4 = arith.constant 0 : index
    %4 = vector.load %arg3[%c0_3, %c0_4] : memref<1x8xf32, #tpu.memory_space<vmem>>, vector<1x8xf32>
    %5 = vector.broadcast %4 : vector<1x8xf32> to vector<256x8xf32>
    %6 = arith.addf %3, %5 : vector<256x8xf32>
    %cst = arith.constant 0.000000e+00 : f32
    %7 = vector.broadcast %cst : f32 to vector<256x8xf32>
    %8 = arith.maximumf %6, %7 : vector<256x8xf32>
    %c0_5 = arith.constant 0 : index
    %c0_6 = arith.constant 0 : index
    %9 = vector.load %arg4[%c0_5, %c0_6] : memref<256x8xf32, #tpu.memory_space<vmem>>, vector<256x8xf32>
    tpu.vector_store %arg4[%c0_5, %c0_6], %8 {strides = array<i32>} : memref<256x8xf32, #tpu.memory_space<vmem>>, vector<256x8xf32>,
    return
  }
  func.func @transform_0(%arg0: i32) -> (i32, i32) {
    %c0_i32 = arith.constant 0 : i32
    %c0_i32_0 = arith.constant 0 : i32
    return %arg0, %c0_i32 : i32, i32
  }
  func.func @transform_1(%arg0: i32) -> (i32, i32) {
    %c0_i32 = arith.constant 0 : i32
    %c0_i32_0 = arith.constant 0 : i32
    %c0_i32_1 = arith.constant 0 : i32
    return %c0_i32, %c0_i32_0 : i32, i32
  }
  func.func @transform_2(%arg0: i32) -> (i32, i32) {
    %c0_i32 = arith.constant 0 : i32
    %c0_i32_0 = arith.constant 0 : i32
    %c0_i32_1 = arith.constant 0 : i32
    return %c0_i32, %c0_i32_0 : i32, i32
  }
  func.func @transform_3(%arg0: i32) -> (i32, i32) {
    %c0_i32 = arith.constant 0 : i32
    %c0_i32_0 = arith.constant 0 : i32
    return %arg0, %c0_i32 : i32, i32
  }
}

module attributes {stable_mosaic.version = 11 : i64} {
  func.func @_matmul_kernel(%arg0: i32, %arg1: memref<256x81xbf16, #tpu.memory_space<vmem>>, %arg2: memref<81x128xbf16, #tpu.memory_space<vmem>>, %arg3: memref<1x128xf32, #tpu.memory_space<vmem>>, %arg4: memref<256x128xf32, #tpu.memory_space<vmem>>) attributes {dimension_semantics = [#tpu.dimension_semantics<parallel>], iteration_bounds = array<i64: 2>, scalar_prefetch = 0 : i64, scratch_operands = 0 : i64, tpu.core_type = #tpu.core_type<tc>, window_params = [{transform_indices = @transform_0, window_bounds = array<i64: 256, 81>}, {pipeline_mode = #tpu.pipeline_mode<synchronous>, transform_indices = @transform_1, window_bounds = array<i64: 81, 128>}, {pipeline_mode = #tpu.pipeline_mode<synchronous>, transform_indices = @transform_2, window_bounds = array<i64: 1, 128>}, {transform_indices = @transform_3, window_bounds = array<i64: 256, 128>}]} {
    %c0 = arith.constant 0 : index
    %c0_0 = arith.constant 0 : index
    %0 = vector.load %arg1[%c0, %c0_0] : memref<256x81xbf16, #tpu.memory_space<vmem>>, vector<256x81xbf16>
    %c0_1 = arith.constant 0 : index
    %c0_2 = arith.constant 0 : index
    %1 = vector.load %arg2[%c0_1, %c0_2] : memref<81x128xbf16, #tpu.memory_space<vmem>>, vector<81x128xbf16>
    %cst = arith.constant dense<0.000000e+00> : vector<256x128xf32>
    %2 = tpu.matmul %0, %1, %cst {dimension_numbers = #tpu.dot_dimension_numbers<[1], [0], [0], [1], [0, 0, 1, 1], [], []>} : vector<256x81xbf16>, vector<81x128xbf16>, vector<256x128xf32> -> vector<256x128xf32>
    %c0_3 = arith.constant 0 : index
    %c0_4 = arith.constant 0 : index
    %3 = vector.load %arg3[%c0_3, %c0_4] : memref<1x128xf32, #tpu.memory_space<vmem>>, vector<1x128xf32>
    %4 = vector.broadcast %3 : vector<1x128xf32> to vector<256x128xf32>
    %5 = arith.addf %2, %4 : vector<256x128xf32>
    %cst_5 = arith.constant 0.000000e+00 : f32
    %6 = vector.broadcast %cst_5 : f32 to vector<256x128xf32>
    %7 = arith.maximumf %5, %6 : vector<256x128xf32>
    %c0_6 = arith.constant 0 : index
    %c0_7 = arith.constant 0 : index
    %8 = vector.load %arg4[%c0_6, %c0_7] : memref<256x128xf32, #tpu.memory_space<vmem>>, vector<256x128xf32>
    tpu.vector_store %arg4[%c0_6, %c0_7], %7 {strides = array<i32>} : memref<256x128xf32, #tpu.memory_space<vmem>>, vector<256x128xf32>,
    return
  }
  func.func @transform_0(%arg0: i32) -> (i32, i32) {
    %c0_i32 = arith.constant 0 : i32
    %c0_i32_0 = arith.constant 0 : i32
    return %arg0, %c0_i32 : i32, i32
  }
  func.func @transform_1(%arg0: i32) -> (i32, i32) {
    %c0_i32 = arith.constant 0 : i32
    %c0_i32_0 = arith.constant 0 : i32
    %c0_i32_1 = arith.constant 0 : i32
    return %c0_i32, %c0_i32_0 : i32, i32
  }
  func.func @transform_2(%arg0: i32) -> (i32, i32) {
    %c0_i32 = arith.constant 0 : i32
    %c0_i32_0 = arith.constant 0 : i32
    %c0_i32_1 = arith.constant 0 : i32
    return %c0_i32, %c0_i32_0 : i32, i32
  }
  func.func @transform_3(%arg0: i32) -> (i32, i32) {
    %c0_i32 = arith.constant 0 : i32
    %c0_i32_0 = arith.constant 0 : i32
    return %arg0, %c0_i32 : i32, i32
  }
}

module attributes {stable_mosaic.version = 11 : i64} {
  func.func @_matmul_kernel(%arg0: i32, %arg1: memref<256x8xbf16, #tpu.memory_space<vmem>>, %arg2: memref<8x128xbf16, #tpu.memory_space<vmem>>, %arg3: memref<1x128xf32, #tpu.memory_space<vmem>>, %arg4: memref<256x128xf32, #tpu.memory_space<vmem>>) attributes {dimension_semantics = [#tpu.dimension_semantics<parallel>], iteration_bounds = array<i64: 2>, scalar_prefetch = 0 : i64, scratch_operands = 0 : i64, tpu.core_type = #tpu.core_type<tc>, window_params = [{transform_indices = @transform_0, window_bounds = array<i64: 256, 8>}, {pipeline_mode = #tpu.pipeline_mode<synchronous>, transform_indices = @transform_1, window_bounds = array<i64: 8, 128>}, {pipeline_mode = #tpu.pipeline_mode<synchronous>, transform_indices = @transform_2, window_bounds = array<i64: 1, 128>}, {transform_indices = @transform_3, window_bounds = array<i64: 256, 128>}]} {
    %c0 = arith.constant 0 : index
    %c0_0 = arith.constant 0 : index
    %0 = vector.load %arg1[%c0, %c0_0] : memref<256x8xbf16, #tpu.memory_space<vmem>>, vector<256x8xbf16>
    %c0_1 = arith.constant 0 : index
    %c0_2 = arith.constant 0 : index
    %1 = vector.load %arg2[%c0_1, %c0_2] : memref<8x128xbf16, #tpu.memory_space<vmem>>, vector<8x128xbf16>
    %cst = arith.constant dense<0.000000e+00> : vector<256x128xf32>
    %2 = tpu.matmul %0, %1, %cst {dimension_numbers = #tpu.dot_dimension_numbers<[1], [0], [0], [1], [0, 0, 1, 1], [], []>} : vector<256x8xbf16>, vector<8x128xbf16>, vector<256x128xf32> -> vector<256x128xf32>
    %c0_3 = arith.constant 0 : index
    %c0_4 = arith.constant 0 : index
    %3 = vector.load %arg3[%c0_3, %c0_4] : memref<1x128xf32, #tpu.memory_space<vmem>>, vector<1x128xf32>
    %4 = vector.broadcast %3 : vector<1x128xf32> to vector<256x128xf32>
    %5 = arith.addf %2, %4 : vector<256x128xf32>
    %cst_5 = arith.constant 0.000000e+00 : f32
    %6 = vector.broadcast %cst_5 : f32 to vector<256x128xf32>
    %7 = arith.maximumf %5, %6 : vector<256x128xf32>
    %c0_6 = arith.constant 0 : index
    %c0_7 = arith.constant 0 : index
    %8 = vector.load %arg4[%c0_6, %c0_7] : memref<256x128xf32, #tpu.memory_space<vmem>>, vector<256x128xf32>
    tpu.vector_store %arg4[%c0_6, %c0_7], %7 {strides = array<i32>} : memref<256x128xf32, #tpu.memory_space<vmem>>, vector<256x128xf32>,
    return
  }
  func.func @transform_0(%arg0: i32) -> (i32, i32) {
    %c0_i32 = arith.constant 0 : i32
    %c0_i32_0 = arith.constant 0 : i32
    return %arg0, %c0_i32 : i32, i32
  }
  func.func @transform_1(%arg0: i32) -> (i32, i32) {
    %c0_i32 = arith.constant 0 : i32
    %c0_i32_0 = arith.constant 0 : i32
    %c0_i32_1 = arith.constant 0 : i32
    return %c0_i32, %c0_i32_0 : i32, i32
  }
  func.func @transform_2(%arg0: i32) -> (i32, i32) {
    %c0_i32 = arith.constant 0 : i32
    %c0_i32_0 = arith.constant 0 : i32
    %c0_i32_1 = arith.constant 0 : i32
    return %c0_i32, %c0_i32_0 : i32, i32
  }
  func.func @transform_3(%arg0: i32) -> (i32, i32) {
    %c0_i32 = arith.constant 0 : i32
    %c0_i32_0 = arith.constant 0 : i32
    return %arg0, %c0_i32 : i32, i32
  }
}

module attributes {stable_mosaic.version = 11 : i64} {
  func.func @_matmul_edge_kernel(%arg0: i32, %arg1: memref<256x72xbf16, #tpu.memory_space<vmem>>, %arg2: memref<72x128xbf16, #tpu.memory_space<vmem>>, %arg3: memref<1x128xf32, #tpu.memory_space<vmem>>, %arg4: memref<256x1xf32, #tpu.memory_space<vmem>>, %arg5: memref<256x1xf32, #tpu.memory_space<vmem>>, %arg6: memref<256x128xf32, #tpu.memory_space<vmem>>, %arg7: memref<256x128xf32, #tpu.memory_space<vmem>>) attributes {dimension_semantics = [#tpu.dimension_semantics<parallel>], iteration_bounds = array<i64: 2>, scalar_prefetch = 0 : i64, scratch_operands = 0 : i64, tpu.core_type = #tpu.core_type<tc>, window_params = [{transform_indices = @transform_0, window_bounds = array<i64: 256, 72>}, {pipeline_mode = #tpu.pipeline_mode<synchronous>, transform_indices = @transform_1, window_bounds = array<i64: 72, 128>}, {pipeline_mode = #tpu.pipeline_mode<synchronous>, transform_indices = @transform_2, window_bounds = array<i64: 1, 128>}, {transform_indices = @transform_3, window_bounds = array<i64: 256, 1>}, {transform_indices = @transform_4, window_bounds = array<i64: 256, 1>}, {transform_indices = @transform_5, window_bounds = array<i64: 256, 128>}, {transform_indices = @transform_6, window_bounds = array<i64: 256, 128>}]} {
    %c0 = arith.constant 0 : index
    %c0_0 = arith.constant 0 : index
    %0 = vector.load %arg1[%c0, %c0_0] : memref<256x72xbf16, #tpu.memory_space<vmem>>, vector<256x72xbf16>
    %c0_1 = arith.constant 0 : index
    %c0_2 = arith.constant 0 : index
    %1 = vector.load %arg2[%c0_1, %c0_2] : memref<72x128xbf16, #tpu.memory_space<vmem>>, vector<72x128xbf16>
    %cst = arith.constant dense<0.000000e+00> : vector<256x128xf32>
    %2 = tpu.matmul %0, %1, %cst {dimension_numbers = #tpu.dot_dimension_numbers<[1], [0], [0], [1], [0, 0, 1, 1], [], []>} : vector<256x72xbf16>, vector<72x128xbf16>, vector<256x128xf32> -> vector<256x128xf32>
    %c0_3 = arith.constant 0 : index
    %c0_4 = arith.constant 0 : index
    %3 = vector.load %arg3[%c0_3, %c0_4] : memref<1x128xf32, #tpu.memory_space<vmem>>, vector<1x128xf32>
    %4 = vector.broadcast %3 : vector<1x128xf32> to vector<256x128xf32>
    %5 = arith.addf %2, %4 : vector<256x128xf32>
    %cst_5 = arith.constant 0.000000e+00 : f32
    %6 = vector.broadcast %cst_5 : f32 to vector<256x128xf32>
    %7 = arith.maximumf %5, %6 : vector<256x128xf32>
    %c0_6 = arith.constant 0 : index
    %c0_7 = arith.constant 0 : index
    %8 = vector.load %arg4[%c0_6, %c0_7] : memref<256x1xf32, #tpu.memory_space<vmem>>, vector<256x1xf32>
    %9 = arith.negf %8 : vector<256x1xf32>
    %10 = math.exp %9 : vector<256x1xf32>
    %cst_8 = arith.constant 1.000000e+00 : f32
    %11 = vector.broadcast %cst_8 : f32 to vector<256x1xf32>
    %12 = arith.addf %11, %10 : vector<256x1xf32>
    %13 = arith.divf %11, %12 : vector<256x1xf32>
    %c0_9 = arith.constant 0 : index
    %c0_10 = arith.constant 0 : index
    %14 = vector.load %arg5[%c0_9, %c0_10] : memref<256x1xf32, #tpu.memory_space<vmem>>, vector<256x1xf32>
    %15 = arith.negf %14 : vector<256x1xf32>
    %16 = math.exp %15 : vector<256x1xf32>
    %cst_11 = arith.constant 1.000000e+00 : f32
    %17 = vector.broadcast %cst_11 : f32 to vector<256x1xf32>
    %18 = arith.addf %17, %16 : vector<256x1xf32>
    %19 = arith.divf %17, %18 : vector<256x1xf32>
    %20 = arith.mulf %13, %19 : vector<256x1xf32>
    %21 = vector.broadcast %20 : vector<256x1xf32> to vector<256x128xf32>
    %22 = arith.mulf %7, %21 : vector<256x128xf32>
    %c0_12 = arith.constant 0 : index
    %c0_13 = arith.constant 0 : index
    %23 = vector.load %arg6[%c0_12, %c0_13] : memref<256x128xf32, #tpu.memory_space<vmem>>, vector<256x128xf32>
    tpu.vector_store %arg6[%c0_12, %c0_13], %22 {strides = array<i32>} : memref<256x128xf32, #tpu.memory_space<vmem>>, vector<256x128xf32>,
    %24 = arith.addf %7, %22 : vector<256x128xf32>
    %c0_14 = arith.constant 0 : index
    %c0_15 = arith.constant 0 : index
    %25 = vector.load %arg7[%c0_14, %c0_15] : memref<256x128xf32, #tpu.memory_space<vmem>>, vector<256x128xf32>
    tpu.vector_store %arg7[%c0_14, %c0_15], %24 {strides = array<i32>} : memref<256x128xf32, #tpu.memory_space<vmem>>, vector<256x128xf32>,
    return
  }
  func.func @transform_0(%arg0: i32) -> (i32, i32) {
    %c0_i32 = arith.constant 0 : i32
    %c0_i32_0 = arith.constant 0 : i32
    return %arg0, %c0_i32 : i32, i32
  }
  func.func @transform_1(%arg0: i32) -> (i32, i32) {
    %c0_i32 = arith.constant 0 : i32
    %c0_i32_0 = arith.constant 0 : i32
    %c0_i32_1 = arith.constant 0 : i32
    return %c0_i32, %c0_i32_0 : i32, i32
  }
  func.func @transform_2(%arg0: i32) -> (i32, i32) {
    %c0_i32 = arith.constant 0 : i32
    %c0_i32_0 = arith.constant 0 : i32
    %c0_i32_1 = arith.constant 0 : i32
    return %c0_i32, %c0_i32_0 : i32, i32
  }
  func.func @transform_3(%arg0: i32) -> (i32, i32) {
    %c0_i32 = arith.constant 0 : i32
    %c0_i32_0 = arith.constant 0 : i32
    return %arg0, %c0_i32 : i32, i32
  }
  func.func @transform_4(%arg0: i32) -> (i32, i32) {
    %c0_i32 = arith.constant 0 : i32
    %c0_i32_0 = arith.constant 0 : i32
    return %arg0, %c0_i32 : i32, i32
  }
  func.func @transform_5(%arg0: i32) -> (i32, i32) {
    %c0_i32 = arith.constant 0 : i32
    %c0_i32_0 = arith.constant 0 : i32
    return %arg0, %c0_i32 : i32, i32
  }
  func.func @transform_6(%arg0: i32) -> (i32, i32) {
    %c0_i32 = arith.constant 0 : i32
    %c0_i32_0 = arith.constant 0 : i32
    return %arg0, %c0_i32 : i32, i32
  }
}

</mosaic_0001>

<bundles_post_ra>
// kernel: run.62
= control target key start
LH: loop header
LB: loop body
LE: loop exit
PB: predicated region body
PF: predicated region fallthrough
CT: control target
= control target key end

     0   :  { %s254_s0 = inlined_call_operand.vmem [shape: f32[128,128], index: 0, kind: input, shape index: {}]   ;;  %s255_s1 = inlined_call_operand.vmem [shape: f32[1,128], index: 1, kind: input, shape index: {}]   ;;  %s256_s2 = inlined_call_operand.vmem [shape: f32[1,128], index: 2, kind: input, shape index: {}]   ;;  %s257_s3 = inlined_call_operand.vmem [shape: f32[128,128], index: 3, kind: output, shape index: {}]  }
   0x1   :  { %v14_v0 = vld [vmem:[%s254_s0] sm:$0xff]  ;;  %v15_v4 = vld [vmem:[%s254_s0 + $0x8] sm:$0xff]  ;;  %v16_v5 = vld [vmem:[%s254_s0 + $0x10] sm:$0xff] }
   0x2   :  { %v112_v1 = vld [vmem:[%s255_s1] ss:$0 sm:$0xff]  ;;  %v17_v6 = vld [vmem:[%s254_s0 + $0x18] sm:$0xff]  ;;  %v19_v11 = vld [vmem:[%s254_s0 + $0x28] sm:$0xff] }
   0x3   :  { %v143_v2 = vld [vmem:[%s256_s2] ss:$0 sm:$0xff]  ;;  %v37_v3 = vmul.f32 %v112_v1, %v14_v0  ;;  %v38_v7 = vmul.f32 %v112_v1, %v15_v4  ;;  %v39_v8 = vmul.f32 %v112_v1, %v16_v5  ;;  %v40_v9 = vmul.f32 %v112_v1, %v17_v6  ;;  %v20_v12 = vld [vmem:[%s254_s0 + $0x30] sm:$0xff]  ;;  %v21_v17 = vld [vmem:[%s254_s0 + $0x38] sm:$0xff] }
   0x4   :  { %v18_v10 = vld [vmem:[%s254_s0 + $0x20] sm:$0xff]  ;;  %v42_v15 = vmul.f32 %v112_v1, %v19_v11  ;;  %v43_v16 = vmul.f32 %v112_v1, %v20_v12  ;;  %v44_v21 = vmul.f32 %v112_v1, %v21_v17  ;;  %v23_v27 = vld [vmem:[%s254_s0 + $0x48] sm:$0xff]  ;;  %v24_v28 = vld [vmem:[%s254_s0 + $0x50] sm:$0xff] }
   0x5   :  { %v60_v13 = vadd.f32 %v143_v2, %v37_v3  ;;  %v41_v14 = vmul.f32 %v112_v1, %v18_v10  ;;  %v61_v18 = vadd.f32 %v143_v2, %v38_v7  ;;  %v62_v19 = vadd.f32 %v143_v2, %v39_v8  ;;  %v22_v22 = vld [vmem:[%s254_s0 + $0x40] sm:$0xff]  ;;  %v25_v29 = vld [vmem:[%s254_s0 + $0x58] sm:$0xff]  ;;  %v27_v35 = vld [vmem:[%s254_s0 + $0x68] sm:$0xff] }
   0x6   :  { %v63_v20 = vadd.f32 %v143_v2, %v40_v9  ;;  %v65_v25 = vadd.f32 %v143_v2, %v42_v15  ;;  %v66_v26 = vadd.f32 %v143_v2, %v43_v16  ;;  %v67_v33 = vadd.f32 %v143_v2, %v44_v21  ;;  %v26_v34 = vld [vmem:[%s254_s0 + $0x60] sm:$0xff]  ;;  %v28_v36 = vld [vmem:[%s254_s0 + $0x70] sm:$0xff]  ;;  %v29_v41 = vld [vmem:[%s254_s0 + $0x78] sm:$0xff] }
   0x7   :  { %v76_v23 = vmax.f32 %v60_v13, 0.0  ;;  %v64_v24 = vadd.f32 %v143_v2, %v41_v14  ;;  %v77_v30 = vmax.f32 %v61_v18, 0.0  ;;  %v78_v31 = vmax.f32 %v62_v19, 0.0 }
   0x8   :  { %v79_v32 = vmax.f32 %v63_v20, 0.0  ;;  %v81_v38 = vmax.f32 %v65_v25, 0.0  ;;  %v82_v39 = vmax.f32 %v66_v26, 0.0  ;;  %v45_v40 = vmul.f32 %v112_v1, %v22_v22 }
   0x9   :  { %92 = vst [vmem:[%s257_s3] sm:$0xff] %v76_v23  ;;  %v80_v37 = vmax.f32 %v64_v24, 0.0  ;;  %93 = vst [vmem:[%s257_s3 + $0x8] sm:$0xff] %v77_v30  ;;  %v83_v42 = vmax.f32 %v67_v33, 0.0  ;;  %v46_v43 = vmul.f32 %v112_v1, %v23_v27  ;;  %v47_v44 = vmul.f32 %v112_v1, %v24_v28 }
   0xa   :  { %94 = vst [vmem:[%s257_s3 + $0x10] sm:$0xff] %v78_v31  ;;  %95 = vst [vmem:[%s257_s3 + $0x18] sm:$0xff] %v79_v32  ;;  %v48_v45 = vmul.f32 %v112_v1, %v25_v29  ;;  %v68_v46 = vadd.f32 %v143_v2, %v45_v40  ;;  %v49_v47 = vmul.f32 %v112_v1, %v26_v34 }
   0xb   :  { %96 = vst [vmem:[%s257_s3 + $0x20] sm:$0xff] %v80_v37  ;;  %97 = vst [vmem:[%s257_s3 + $0x28] sm:$0xff] %v81_v38  ;;  %v50_v48 = vmul.f32 %v112_v1, %v27_v35  ;;  %v51_v49 = vmul.f32 %v112_v1, %v28_v36  ;;  %v69_v50 = vadd.f32 %v143_v2, %v46_v43 }
   0xc   :  { %98 = vst [vmem:[%s257_s3 + $0x30] sm:$0xff] %v82_v39  ;;  %99 = vst [vmem:[%s257_s3 + $0x38] sm:$0xff] %v83_v42  ;;  %v70_v51 = vadd.f32 %v143_v2, %v47_v44  ;;  %v71_v52 = vadd.f32 %v143_v2, %v48_v45  ;;  %v52_v53 = vmul.f32 %v112_v1, %v29_v41  ;;  %v84_v54 = vmax.f32 %v68_v46, 0.0 }
   0xd   :  { %v72_v55 = vadd.f32 %v143_v2, %v49_v47  ;;  %v73_v56 = vadd.f32 %v143_v2, %v50_v48  ;;  %v74_v57 = vadd.f32 %v143_v2, %v51_v49  ;;  %v85_v58 = vmax.f32 %v69_v50, 0.0 }
   0xe   :  { %v86_v59 = vmax.f32 %v70_v51, 0.0  ;;  %v87_v60 = vmax.f32 %v71_v52, 0.0  ;;  %v75_v61 = vadd.f32 %v143_v2, %v52_v53  ;;  %100 = vst [vmem:[%s257_s3 + $0x40] sm:$0xff] %v84_v54 }
   0xf   :  { %v88_v62 = vmax.f32 %v72_v55, 0.0  ;;  %v89_v63 = vmax.f32 %v73_v56, 0.0  ;;  %v90_v0 = vmax.f32 %v74_v57, 0.0  ;;  %101 = vst [vmem:[%s257_s3 + $0x48] sm:$0xff] %v85_v58 }
  0x10   :  { %102 = vst [vmem:[%s257_s3 + $0x50] sm:$0xff] %v86_v59  ;;  %103 = vst [vmem:[%s257_s3 + $0x58] sm:$0xff] %v87_v60  ;;  %v91_v1 = vmax.f32 %v75_v61, 0.0 }
  0x11   :  { %104 = vst [vmem:[%s257_s3 + $0x60] sm:$0xff] %v88_v62  ;;  %105 = vst [vmem:[%s257_s3 + $0x68] sm:$0xff] %v89_v63 }
  0x12   :  { %106 = vst [vmem:[%s257_s3 + $0x70] sm:$0xff] %v90_v0  ;;  %107 = vst [vmem:[%s257_s3 + $0x78] sm:$0xff] %v91_v1 }

// kernel: run.61
= control target key start
LH: loop header
LB: loop body
LE: loop exit
PB: predicated region body
PF: predicated region fallthrough
CT: control target
= control target key end

     0   :  { %v849_v0 = vmov 0   ;;  %vm402_vm0 = vcmask 64512   ;;  %vm427_vm1 = vcmask 1043456   ;;  %s1127_s1 = inlined_call_operand.vmem [shape: bf16[392,128], index: 1, kind: input, shape index: {}]   ;;  %s1128_s0 = inlined_call_operand.vmem [shape: bf16[128,392], index: 0, kind: input, shape index: {}]   ;;  %s1129_s2 = inlined_call_operand.vmem [shape: f32[1,128], index: 2, kind: input, shape index: {}]   ;;  %s1130_s3 = inlined_call_operand.vmem [shape: f32[128,128], index: 3, kind: output, shape index: {}]  }
   0x1   :  { %528 = vmatprep.subr.bf16.mxu1 %v849_v0  ;;  %v776_v1 = vld [vmem:[%s1127_s1 + $0x78] sm:$0xff]   ;;  %v779_v4 = vld [vmem:[%s1127_s1 + $0x70] sm:$0xff]   ;;  %v782_v7 = vld [vmem:[%s1127_s1 + $0x68] sm:$0xff]  }
   0x2   :  { %v777_v2 = vld [vmem:[%s1127_s1 + $0xb8] sm:$0xff]   ;;  %711 = vmatprep.subr.bf16.mxu0 %v776_v1  ;;  %v780_v5 = vld [vmem:[%s1127_s1 + $0xb0] sm:$0xff]   ;;  %v783_v8 = vld [vmem:[%s1127_s1 + $0xa8] sm:$0xff]  }
   0x3   :  { %v778_v3 = vld [vmem:[%s1127_s1 + $0x38] sm:$0xff]   ;;  %529 = vmatpush1.bf16.msra.mxu1 %v777_v2  ;;  %v781_v6 = vld [vmem:[%s1127_s1 + $0x30] sm:$0xff]   ;;  %v784_v9 = vld [vmem:[%s1127_s1 + $0x28] sm:$0xff]  }
   0x4   :  { %712 = vmatpush3.bf16.msra.mxu0 %v778_v3  ;;  %530 = vmatprep.subr.bf16.mxu1 %v849_v0  ;;  %v785_v10 = vld [vmem:[%s1127_s1 + $0x60] sm:$0xff]   ;;  %v788_v13 = vld [vmem:[%s1127_s1 + $0x58] sm:$0xff]   ;;  %v791_v16 = vld [vmem:[%s1127_s1 + $0x50] sm:$0xff]  }
   0x5   :  { %713 = vmatprep.subr.bf16.mxu0 %v779_v4  ;;  %v786_v11 = vld [vmem:[%s1127_s1 + $0xa0] sm:$0xff]   ;;  %v789_v14 = vld [vmem:[%s1127_s1 + $0x98] sm:$0xff]   ;;  %v792_v17 = vld [vmem:[%s1127_s1 + $0x90] sm:$0xff]  }
   0x6   :  { %v787_v12 = vld [vmem:[%s1127_s1 + $0x20] sm:$0xff]   ;;  %v790_v15 = vld [vmem:[%s1127_s1 + $0x18] sm:$0xff]   ;;  %v793_v18 = vld [vmem:[%s1127_s1 + $0x10] sm:$0xff]  }
   0x7   :  { %531 = vmatpush1.bf16.msra.mxu1 %v780_v5  ;;  %v794_v19 = vld [vmem:[%s1127_s1 + $0x48] sm:$0xff]   ;;  %v797_v22 = vld [vmem:[%s1127_s1 + $0x40] sm:$0xff]  }
   0x8   :  { %714 = vmatpush3.bf16.msra.mxu0 %v781_v6  ;;  %532 = vmatprep.subr.bf16.mxu1 %v849_v0  ;;  %v795_v20 = vld [vmem:[%s1127_s1 + $0x88] sm:$0xff]   ;;  %v802_v23 = vld [vmem:[%s1128_s0 + $0x4] ss:$16 sps:$4 sm:$0xff]   ;;  %v803_v27 = vld [vmem:[%s1127_s1 + $0xc0] ss:$0 sps:$4 sm:$0xff]  }
   0x9   :  { %715 = vmatprep.subr.bf16.mxu0 %v782_v7  ;;  %v796_v21 = vld [vmem:[%s1127_s1 + $0x8] sm:$0xff]   ;;  %v798_v24 = vld [vmem:[%s1127_s1 + $0x80] sm:$0xff]   ;;  %463 = vmatprep.mubr.bf16.mxu0 %v802_v23  ;;  %v429_v29 = vsel %vm427_vm1, %v803_v27, 0 }
   0xa   :  { %v806_v25 = vld [vmem:[%s1128_s0 + $0xc] ss:$16 sps:$4 sm:$0xff]   ;;  %v799_v26 = vld [vmem:[%s1127_s1] sm:$0xff]   ;;  %v804_v31 = vld [vmem:[%s1128_s0 + $0x8] ss:$16 sps:$4 sm:$0xff]  }
   0xb   :  { %533 = vmatpush1.bf16.msra.mxu1 %v783_v8  ;;  %703 = vmatprep.mubr.msk.bf16.mxu1 %vm402_vm0, %v806_v25  ;;  %v800_v28 = vld [vmem:[%s1128_s0] ss:$16 sps:$4 sm:$0xff]   ;;  %v807_v30 = vld [vmem:[%s1128_s0 + $0x24] ss:$16 sps:$4 sm:$0xff]   ;;  %v810_v32 = vld [vmem:[%s1128_s0 + $0x2c] ss:$16 sps:$4 sm:$0xff]  }
   0xc   :  { %716 = vmatpush3.bf16.msra.mxu0 %v784_v9  ;;  %534 = vmatprep.subr.bf16.mxu1 %v849_v0  ;;  %v809_v33 = vld [vmem:[%s1128_s0 + $0x20] ss:$16 sps:$4 sm:$0xff]   ;;  %v813_v34 = vld [vmem:[%s1128_s0 + $0x44] ss:$16 sps:$4 sm:$0xff]   ;;  %v812_v35 = vld [vmem:[%s1128_s0 + $0x28] ss:$16 sps:$4 sm:$0xff]  }
   0xd   :  { %717 = vmatprep.subr.bf16.mxu0 %v785_v10  ;;  %v816_v36 = vld [vmem:[%s1128_s0 + $0x4c] ss:$16 sps:$4 sm:$0xff]   ;;  %v815_v37 = vld [vmem:[%s1128_s0 + $0x40] ss:$16 sps:$4 sm:$0xff]   ;;  %v819_v38 = vld [vmem:[%s1128_s0 + $0x64] ss:$16 sps:$4 sm:$0xff]  }
   0xe   :  { %v818_v39 = vld [vmem:[%s1128_s0 + $0x48] ss:$16 sps:$4 sm:$0xff]   ;;  %v822_v40 = vld [vmem:[%s1128_s0 + $0x6c] ss:$16 sps:$4 sm:$0xff]   ;;  %v821_v41 = vld [vmem:[%s1128_s0 + $0x60] ss:$16 sps:$4 sm:$0xff]  }
   0xf   :  { %535 = vmatpush1.bf16.msra.mxu1 %v786_v11  ;;  %v825_v42 = vld [vmem:[%s1128_s0 + $0x84] ss:$16 sps:$4 sm:$0xff]   ;;  %v824_v43 = vld [vmem:[%s1128_s0 + $0x68] ss:$16 sps:$4 sm:$0xff]   ;;  %v828_v44 = vld [vmem:[%s1128_s0 + $0x8c] ss:$16 sps:$4 sm:$0xff]  }
  0x10   :  { %718 = vmatpush3.bf16.msra.mxu0 %v787_v12  ;;  %536 = vmatprep.subr.bf16.mxu1 %v849_v0  ;;  %v827_v45 = vld [vmem:[%s1128_s0 + $0x80] ss:$16 sps:$4 sm:$0xff]   ;;  %v831_v46 = vld [vmem:[%s1128_s0 + $0xa4] ss:$16 sps:$4 sm:$0xff]   ;;  %v830_v47 = vld [vmem:[%s1128_s0 + $0x88] ss:$16 sps:$4 sm:$0xff]  }
  0x11   :  { %719 = vmatprep.subr.bf16.mxu0 %v788_v13  ;;  %v834_v48 = vld [vmem:[%s1128_s0 + $0xac] ss:$16 sps:$4 sm:$0xff]   ;;  %v833_v49 = vld [vmem:[%s1128_s0 + $0xa0] ss:$16 sps:$4 sm:$0xff]   ;;  %v837_v50 = vld [vmem:[%s1128_s0 + $0xc4] ss:$16 sps:$4 sm:$0xff]  }
  0x12   :  { %v836_v51 = vld [vmem:[%s1128_s0 + $0xa8] ss:$16 sps:$4 sm:$0xff]   ;;  %v840_v52 = vld [vmem:[%s1128_s0 + $0xcc] ss:$16 sps:$4 sm:$0xff]   ;;  %v839_v53 = vld [vmem:[%s1128_s0 + $0xc0] ss:$16 sps:$4 sm:$0xff]  }
  0x13   :  { %537 = vmatpush1.bf16.msra.mxu1 %v789_v14  ;;  %v843_v54 = vld [vmem:[%s1128_s0 + $0xe4] ss:$16 sps:$4 sm:$0xff]   ;;  %v842_v55 = vld [vmem:[%s1128_s0 + $0xc8] ss:$16 sps:$4 sm:$0xff]   ;;  %v846_v56 = vld [vmem:[%s1128_s0 + $0xec] ss:$16 sps:$4 sm:$0xff]  }
  0x14   :  { %720 = vmatpush3.bf16.msra.mxu0 %v790_v15  ;;  %538 = vmatprep.subr.bf16.mxu1 %v849_v0  ;;  %v845_v57 = vld [vmem:[%s1128_s0 + $0xe0] ss:$16 sps:$4 sm:$0xff]   ;;  %v848_v58 = vld [vmem:[%s1128_s0 + $0xe8] ss:$16 sps:$4 sm:$0xff]  }
  0x15   :  { %721 = vmatprep.subr.bf16.mxu0 %v791_v16  ;;  %v1061_v61 = vld [vmem:[%s1129_s2] ss:$0 sm:$0xff] }
  0x17   :  { %539 = vmatpush1.bf16.msra.mxu1 %v792_v17 }
  0x18   :  { %722 = vmatpush3.bf16.msra.mxu0 %v793_v18  ;;  %540 = vmatprep.subr.bf16.mxu1 %v849_v0 }
  0x19   :  { %723 = vmatprep.subr.bf16.mxu0 %v794_v19 }
  0x1b   :  { %541 = vmatpush1.bf16.msra.mxu1 %v795_v20 }
  0x1c   :  { %724 = vmatpush3.bf16.msra.mxu0 %v796_v21  ;;  %542 = vmatprep.subr.bf16.mxu1 %v849_v0 }
  0x1d   :  { %725 = vmatprep.subr.bf16.mxu0 %v797_v22 }
  0x1f   :  { %543 = vmatpush1.bf16.msra.mxu1 %v798_v24 }
  0x20   :  { %726 = vmatpush3.bf16.msra.mxu0 %v799_v26  ;;  %558 = vmatprep.subr.bf16.mxu1 %v849_v0 }
  0x23   :  { %464 = vmatmul.mubr.bf16.vlgmr.msra.gmra.mxu0 %v800_v28  ;;  %559 = vmatpush2.bf16.msra.mxu1 %v429_v29 }
  0x24   :  { %471 = vmatprep.mubr.bf16.mxu0 %v807_v30 }
  0x26   :  { %561 = vmatmul.mubr.bf16.vlgmr.msra.gmra.mxu1 %v804_v31 }
  0x27   :  { %704 = vmatprep.mubr.msk.bf16.mxu1 %vm402_vm0, %v810_v32 }
  0x2b   :  { %472 = vmatmul.mubr.bf16.gmra.mxu0 %v809_v33 }
  0x2c   :  { %479 = vmatprep.mubr.bf16.mxu0 %v813_v34 }
  0x2e   :  { %569 = vmatmul.mubr.bf16.gmra.mxu1 %v812_v35 }
  0x2f   :  { %705 = vmatprep.mubr.msk.bf16.mxu1 %vm402_vm0, %v816_v36 }
  0x33   :  { %480 = vmatmul.mubr.bf16.gmra.mxu0 %v815_v37 }
  0x34   :  { %487 = vmatprep.mubr.bf16.mxu0 %v819_v38 }
  0x36   :  { %577 = vmatmul.mubr.bf16.gmra.mxu1 %v818_v39 }
  0x37   :  { %706 = vmatprep.mubr.msk.bf16.mxu1 %vm402_vm0, %v822_v40 }
  0x3b   :  { %488 = vmatmul.mubr.bf16.gmra.mxu0 %v821_v41 }
  0x3c   :  { %495 = vmatprep.mubr.bf16.mxu0 %v825_v42 }
  0x3e   :  { %585 = vmatmul.mubr.bf16.gmra.mxu1 %v824_v43 }
  0x3f   :  { %707 = vmatprep.mubr.msk.bf16.mxu1 %vm402_vm0, %v828_v44 }
  0x43   :  { %496 = vmatmul.mubr.bf16.gmra.mxu0 %v827_v45 }
  0x44   :  { %503 = vmatprep.mubr.bf16.mxu0 %v831_v46 }
  0x46   :  { %593 = vmatmul.mubr.bf16.gmra.mxu1 %v830_v47 }
  0x47   :  { %708 = vmatprep.mubr.msk.bf16.mxu1 %vm402_vm0, %v834_v48 }
  0x4b   :  { %504 = vmatmul.mubr.bf16.gmra.mxu0 %v833_v49 }
  0x4c   :  { %511 = vmatprep.mubr.bf16.mxu0 %v837_v50 }
  0x4e   :  { %601 = vmatmul.mubr.bf16.gmra.mxu1 %v836_v51 }
  0x4f   :  { %709 = vmatprep.mubr.msk.bf16.mxu1 %vm402_vm0, %v840_v52 }
  0x53   :  { %512 = vmatmul.mubr.bf16.gmra.mxu0 %v839_v53 }
  0x54   :  { %519 = vmatprep.mubr.bf16.mxu0 %v843_v54 }
  0x56   :  { %609 = vmatmul.mubr.bf16.gmra.mxu1 %v842_v55 }
  0x57   :  { %710 = vmatprep.mubr.msk.bf16.mxu1 %vm402_vm0, %v846_v56 }
  0x5b   :  { %520 = vmatmul.mubr.bf16.gmra.mxu0 %v845_v57 }
  0x5e   :  { %617 = vmatmul.mubr.bf16.gmra.mxu1 %v848_v58 }
  0xe3   :  { %v727_v59 = vpop.f32.mrf.mxu0 }
  0xe5   :  { %v728_v60 = vpop.f32.mrf.mxu0 }
  0xe6   :  { %v729_v62 = vadd.f32 %v728_v60, %v727_v59  ;;  %v562_v63 = vpop.f32.mrf.mxu1 }
  0xe7   :  { %v730_v0 = vpop.f32.mrf.mxu0 }
  0xe8   :  { %v466_v1 = vadd.f32 %v729_v62, %v1061_v61  ;;  %v564_v2 = vpop.f32.mrf.mxu1 }
  0xe9   :  { %v731_v3 = vpop.f32.mrf.mxu0 }
  0xea   :  { %v563_v4 = vadd.f32 %v562_v63, %v466_v1  ;;  %v732_v5 = vadd.f32 %v731_v3, %v730_v0  ;;  %v565_v6 = vpop.f32.mrf.mxu1 }
  0xeb   :  { %v733_v7 = vpop.f32.mrf.mxu0 }
  0xec   :  { %625 = vst [vmem:[%s1130_s3] sm:$0xff] %v563_v4  ;;  %v469_v8 = vadd.f32 %v732_v5, %v1061_v61  ;;  %v567_v9 = vpop.f32.mrf.mxu1 }
  0xed   :  { %v734_v10 = vpop.f32.mrf.mxu0 }
  0xee   :  { %v566_v11 = vadd.f32 %v565_v6, %v469_v8  ;;  %v735_v12 = vadd.f32 %v734_v10, %v733_v7  ;;  %v570_v13 = vpop.f32.mrf.mxu1 }
  0xef   :  { %v736_v14 = vpop.f32.mrf.mxu0 }
  0xf0   :  { %626 = vst [vmem:[%s1130_s3 + $0x8] sm:$0xff] %v566_v11  ;;  %v474_v15 = vadd.f32 %v735_v12, %v1061_v61  ;;  %v572_v16 = vpop.f32.mrf.mxu1 }
  0xf1   :  { %v737_v17 = vpop.f32.mrf.mxu0 }
  0xf2   :  { %v571_v18 = vadd.f32 %v570_v13, %v474_v15  ;;  %v738_v19 = vadd.f32 %v737_v17, %v736_v14  ;;  %v573_v20 = vpop.f32.mrf.mxu1 }
  0xf3   :  { %v739_v21 = vpop.f32.mrf.mxu0 }
  0xf4   :  { %627 = vst [vmem:[%s1130_s3 + $0x10] sm:$0xff] %v571_v18  ;;  %v477_v22 = vadd.f32 %v738_v19, %v1061_v61  ;;  %v575_v23 = vpop.f32.mrf.mxu1 }
  0xf5   :  { %v740_v24 = vpop.f32.mrf.mxu0 }
  0xf6   :  { %v574_v25 = vadd.f32 %v573_v20, %v477_v22  ;;  %v741_v26 = vadd.f32 %v740_v24, %v739_v21  ;;  %v578_v27 = vpop.f32.mrf.mxu1 }
  0xf7   :  { %v742_v28 = vpop.f32.mrf.mxu0 }
  0xf8   :  { %628 = vst [vmem:[%s1130_s3 + $0x18] sm:$0xff] %v574_v25  ;;  %v482_v29 = vadd.f32 %v741_v26, %v1061_v61  ;;  %v580_v30 = vpop.f32.mrf.mxu1 }
  0xf9   :  { %v743_v31 = vpop.f32.mrf.mxu0 }
  0xfa   :  { %v579_v32 = vadd.f32 %v578_v27, %v482_v29  ;;  %v744_v33 = vadd.f32 %v743_v31, %v742_v28  ;;  %v581_v34 = vpop.f32.mrf.mxu1 }
  0xfb   :  { %v745_v35 = vpop.f32.mrf.mxu0 }
  0xfc   :  { %629 = vst [vmem:[%s1130_s3 + $0x20] sm:$0xff] %v579_v32  ;;  %v485_v36 = vadd.f32 %v744_v33, %v1061_v61  ;;  %v583_v37 = vpop.f32.mrf.mxu1 }
  0xfd   :  { %v746_v38 = vpop.f32.mrf.mxu0 }
  0xfe   :  { %v582_v39 = vadd.f32 %v581_v34, %v485_v36  ;;  %v747_v40 = vadd.f32 %v746_v38, %v745_v35  ;;  %v586_v41 = vpop.f32.mrf.mxu1 }
  0xff   :  { %v748_v42 = vpop.f32.mrf.mxu0 }
 0x100   :  { %630 = vst [vmem:[%s1130_s3 + $0x28] sm:$0xff] %v582_v39  ;;  %v490_v43 = vadd.f32 %v747_v40, %v1061_v61  ;;  %v588_v44 = vpop.f32.mrf.mxu1 }
 0x101   :  { %v749_v45 = vpop.f32.mrf.mxu0 }
 0x102   :  { %v587_v46 = vadd.f32 %v586_v41, %v490_v43  ;;  %v750_v47 = vadd.f32 %v749_v45, %v748_v42  ;;  %v589_v48 = vpop.f32.mrf.mxu1 }
 0x103   :  { %v751_v49 = vpop.f32.mrf.mxu0 }
 0x104   :  { %631 = vst [vmem:[%s1130_s3 + $0x30] sm:$0xff] %v587_v46  ;;  %v493_v50 = vadd.f32 %v750_v47, %v1061_v61  ;;  %v591_v51 = vpop.f32.mrf.mxu1 }
 0x105   :  { %v752_v52 = vpop.f32.mrf.mxu0 }
 0x106   :  { %v590_v53 = vadd.f32 %v589_v48, %v493_v50  ;;  %v753_v54 = vadd.f32 %v752_v52, %v751_v49  ;;  %v594_v55 = vpop.f32.mrf.mxu1 }
 0x107   :  { %v754_v56 = vpop.f32.mrf.mxu0 }
 0x108   :  { %632 = vst [vmem:[%s1130_s3 + $0x38] sm:$0xff] %v590_v53  ;;  %v498_v57 = vadd.f32 %v753_v54, %v1061_v61  ;;  %v596_v58 = vpop.f32.mrf.mxu1 }
 0x109   :  { %v755_v59 = vpop.f32.mrf.mxu0 }
 0x10a   :  { %v595_v60 = vadd.f32 %v594_v55, %v498_v57  ;;  %v756_v62 = vadd.f32 %v755_v59, %v754_v56  ;;  %v597_v63 = vpop.f32.mrf.mxu1 }
 0x10b   :  { %v757_v0 = vpop.f32.mrf.mxu0 }
 0x10c   :  { %633 = vst [vmem:[%s1130_s3 + $0x40] sm:$0xff] %v595_v60  ;;  %v501_v1 = vadd.f32 %v756_v62, %v1061_v61  ;;  %v599_v2 = vpop.f32.mrf.mxu1 }
 0x10d   :  { %v758_v3 = vpop.f32.mrf.mxu0 }
 0x10e   :  { %v598_v4 = vadd.f32 %v597_v63, %v501_v1  ;;  %v759_v5 = vadd.f32 %v758_v3, %v757_v0  ;;  %v602_v6 = vpop.f32.mrf.mxu1 }
 0x10f   :  { %v760_v7 = vpop.f32.mrf.mxu0 }
 0x110   :  { %634 = vst [vmem:[%s1130_s3 + $0x48] sm:$0xff] %v598_v4  ;;  %v506_v8 = vadd.f32 %v759_v5, %v1061_v61  ;;  %v604_v9 = vpop.f32.mrf.mxu1 }
 0x111   :  { %v761_v10 = vpop.f32.mrf.mxu0 }
 0x112   :  { %v603_v11 = vadd.f32 %v602_v6, %v506_v8  ;;  %v762_v12 = vadd.f32 %v761_v10, %v760_v7  ;;  %v605_v13 = vpop.f32.mrf.mxu1 }
 0x113   :  { %v763_v14 = vpop.f32.mrf.mxu0 }
 0x114   :  { %635 = vst [vmem:[%s1130_s3 + $0x50] sm:$0xff] %v603_v11  ;;  %v509_v15 = vadd.f32 %v762_v12, %v1061_v61  ;;  %v607_v16 = vpop.f32.mrf.mxu1 }
 0x115   :  { %v764_v17 = vpop.f32.mrf.mxu0 }
 0x116   :  { %v606_v18 = vadd.f32 %v605_v13, %v509_v15  ;;  %v765_v19 = vadd.f32 %v764_v17, %v763_v14  ;;  %v610_v20 = vpop.f32.mrf.mxu1 }
 0x117   :  { %v766_v21 = vpop.f32.mrf.mxu0 }
 0x118   :  { %636 = vst [vmem:[%s1130_s3 + $0x58] sm:$0xff] %v606_v18  ;;  %v514_v22 = vadd.f32 %v765_v19, %v1061_v61  ;;  %v612_v23 = vpop.f32.mrf.mxu1 }
 0x119   :  { %v767_v24 = vpop.f32.mrf.mxu0 }
 0x11a   :  { %v611_v25 = vadd.f32 %v610_v20, %v514_v22  ;;  %v768_v26 = vadd.f32 %v767_v24, %v766_v21  ;;  %v613_v27 = vpop.f32.mrf.mxu1 }
 0x11b   :  { %v769_v28 = vpop.f32.mrf.mxu0 }
 0x11c   :  { %637 = vst [vmem:[%s1130_s3 + $0x60] sm:$0xff] %v611_v25  ;;  %v517_v29 = vadd.f32 %v768_v26, %v1061_v61  ;;  %v615_v30 = vpop.f32.mrf.mxu1 }
 0x11d   :  { %v770_v31 = vpop.f32.mrf.mxu0 }
 0x11e   :  { %v614_v32 = vadd.f32 %v613_v27, %v517_v29  ;;  %v771_v33 = vadd.f32 %v770_v31, %v769_v28  ;;  %v618_v34 = vpop.f32.mrf.mxu1 }
 0x11f   :  { %v772_v35 = vpop.f32.mrf.mxu0 }
 0x120   :  { %638 = vst [vmem:[%s1130_s3 + $0x68] sm:$0xff] %v614_v32  ;;  %v522_v36 = vadd.f32 %v771_v33, %v1061_v61  ;;  %v620_v37 = vpop.f32.mrf.mxu1 }
 0x121   :  { %v773_v38 = vpop.f32.mrf.mxu0 }
 0x122   :  { %v619_v39 = vadd.f32 %v618_v34, %v522_v36  ;;  %v774_v40 = vadd.f32 %v773_v38, %v772_v35  ;;  %v621_v41 = vpop.f32.mrf.mxu1 }
 0x124   :  { %639 = vst [vmem:[%s1130_s3 + $0x70] sm:$0xff] %v619_v39  ;;  %v525_v42 = vadd.f32 %v774_v40, %v1061_v61  ;;  %v623_v43 = vpop.f32.mrf.mxu1 }
 0x126   :  { %v622_v44 = vadd.f32 %v621_v41, %v525_v42 }
 0x128   :  { %640 = vst [vmem:[%s1130_s3 + $0x78] sm:$0xff] %v622_v44 }

// kernel: run.90
= control target key start
LH: loop header
LB: loop body
LE: loop exit
PB: predicated region body
PF: predicated region fallthrough
CT: control target
= control target key end

     0   :  { %s813_s12 = smov 0   ;;  %s954_s0 = inlined_call_operand.vmem [shape: bf16[512,72], index: 0, kind: input, shape index: {}]   ;;  %s955_s1 = inlined_call_operand.vmem [shape: bf16[72,128], index: 1, kind: input, shape index: {}]   ;;  %s956_s2 = inlined_call_operand.vmem [shape: f32[1,128], index: 2, kind: input, shape index: {}]   ;;  %s957_s3 = inlined_call_operand.vmem [shape: f32[512,128], index: 3, kind: output, shape index: {}]  }
   0x1 LB: > { %s632_s13 = sadd.s32 4294967295, %s791_s12   ;;  %p636_p0 = scmp.ge.s32.totalorder %s791_s12, 1  ;;  %s791_s12 = sphi %s813_s12, %s13_s12  }
   0x2   : > { %p138_p1 = scmp.lt.s32.totalorder %s791_s12, 3 }
   0x4   : > { %p139_p2 = pnand %p636_p0, %p138_p1 }
   0x5   : > { %s637_s18 = sshll.u32 (!%p139_p2), %s632_s13, 5 }
   0x6   : > { %142 = sbr.rel (%p139_p2) target bundleno = 258 (0x102), region = 32  ;;  %p163_p3 = scmp.lt.s32.totalorder (!%p139_p2), %s637_s18, 63 }
   0xb   : > { %v764_v0 = vld [vmem:[%s955_s1 + $0x20] ss:$0 sps:$4 sm:$0xff]   ;;  %vm379_vm0 = vcmask 1043456   ;;  %v765_v1 = vld [vmem:[%s955_s1 + $0x18] sm:$0xff]   ;;  %v766_v3 = vld [vmem:[%s955_s1 + $0x10] sm:$0xff]   ;;  %s959_s18 = smov (!%p163_p3, %s637_s18), 63 }
   0xc   : > { %754 = vmatprep.subr.msk.bf16.mxu0 %vm379_vm0, %v764_v0  ;;  %755 = vmatprep.subr.msk.bf16.mxu1 %vm379_vm0, %v764_v0  ;;  %v381_v2 = vsel %vm379_vm0, %v764_v0, 0  ;;  %v767_v4 = vld [vmem:[%s955_s1 + $0x8] sm:$0xff]   ;;  %s638_s23 = sshll.u32 %s959_s18, 2  ;;  %vm330_vm1 = vcmask 588800   ;;  %v768_v7 = vld [vmem:[%s955_s1] sm:$0xff]   ;;  %s640_s29 = sshll.u32 %s959_s18, 3 }
   0xd   : > { %703 = vmatpush3.bf16.msra.mxu0 %v381_v2  ;;  %749 = vmatpush3.bf16.msra.mxu1 %v381_v2  ;;  %s839_s26 = scalar_lea.vmem %s954_s0, %s638_s23  ;;  %v880_v22 = vld [vmem:[%s956_s2] ss:$0 sm:$0xff]  ;;  %s885_s7 = scalar_lea.vmem %s957_s3, %s640_s29 }
   0xe   : > { %704 = vmatprep.subr.bf16.mxu0 %v765_v1  ;;  %745 = vmatprep.subr.bf16.mxu1 %v765_v1  ;;  %v769_v5 = vld [vmem:[%s839_s26] sm:$0xff]   ;;  %v771_v8 = vld [vmem:[%s839_s26 + $0x8] sm:$0xff]   ;;  %v773_v10 = vld [vmem:[%s839_s26 + $0x10] sm:$0xff]  }
   0xf   : > { %v770_v6 = vld [vmem:[%s839_s26 + $0x40] sm:$0xff]   ;;  %712 = vmatprep.mubr.msk.bf16.mxu0 %vm330_vm1, %v769_v5  ;;  %v772_v9 = vld [vmem:[%s839_s26 + $0x48] sm:$0xff]   ;;  %v774_v11 = vld [vmem:[%s839_s26 + $0x50] sm:$0xff]  }
  0x10   : > { %728 = vmatprep.mubr.msk.bf16.mxu1 %vm330_vm1, %v770_v6  ;;  %v775_v12 = vld [vmem:[%s839_s26 + $0x18] sm:$0xff]   ;;  %v777_v14 = vld [vmem:[%s839_s26 + $0x20] sm:$0xff]   ;;  %v779_v16 = vld [vmem:[%s839_s26 + $0x28] sm:$0xff]  }
  0x11   : > { %705 = vmatpush3.bf16.msra.mxu0 %v765_v1  ;;  %750 = vmatpush3.bf16.msra.mxu1 %v765_v1  ;;  %v776_v13 = vld [vmem:[%s839_s26 + $0x58] sm:$0xff]   ;;  %v778_v15 = vld [vmem:[%s839_s26 + $0x60] sm:$0xff]   ;;  %v780_v17 = vld [vmem:[%s839_s26 + $0x68] sm:$0xff]  }
  0x12   : > { %706 = vmatprep.subr.bf16.mxu0 %v766_v3  ;;  %746 = vmatprep.subr.bf16.mxu1 %v766_v3  ;;  %v781_v18 = vld [vmem:[%s839_s26 + $0x30] sm:$0xff]   ;;  %v783_v20 = vld [vmem:[%s839_s26 + $0x38] sm:$0xff]  }
  0x13   : > { %v782_v19 = vld [vmem:[%s839_s26 + $0x70] sm:$0xff]   ;;  %v784_v21 = vld [vmem:[%s839_s26 + $0x78] sm:$0xff]  }
  0x15   : > { %707 = vmatpush3.bf16.msra.mxu0 %v766_v3  ;;  %751 = vmatpush3.bf16.msra.mxu1 %v766_v3 }
  0x16   : > { %708 = vmatprep.subr.bf16.mxu0 %v767_v4  ;;  %747 = vmatprep.subr.bf16.mxu1 %v767_v4 }
  0x19   : > { %709 = vmatpush3.bf16.msra.mxu0 %v767_v4  ;;  %752 = vmatpush3.bf16.msra.mxu1 %v767_v4 }
  0x1a   : > { %710 = vmatprep.subr.bf16.mxu0 %v768_v7  ;;  %748 = vmatprep.subr.bf16.mxu1 %v768_v7 }
  0x1d   : > { %711 = vmatpush3.bf16.msra.mxu0 %v768_v7  ;;  %753 = vmatpush3.bf16.msra.mxu1 %v768_v7 }
  0x20   : > { %713 = vmatmul.mubr.msk.bf16.vlgmr.msra.gmra.mxu0 %vm330_vm1, %v771_v8  ;;  %729 = vmatmul.mubr.msk.bf16.vlgmr.msra.gmra.mxu1 %vm330_vm1, %v772_v9 }
  0x21   : > { %716 = vmatprep.mubr.msk.bf16.mxu0 %vm330_vm1, %v773_v10  ;;  %732 = vmatprep.mubr.msk.bf16.mxu1 %vm330_vm1, %v774_v11 }
  0x28   : > { %717 = vmatmul.mubr.msk.bf16.gmra.mxu0 %vm330_vm1, %v775_v12  ;;  %733 = vmatmul.mubr.msk.bf16.gmra.mxu1 %vm330_vm1, %v776_v13 }
  0x29   : > { %720 = vmatprep.mubr.msk.bf16.mxu0 %vm330_vm1, %v777_v14  ;;  %736 = vmatprep.mubr.msk.bf16.mxu1 %vm330_vm1, %v778_v15 }
  0x30   : > { %721 = vmatmul.mubr.msk.bf16.gmra.mxu0 %vm330_vm1, %v779_v16  ;;  %737 = vmatmul.mubr.msk.bf16.gmra.mxu1 %vm330_vm1, %v780_v17 }
  0x31   : > { %724 = vmatprep.mubr.msk.bf16.mxu0 %vm330_vm1, %v781_v18  ;;  %740 = vmatprep.mubr.msk.bf16.mxu1 %vm330_vm1, %v782_v19 }
  0x38   : > { %725 = vmatmul.mubr.msk.bf16.gmra.mxu0 %vm330_vm1, %v783_v20  ;;  %741 = vmatmul.mubr.msk.bf16.gmra.mxu1 %vm330_vm1, %v784_v21 }
  0xe0   : > { %v714_v23 = vpop.f32.mrf.mxu0  ;;  %v730_v24 = vpop.f32.mrf.mxu1 }
  0xe1   : > { %v426_v25 = vadd.f32 %v714_v23, %v880_v22  ;;  %v490_v26 = vadd.f32 %v730_v24, %v880_v22 }
  0xe2   : > { %v417_v27 = vpop.f32.mrf.mxu0  ;;  %v481_v28 = vpop.f32.mrf.mxu1 }
  0xe3   : > { %546 = vst [vmem:[%s885_s7 + $0x10] sm:$0xff] %v426_v25  ;;  %562 = vst [vmem:[%s885_s7 + $0x90] sm:$0xff] %v490_v26  ;;  %v418_v29 = vadd.f32 %v880_v22, %v417_v27  ;;  %v482_v30 = vadd.f32 %v880_v22, %v481_v28 }
  0xe4   : > { %v715_v31 = vpop.f32.mrf.mxu0  ;;  %v731_v32 = vpop.f32.mrf.mxu1 }
  0xe5   : > { %544 = vst [vmem:[%s885_s7] sm:$0xff] %v418_v29  ;;  %560 = vst [vmem:[%s885_s7 + $0x80] sm:$0xff] %v482_v30  ;;  %v429_v33 = vadd.f32 %v715_v31, %v880_v22  ;;  %v493_v34 = vadd.f32 %v731_v32, %v880_v22 }
  0xe6   : > { %v420_v35 = vpop.f32.mrf.mxu0  ;;  %v484_v36 = vpop.f32.mrf.mxu1 }
  0xe7   : > { %547 = vst [vmem:[%s885_s7 + $0x18] sm:$0xff] %v429_v33  ;;  %563 = vst [vmem:[%s885_s7 + $0x98] sm:$0xff] %v493_v34  ;;  %v421_v37 = vadd.f32 %v880_v22, %v420_v35  ;;  %v485_v38 = vadd.f32 %v880_v22, %v484_v36 }
  0xe8   : > { %v718_v39 = vpop.f32.mrf.mxu0  ;;  %v734_v40 = vpop.f32.mrf.mxu1 }
  0xe9   : > { %545 = vst [vmem:[%s885_s7 + $0x8] sm:$0xff] %v421_v37  ;;  %561 = vst [vmem:[%s885_s7 + $0x88] sm:$0xff] %v485_v38  ;;  %v442_v41 = vadd.f32 %v718_v39, %v880_v22  ;;  %v506_v42 = vadd.f32 %v734_v40, %v880_v22 }
  0xea   : > { %v433_v43 = vpop.f32.mrf.mxu0  ;;  %v497_v44 = vpop.f32.mrf.mxu1 }
  0xeb   : > { %550 = vst [vmem:[%s885_s7 + $0x30] sm:$0xff] %v442_v41  ;;  %566 = vst [vmem:[%s885_s7 + $0xb0] sm:$0xff] %v506_v42  ;;  %v434_v45 = vadd.f32 %v880_v22, %v433_v43  ;;  %v498_v46 = vadd.f32 %v880_v22, %v497_v44 }
  0xec   : > { %v719_v47 = vpop.f32.mrf.mxu0  ;;  %v735_v48 = vpop.f32.mrf.mxu1 }
  0xed   : > { %548 = vst [vmem:[%s885_s7 + $0x20] sm:$0xff] %v434_v45  ;;  %564 = vst [vmem:[%s885_s7 + $0xa0] sm:$0xff] %v498_v46  ;;  %v445_v49 = vadd.f32 %v719_v47, %v880_v22  ;;  %v509_v50 = vadd.f32 %v735_v48, %v880_v22 }
  0xee   : > { %v436_v51 = vpop.f32.mrf.mxu0  ;;  %v500_v52 = vpop.f32.mrf.mxu1 }
  0xef   : > { %551 = vst [vmem:[%s885_s7 + $0x38] sm:$0xff] %v445_v49  ;;  %567 = vst [vmem:[%s885_s7 + $0xb8] sm:$0xff] %v509_v50  ;;  %v437_v53 = vadd.f32 %v880_v22, %v436_v51  ;;  %v501_v54 = vadd.f32 %v880_v22, %v500_v52 }
  0xf0   : > { %v722_v55 = vpop.f32.mrf.mxu0  ;;  %v738_v56 = vpop.f32.mrf.mxu1 }
  0xf1   : > { %549 = vst [vmem:[%s885_s7 + $0x28] sm:$0xff] %v437_v53  ;;  %565 = vst [vmem:[%s885_s7 + $0xa8] sm:$0xff] %v501_v54  ;;  %v458_v57 = vadd.f32 %v722_v55, %v880_v22  ;;  %v522_v58 = vadd.f32 %v738_v56, %v880_v22 }
  0xf2   : > { %v449_v59 = vpop.f32.mrf.mxu0  ;;  %v513_v60 = vpop.f32.mrf.mxu1 }
  0xf3   : > { %554 = vst [vmem:[%s885_s7 + $0x50] sm:$0xff] %v458_v57  ;;  %570 = vst [vmem:[%s885_s7 + $0xd0] sm:$0xff] %v522_v58  ;;  %v450_v61 = vadd.f32 %v880_v22, %v449_v59  ;;  %v514_v62 = vadd.f32 %v880_v22, %v513_v60 }
  0xf4   : > { %v723_v63 = vpop.f32.mrf.mxu0  ;;  %v739_v0 = vpop.f32.mrf.mxu1 }
  0xf5   : > { %552 = vst [vmem:[%s885_s7 + $0x40] sm:$0xff] %v450_v61  ;;  %568 = vst [vmem:[%s885_s7 + $0xc0] sm:$0xff] %v514_v62  ;;  %v461_v1 = vadd.f32 %v723_v63, %v880_v22  ;;  %v525_v2 = vadd.f32 %v739_v0, %v880_v22 }
  0xf6   : > { %v452_v3 = vpop.f32.mrf.mxu0  ;;  %v516_v4 = vpop.f32.mrf.mxu1 }
  0xf7   : > { %555 = vst [vmem:[%s885_s7 + $0x58] sm:$0xff] %v461_v1  ;;  %571 = vst [vmem:[%s885_s7 + $0xd8] sm:$0xff] %v525_v2  ;;  %v453_v5 = vadd.f32 %v880_v22, %v452_v3  ;;  %v517_v6 = vadd.f32 %v880_v22, %v516_v4 }
  0xf8   : > { %v726_v7 = vpop.f32.mrf.mxu0  ;;  %v742_v8 = vpop.f32.mrf.mxu1 }
  0xf9   : > { %553 = vst [vmem:[%s885_s7 + $0x48] sm:$0xff] %v453_v5  ;;  %569 = vst [vmem:[%s885_s7 + $0xc8] sm:$0xff] %v517_v6  ;;  %v474_v9 = vadd.f32 %v726_v7, %v880_v22  ;;  %v538_v10 = vadd.f32 %v742_v8, %v880_v22 }
  0xfa   : > { %v465_v11 = vpop.f32.mrf.mxu0  ;;  %v529_v12 = vpop.f32.mrf.mxu1 }
  0xfb   : > { %558 = vst [vmem:[%s885_s7 + $0x70] sm:$0xff] %v474_v9  ;;  %574 = vst [vmem:[%s885_s7 + $0xf0] sm:$0xff] %v538_v10  ;;  %v466_v13 = vadd.f32 %v880_v22, %v465_v11  ;;  %v530_v14 = vadd.f32 %v880_v22, %v529_v12 }
  0xfc   : > { %v727_v15 = vpop.f32.mrf.mxu0  ;;  %v743_v16 = vpop.f32.mrf.mxu1 }
  0xfd   : > { %556 = vst [vmem:[%s885_s7 + $0x60] sm:$0xff] %v466_v13  ;;  %572 = vst [vmem:[%s885_s7 + $0xe0] sm:$0xff] %v530_v14  ;;  %v477_v17 = vadd.f32 %v727_v15, %v880_v22  ;;  %v541_v18 = vadd.f32 %v743_v16, %v880_v22 }
  0xfe   : > { %v468_v19 = vpop.f32.mrf.mxu0  ;;  %v532_v20 = vpop.f32.mrf.mxu1 }
  0xff   : > { %559 = vst [vmem:[%s885_s7 + $0x78] sm:$0xff] %v477_v17  ;;  %575 = vst [vmem:[%s885_s7 + $0xf8] sm:$0xff] %v541_v18  ;;  %v469_v21 = vadd.f32 %v880_v22, %v468_v19  ;;  %v533_v23 = vadd.f32 %v880_v22, %v532_v20 }
 0x101   : > { %557 = vst [vmem:[%s885_s7 + $0x68] sm:$0xff] %v469_v21  ;;  %573 = vst [vmem:[%s885_s7 + $0xe8] sm:$0xff] %v533_v23 }
 0x102 PF: > { %s13_s12 = sadd.s32 1, %s791_s12  }
 0x103   : > { %p10_p4 = scmp.ge.s32.totalorder %s13_s12, 4  }
 0x105   :  { %12 = sbr.rel (!%p10_p4) target bundleno = 1 (0x1), region = 62 }

// kernel: run.91
= control target key start
LH: loop header
LB: loop body
LE: loop exit
PB: predicated region body
PF: predicated region fallthrough
CT: control target
= control target key end

     0   :  { %s453_s12 = smov 0   ;;  %s612_s0 = inlined_call_operand.vmem [shape: f32[512,128], index: 0, kind: input, shape index: {}]   ;;  %s613_s1 = inlined_call_operand.vmem [shape: f32[1,128], index: 1, kind: input, shape index: {}]   ;;  %s614_s2 = inlined_call_operand.vmem [shape: f32[1,128], index: 2, kind: input, shape index: {}]   ;;  %s615_s3 = inlined_call_operand.vmem [shape: f32[512,128], index: 3, kind: output, shape index: {}]  }
   0x1 LB: > { %s404_s13 = sadd.s32 4294967295, %s431_s12   ;;  %p408_p0 = scmp.ge.s32.totalorder %s431_s12, 1  ;;  %s431_s12 = sphi %s453_s12, %s13_s12  }
   0x2   : > { %p138_p1 = scmp.lt.s32.totalorder %s431_s12, 3 }
   0x4   : > { %p139_p2 = pnand %p408_p0, %p138_p1 }
   0x5   : > { %s409_s14 = sshll.u32 (!%p139_p2), %s404_s13, 5 }
   0x6   : > { %142 = sbr.rel (%p139_p2) target bundleno = 44 (0x2c), region = 32  ;;  %p163_p3 = scmp.lt.s32.totalorder (!%p139_p2), %s409_s14, 63 }
   0xb   : > { %s617_s14 = smov (!%p163_p3, %s409_s14), 63  ;;  %v464_v0 = vld [vmem:[%s613_s1] ss:$0 sm:$0xff] }
   0xc   : > { %s410_s15 = sshll.u32 %s617_s14, 3  ;;  %v474_v1 = vld [vmem:[%s614_s2] ss:$0 sm:$0xff] }
   0xd   : > { %s469_s20 = scalar_lea.vmem %s612_s0, %s410_s15  ;;  %s497_s25 = scalar_lea.vmem %s615_s3, %s410_s15 }
   0xe   : > { %v174_v2 = vld [vmem:[%s469_s20] sm:$0xff]  ;;  %v175_v3 = vld [vmem:[%s469_s20 + $0x8] sm:$0xff]  ;;  %v176_v4 = vld [vmem:[%s469_s20 + $0x10] sm:$0xff] }
   0xf   : > { %v213_v5 = vmul.f32 %v464_v0, %v174_v2  ;;  %v214_v6 = vmul.f32 %v464_v0, %v175_v3  ;;  %v215_v7 = vmul.f32 %v464_v0, %v176_v4  ;;  %v177_v8 = vld [vmem:[%s469_s20 + $0x18] sm:$0xff]  ;;  %v178_v9 = vld [vmem:[%s469_s20 + $0x20] sm:$0xff]  ;;  %v179_v10 = vld [vmem:[%s469_s20 + $0x28] sm:$0xff] }
  0x10   : > { %v216_v11 = vmul.f32 %v464_v0, %v177_v8  ;;  %v217_v12 = vmul.f32 %v464_v0, %v178_v9  ;;  %v218_v13 = vmul.f32 %v464_v0, %v179_v10  ;;  %v180_v14 = vld [vmem:[%s469_s20 + $0x30] sm:$0xff]  ;;  %v181_v15 = vld [vmem:[%s469_s20 + $0x38] sm:$0xff]  ;;  %v182_v24 = vld [vmem:[%s469_s20 + $0x40] sm:$0xff] }
  0x11   : > { %v252_v16 = vadd.f32 %v474_v1, %v213_v5  ;;  %v253_v17 = vadd.f32 %v474_v1, %v214_v6  ;;  %v254_v18 = vadd.f32 %v474_v1, %v215_v7  ;;  %v219_v19 = vmul.f32 %v464_v0, %v180_v14  ;;  %v183_v25 = vld [vmem:[%s469_s20 + $0x48] sm:$0xff]  ;;  %v184_v26 = vld [vmem:[%s469_s20 + $0x50] sm:$0xff]  ;;  %v185_v31 = vld [vmem:[%s469_s20 + $0x58] sm:$0xff] }
  0x12   : > { %v255_v20 = vadd.f32 %v474_v1, %v216_v11  ;;  %v256_v21 = vadd.f32 %v474_v1, %v217_v12  ;;  %v257_v22 = vadd.f32 %v474_v1, %v218_v13  ;;  %v220_v23 = vmul.f32 %v464_v0, %v181_v15  ;;  %v186_v32 = vld [vmem:[%s469_s20 + $0x60] sm:$0xff]  ;;  %v187_v33 = vld [vmem:[%s469_s20 + $0x68] sm:$0xff]  ;;  %v188_v38 = vld [vmem:[%s469_s20 + $0x70] sm:$0xff] }
  0x13   : > { %v284_v27 = vmax.f32 %v252_v16, 0.0  ;;  %v285_v28 = vmax.f32 %v253_v17, 0.0  ;;  %v286_v29 = vmax.f32 %v254_v18, 0.0  ;;  %v258_v30 = vadd.f32 %v474_v1, %v219_v19  ;;  %v189_v43 = vld [vmem:[%s469_s20 + $0x78] sm:$0xff]  ;;  %v190_v56 = vld [vmem:[%s469_s20 + $0x80] sm:$0xff]  ;;  %v191_v57 = vld [vmem:[%s469_s20 + $0x88] sm:$0xff] }
  0x14   : > { %v287_v34 = vmax.f32 %v255_v20, 0.0  ;;  %v288_v35 = vmax.f32 %v256_v21, 0.0  ;;  %v289_v36 = vmax.f32 %v257_v22, 0.0  ;;  %v259_v37 = vadd.f32 %v474_v1, %v220_v23  ;;  %v192_v58 = vld [vmem:[%s469_s20 + $0x90] sm:$0xff]  ;;  %v193_v63 = vld [vmem:[%s469_s20 + $0x98] sm:$0xff]  ;;  %v194_v2 = vld [vmem:[%s469_s20 + $0xa0] sm:$0xff] }
  0x15   : > { %316 = vst [vmem:[%s497_s25] sm:$0xff] %v284_v27  ;;  %317 = vst [vmem:[%s497_s25 + $0x8] sm:$0xff] %v285_v28  ;;  %v290_v39 = vmax.f32 %v258_v30, 0.0  ;;  %v221_v40 = vmul.f32 %v464_v0, %v182_v24  ;;  %v222_v41 = vmul.f32 %v464_v0, %v183_v25  ;;  %v223_v42 = vmul.f32 %v464_v0, %v184_v26  ;;  %v195_v3 = vld [vmem:[%s469_s20 + $0xa8] sm:$0xff]  ;;  %v196_v8 = vld [vmem:[%s469_s20 + $0xb0] sm:$0xff] }
  0x16   : > { %318 = vst [vmem:[%s497_s25 + $0x10] sm:$0xff] %v286_v29  ;;  %319 = vst [vmem:[%s497_s25 + $0x18] sm:$0xff] %v287_v34  ;;  %v291_v44 = vmax.f32 %v259_v37, 0.0  ;;  %v224_v45 = vmul.f32 %v464_v0, %v185_v31  ;;  %v225_v46 = vmul.f32 %v464_v0, %v186_v32  ;;  %v226_v47 = vmul.f32 %v464_v0, %v187_v33  ;;  %v197_v13 = vld [vmem:[%s469_s20 + $0xb8] sm:$0xff]  ;;  %v198_v26 = vld [vmem:[%s469_s20 + $0xc0] sm:$0xff] }
  0x17   : > { %320 = vst [vmem:[%s497_s25 + $0x20] sm:$0xff] %v288_v35  ;;  %321 = vst [vmem:[%s497_s25 + $0x28] sm:$0xff] %v289_v36  ;;  %v260_v48 = vadd.f32 %v474_v1, %v221_v40  ;;  %v261_v49 = vadd.f32 %v474_v1, %v222_v41  ;;  %v262_v50 = vadd.f32 %v474_v1, %v223_v42  ;;  %v199_v27 = vld [vmem:[%s469_s20 + $0xc8] sm:$0xff]  ;;  %v200_v28 = vld [vmem:[%s469_s20 + $0xd0] sm:$0xff] }
  0x18   : > { %322 = vst [vmem:[%s497_s25 + $0x30] sm:$0xff] %v290_v39  ;;  %v227_v51 = vmul.f32 %v464_v0, %v188_v38  ;;  %323 = vst [vmem:[%s497_s25 + $0x38] sm:$0xff] %v291_v44  ;;  %v263_v52 = vadd.f32 %v474_v1, %v224_v45  ;;  %v264_v53 = vadd.f32 %v474_v1, %v225_v46  ;;  %v201_v33 = vld [vmem:[%s469_s20 + $0xd8] sm:$0xff]  ;;  %v202_v34 = vld [vmem:[%s469_s20 + $0xe0] sm:$0xff] }
  0x19   : > { %v265_v54 = vadd.f32 %v474_v1, %v226_v47  ;;  %v228_v55 = vmul.f32 %v464_v0, %v189_v43  ;;  %v292_v59 = vmax.f32 %v260_v48, 0.0  ;;  %v293_v60 = vmax.f32 %v261_v49, 0.0  ;;  %v203_v35 = vld [vmem:[%s469_s20 + $0xe8] sm:$0xff]  ;;  %v204_v40 = vld [vmem:[%s469_s20 + $0xf0] sm:$0xff]  ;;  %v205_v45 = vld [vmem:[%s469_s20 + $0xf8] sm:$0xff] }
  0x1a   : > { %v294_v61 = vmax.f32 %v262_v50, 0.0  ;;  %v266_v62 = vadd.f32 %v474_v1, %v227_v51  ;;  %v295_v4 = vmax.f32 %v263_v52, 0.0  ;;  %v296_v5 = vmax.f32 %v264_v53, 0.0 }
  0x1b   : > { %v297_v6 = vmax.f32 %v265_v54, 0.0  ;;  %v267_v7 = vadd.f32 %v474_v1, %v228_v55  ;;  %324 = vst [vmem:[%s497_s25 + $0x40] sm:$0xff] %v292_v59  ;;  %325 = vst [vmem:[%s497_s25 + $0x48] sm:$0xff] %v293_v60  ;;  %v229_v10 = vmul.f32 %v464_v0, %v190_v56  ;;  %v230_v11 = vmul.f32 %v464_v0, %v191_v57 }
  0x1c   : > { %326 = vst [vmem:[%s497_s25 + $0x50] sm:$0xff] %v294_v61  ;;  %v298_v9 = vmax.f32 %v266_v62, 0.0  ;;  %v231_v12 = vmul.f32 %v464_v0, %v192_v58  ;;  %327 = vst [vmem:[%s497_s25 + $0x58] sm:$0xff] %v295_v4  ;;  %v232_v15 = vmul.f32 %v464_v0, %v193_v63  ;;  %v233_v16 = vmul.f32 %v464_v0, %v194_v2 }
  0x1d   : > { %328 = vst [vmem:[%s497_s25 + $0x60] sm:$0xff] %v296_v5  ;;  %329 = vst [vmem:[%s497_s25 + $0x68] sm:$0xff] %v297_v6  ;;  %v299_v14 = vmax.f32 %v267_v7, 0.0  ;;  %v234_v17 = vmul.f32 %v464_v0, %v195_v3  ;;  %v268_v18 = vadd.f32 %v474_v1, %v229_v10  ;;  %v269_v19 = vadd.f32 %v474_v1, %v230_v11 }
  0x1e   : > { %330 = vst [vmem:[%s497_s25 + $0x70] sm:$0xff] %v298_v9  ;;  %v270_v20 = vadd.f32 %v474_v1, %v231_v12  ;;  %v235_v21 = vmul.f32 %v464_v0, %v196_v8  ;;  %v271_v22 = vadd.f32 %v474_v1, %v232_v15  ;;  %v272_v23 = vadd.f32 %v474_v1, %v233_v16 }
  0x1f   : > { %331 = vst [vmem:[%s497_s25 + $0x78] sm:$0xff] %v299_v14  ;;  %v273_v24 = vadd.f32 %v474_v1, %v234_v17  ;;  %v236_v25 = vmul.f32 %v464_v0, %v197_v13  ;;  %v300_v29 = vmax.f32 %v268_v18, 0.0  ;;  %v301_v30 = vmax.f32 %v269_v19, 0.0 }
  0x20   : > { %v302_v31 = vmax.f32 %v270_v20, 0.0  ;;  %v274_v32 = vadd.f32 %v474_v1, %v235_v21  ;;  %v303_v36 = vmax.f32 %v271_v22, 0.0  ;;  %v304_v37 = vmax.f32 %v272_v23, 0.0 }
  0x21   : > { %v305_v38 = vmax.f32 %v273_v24, 0.0  ;;  %v275_v39 = vadd.f32 %v474_v1, %v236_v25  ;;  %332 = vst [vmem:[%s497_s25 + $0x80] sm:$0xff] %v300_v29  ;;  %333 = vst [vmem:[%s497_s25 + $0x88] sm:$0xff] %v301_v30  ;;  %v237_v42 = vmul.f32 %v464_v0, %v198_v26  ;;  %v238_v43 = vmul.f32 %v464_v0, %v199_v27 }
  0x22   : > { %334 = vst [vmem:[%s497_s25 + $0x90] sm:$0xff] %v302_v31  ;;  %v306_v41 = vmax.f32 %v274_v32, 0.0  ;;  %v239_v44 = vmul.f32 %v464_v0, %v200_v28  ;;  %335 = vst [vmem:[%s497_s25 + $0x98] sm:$0xff] %v303_v36  ;;  %v240_v47 = vmul.f32 %v464_v0, %v201_v33  ;;  %v241_v48 = vmul.f32 %v464_v0, %v202_v34 }
  0x23   : > { %336 = vst [vmem:[%s497_s25 + $0xa0] sm:$0xff] %v304_v37  ;;  %337 = vst [vmem:[%s497_s25 + $0xa8] sm:$0xff] %v305_v38  ;;  %v307_v46 = vmax.f32 %v275_v39, 0.0  ;;  %v242_v49 = vmul.f32 %v464_v0, %v203_v35  ;;  %v276_v50 = vadd.f32 %v474_v1, %v237_v42  ;;  %v277_v51 = vadd.f32 %v474_v1, %v238_v43 }
  0x24   : > { %338 = vst [vmem:[%s497_s25 + $0xb0] sm:$0xff] %v306_v41  ;;  %v278_v52 = vadd.f32 %v474_v1, %v239_v44  ;;  %v243_v53 = vmul.f32 %v464_v0, %v204_v40  ;;  %v279_v54 = vadd.f32 %v474_v1, %v240_v47  ;;  %v280_v55 = vadd.f32 %v474_v1, %v241_v48 }
  0x25   : > { %339 = vst [vmem:[%s497_s25 + $0xb8] sm:$0xff] %v307_v46  ;;  %v281_v56 = vadd.f32 %v474_v1, %v242_v49  ;;  %v244_v57 = vmul.f32 %v464_v0, %v205_v45  ;;  %v308_v58 = vmax.f32 %v276_v50, 0.0  ;;  %v309_v59 = vmax.f32 %v277_v51, 0.0 }
  0x26   : > { %v310_v60 = vmax.f32 %v278_v52, 0.0  ;;  %v282_v61 = vadd.f32 %v474_v1, %v243_v53  ;;  %v311_v62 = vmax.f32 %v279_v54, 0.0  ;;  %v312_v63 = vmax.f32 %v280_v55, 0.0 }
  0x27   : > { %v313_v2 = vmax.f32 %v281_v56, 0.0  ;;  %v283_v3 = vadd.f32 %v474_v1, %v244_v57  ;;  %340 = vst [vmem:[%s497_s25 + $0xc0] sm:$0xff] %v308_v58  ;;  %341 = vst [vmem:[%s497_s25 + $0xc8] sm:$0xff] %v309_v59 }
  0x28   : > { %342 = vst [vmem:[%s497_s25 + $0xd0] sm:$0xff] %v310_v60  ;;  %v314_v4 = vmax.f32 %v282_v61, 0.0  ;;  %343 = vst [vmem:[%s497_s25 + $0xd8] sm:$0xff] %v311_v62 }
  0x29   : > { %344 = vst [vmem:[%s497_s25 + $0xe0] sm:$0xff] %v312_v63  ;;  %345 = vst [vmem:[%s497_s25 + $0xe8] sm:$0xff] %v313_v2  ;;  %v315_v0 = vmax.f32 %v283_v3, 0.0 }
  0x2a   : > { %346 = vst [vmem:[%s497_s25 + $0xf0] sm:$0xff] %v314_v4 }
  0x2b   : > { %347 = vst [vmem:[%s497_s25 + $0xf8] sm:$0xff] %v315_v0 }
  0x2c PF: > { %s13_s12 = sadd.s32 1, %s431_s12  }
  0x2d   : > { %p10_p4 = scmp.ge.s32.totalorder %s13_s12, 4  }
  0x2f   :  { %12 = sbr.rel (!%p10_p4) target bundleno = 1 (0x1), region = 62 }

// kernel: run.92
= control target key start
LH: loop header
LB: loop body
LE: loop exit
PB: predicated region body
PF: predicated region fallthrough
CT: control target
= control target key end

     0   :  { %s768_s12 = smov 0   ;;  %s900_s0 = inlined_call_operand.vmem [shape: bf16[512,18], index: 0, kind: input, shape index: {}]   ;;  %s901_s1 = inlined_call_operand.vmem [shape: bf16[18,128], index: 1, kind: input, shape index: {}]   ;;  %s902_s2 = inlined_call_operand.vmem [shape: f32[1,128], index: 2, kind: input, shape index: {}]   ;;  %s903_s3 = inlined_call_operand.vmem [shape: f32[512,128], index: 3, kind: output, shape index: {}]  }
   0x1 LB: > { %s608_s13 = sadd.s32 4294967295, %s746_s12   ;;  %p612_p0 = scmp.ge.s32.totalorder %s746_s12, 1  ;;  %s746_s12 = sphi %s768_s12, %s13_s12  }
   0x2   : > { %p138_p1 = scmp.lt.s32.totalorder %s746_s12, 3 }
   0x4   : > { %p139_p2 = pnand %p612_p0, %p138_p1 }
   0x5   : > { %s613_s18 = sshll.u32 (!%p139_p2), %s608_s13, 5 }
   0x6   : > { %142 = sbr.rel (%p139_p2) target bundleno = 246 (0xf6), region = 32  ;;  %p163_p3 = scmp.lt.s32.totalorder (!%p139_p2), %s613_s18, 63 }
   0xb   : > { %v722_v0 = vld [vmem:[%s901_s1 + $0x8] ss:$0 sps:$4 sm:$0x11]   ;;  %vm355_vm0 = vcmask 1040384   ;;  %v723_v1 = vld [vmem:[%s901_s1] sm:$0xff]   ;;  %s905_s18 = smov (!%p163_p3, %s613_s18), 63 }
   0xc   : > { %712 = vmatprep.subr.msk.bf16.mxu0 %vm355_vm0, %v722_v0  ;;  %713 = vmatprep.subr.msk.bf16.mxu1 %vm355_vm0, %v722_v0  ;;  %v357_v2 = vsel %vm355_vm0, %v722_v0, 0  ;;  %s614_s19 = sshll.u32 %s905_s18, 2  ;;  %vm306_vm1 = vcmask 146432   ;;  %s616_s23 = sshll.u32 %s905_s18, 3  ;;  %v826_v19 = vld [vmem:[%s902_s2] ss:$0 sm:$0xff] }
   0xd   : > { %673 = vmatpush3.bf16.msra.mxu0 %v357_v2  ;;  %710 = vmatpush3.bf16.msra.mxu1 %v357_v2  ;;  %s788_s22 = scalar_lea.vmem %s900_s0, %s614_s19  ;;  %s831_s28 = scalar_lea.vmem %s903_s3, %s616_s23 }
   0xe   : > { %674 = vmatprep.subr.bf16.mxu0 %v723_v1  ;;  %709 = vmatprep.subr.bf16.mxu1 %v723_v1  ;;  %v724_v3 = vld [vmem:[%s788_s22] sm:$0xff]   ;;  %v726_v5 = vld [vmem:[%s788_s22 + $0x8] sm:$0xff]   ;;  %v728_v7 = vld [vmem:[%s788_s22 + $0x10] sm:$0xff]  }
   0xf   : > { %v725_v4 = vld [vmem:[%s788_s22 + $0x40] sm:$0xff]   ;;  %676 = vmatprep.mubr.msk.bf16.mxu0 %vm306_vm1, %v724_v3  ;;  %v727_v6 = vld [vmem:[%s788_s22 + $0x48] sm:$0xff]   ;;  %v729_v8 = vld [vmem:[%s788_s22 + $0x50] sm:$0xff]  }
  0x10   : > { %692 = vmatprep.mubr.msk.bf16.mxu1 %vm306_vm1, %v725_v4  ;;  %v730_v9 = vld [vmem:[%s788_s22 + $0x18] sm:$0xff]   ;;  %v732_v11 = vld [vmem:[%s788_s22 + $0x20] sm:$0xff]   ;;  %v734_v13 = vld [vmem:[%s788_s22 + $0x28] sm:$0xff]  }
  0x11   : > { %675 = vmatpush3.bf16.msra.mxu0 %v723_v1  ;;  %711 = vmatpush3.bf16.msra.mxu1 %v723_v1  ;;  %v731_v10 = vld [vmem:[%s788_s22 + $0x58] sm:$0xff]   ;;  %v733_v12 = vld [vmem:[%s788_s22 + $0x60] sm:$0xff]   ;;  %v735_v14 = vld [vmem:[%s788_s22 + $0x68] sm:$0xff]  }
  0x12   : > { %v736_v15 = vld [vmem:[%s788_s22 + $0x30] sm:$0xff]   ;;  %v738_v17 = vld [vmem:[%s788_s22 + $0x38] sm:$0xff]  }
  0x13   : > { %v737_v16 = vld [vmem:[%s788_s22 + $0x70] sm:$0xff]   ;;  %v739_v18 = vld [vmem:[%s788_s22 + $0x78] sm:$0xff]  }
  0x14   : > { %677 = vmatmul.mubr.msk.bf16.vlgmr.msra.gmra.mxu0 %vm306_vm1, %v726_v5  ;;  %693 = vmatmul.mubr.msk.bf16.vlgmr.msra.gmra.mxu1 %vm306_vm1, %v727_v6 }
  0x15   : > { %680 = vmatprep.mubr.msk.bf16.mxu0 %vm306_vm1, %v728_v7  ;;  %696 = vmatprep.mubr.msk.bf16.mxu1 %vm306_vm1, %v729_v8 }
  0x1c   : > { %681 = vmatmul.mubr.msk.bf16.gmra.mxu0 %vm306_vm1, %v730_v9  ;;  %697 = vmatmul.mubr.msk.bf16.gmra.mxu1 %vm306_vm1, %v731_v10 }
  0x1d   : > { %684 = vmatprep.mubr.msk.bf16.mxu0 %vm306_vm1, %v732_v11  ;;  %700 = vmatprep.mubr.msk.bf16.mxu1 %vm306_vm1, %v733_v12 }
  0x24   : > { %685 = vmatmul.mubr.msk.bf16.gmra.mxu0 %vm306_vm1, %v734_v13  ;;  %701 = vmatmul.mubr.msk.bf16.gmra.mxu1 %vm306_vm1, %v735_v14 }
  0x25   : > { %688 = vmatprep.mubr.msk.bf16.mxu0 %vm306_vm1, %v736_v15  ;;  %704 = vmatprep.mubr.msk.bf16.mxu1 %vm306_vm1, %v737_v16 }
  0x2c   : > { %689 = vmatmul.mubr.msk.bf16.gmra.mxu0 %vm306_vm1, %v738_v17  ;;  %705 = vmatmul.mubr.msk.bf16.gmra.mxu1 %vm306_vm1, %v739_v18 }
  0xd4   : > { %v678_v20 = vpop.f32.mrf.mxu0  ;;  %v694_v22 = vpop.f32.mrf.mxu1 }
  0xd5   : > { %v402_v21 = vadd.f32 %v678_v20, %v826_v19  ;;  %v466_v23 = vadd.f32 %v694_v22, %v826_v19 }
  0xd6   : > { %v393_v24 = vpop.f32.mrf.mxu0  ;;  %v457_v26 = vpop.f32.mrf.mxu1 }
  0xd7   : > { %522 = vst [vmem:[%s831_s28 + $0x10] sm:$0xff] %v402_v21  ;;  %v394_v25 = vadd.f32 %v826_v19, %v393_v24  ;;  %538 = vst [vmem:[%s831_s28 + $0x90] sm:$0xff] %v466_v23  ;;  %v458_v27 = vadd.f32 %v826_v19, %v457_v26 }
  0xd8   : > { %v679_v28 = vpop.f32.mrf.mxu0  ;;  %v695_v30 = vpop.f32.mrf.mxu1 }
  0xd9   : > { %520 = vst [vmem:[%s831_s28] sm:$0xff] %v394_v25  ;;  %v405_v29 = vadd.f32 %v679_v28, %v826_v19  ;;  %536 = vst [vmem:[%s831_s28 + $0x80] sm:$0xff] %v458_v27  ;;  %v469_v31 = vadd.f32 %v695_v30, %v826_v19 }
  0xda   : > { %v396_v32 = vpop.f32.mrf.mxu0  ;;  %v460_v34 = vpop.f32.mrf.mxu1 }
  0xdb   : > { %523 = vst [vmem:[%s831_s28 + $0x18] sm:$0xff] %v405_v29  ;;  %v397_v33 = vadd.f32 %v826_v19, %v396_v32  ;;  %539 = vst [vmem:[%s831_s28 + $0x98] sm:$0xff] %v469_v31  ;;  %v461_v35 = vadd.f32 %v826_v19, %v460_v34 }
  0xdc   : > { %v682_v36 = vpop.f32.mrf.mxu0  ;;  %v698_v38 = vpop.f32.mrf.mxu1 }
  0xdd   : > { %521 = vst [vmem:[%s831_s28 + $0x8] sm:$0xff] %v397_v33  ;;  %v418_v37 = vadd.f32 %v682_v36, %v826_v19  ;;  %537 = vst [vmem:[%s831_s28 + $0x88] sm:$0xff] %v461_v35  ;;  %v482_v39 = vadd.f32 %v698_v38, %v826_v19 }
  0xde   : > { %v409_v40 = vpop.f32.mrf.mxu0  ;;  %v473_v42 = vpop.f32.mrf.mxu1 }
  0xdf   : > { %526 = vst [vmem:[%s831_s28 + $0x30] sm:$0xff] %v418_v37  ;;  %v410_v41 = vadd.f32 %v826_v19, %v409_v40  ;;  %542 = vst [vmem:[%s831_s28 + $0xb0] sm:$0xff] %v482_v39  ;;  %v474_v43 = vadd.f32 %v826_v19, %v473_v42 }
  0xe0   : > { %v683_v44 = vpop.f32.mrf.mxu0  ;;  %v699_v46 = vpop.f32.mrf.mxu1 }
  0xe1   : > { %524 = vst [vmem:[%s831_s28 + $0x20] sm:$0xff] %v410_v41  ;;  %v421_v45 = vadd.f32 %v683_v44, %v826_v19  ;;  %540 = vst [vmem:[%s831_s28 + $0xa0] sm:$0xff] %v474_v43  ;;  %v485_v47 = vadd.f32 %v699_v46, %v826_v19 }
  0xe2   : > { %v412_v48 = vpop.f32.mrf.mxu0  ;;  %v476_v50 = vpop.f32.mrf.mxu1 }
  0xe3   : > { %527 = vst [vmem:[%s831_s28 + $0x38] sm:$0xff] %v421_v45  ;;  %v413_v49 = vadd.f32 %v826_v19, %v412_v48  ;;  %543 = vst [vmem:[%s831_s28 + $0xb8] sm:$0xff] %v485_v47  ;;  %v477_v51 = vadd.f32 %v826_v19, %v476_v50 }
  0xe4   : > { %v686_v52 = vpop.f32.mrf.mxu0  ;;  %v702_v54 = vpop.f32.mrf.mxu1 }
  0xe5   : > { %525 = vst [vmem:[%s831_s28 + $0x28] sm:$0xff] %v413_v49  ;;  %v434_v53 = vadd.f32 %v686_v52, %v826_v19  ;;  %541 = vst [vmem:[%s831_s28 + $0xa8] sm:$0xff] %v477_v51  ;;  %v498_v55 = vadd.f32 %v702_v54, %v826_v19 }
  0xe6   : > { %v425_v56 = vpop.f32.mrf.mxu0  ;;  %v489_v58 = vpop.f32.mrf.mxu1 }
  0xe7   : > { %530 = vst [vmem:[%s831_s28 + $0x50] sm:$0xff] %v434_v53  ;;  %v426_v57 = vadd.f32 %v826_v19, %v425_v56  ;;  %546 = vst [vmem:[%s831_s28 + $0xd0] sm:$0xff] %v498_v55  ;;  %v490_v59 = vadd.f32 %v826_v19, %v489_v58 }
  0xe8   : > { %v687_v60 = vpop.f32.mrf.mxu0  ;;  %v703_v62 = vpop.f32.mrf.mxu1 }
  0xe9   : > { %528 = vst [vmem:[%s831_s28 + $0x40] sm:$0xff] %v426_v57  ;;  %v437_v61 = vadd.f32 %v687_v60, %v826_v19  ;;  %544 = vst [vmem:[%s831_s28 + $0xc0] sm:$0xff] %v490_v59  ;;  %v501_v63 = vadd.f32 %v703_v62, %v826_v19 }
  0xea   : > { %v428_v0 = vpop.f32.mrf.mxu0  ;;  %v492_v2 = vpop.f32.mrf.mxu1 }
  0xeb   : > { %531 = vst [vmem:[%s831_s28 + $0x58] sm:$0xff] %v437_v61  ;;  %v429_v1 = vadd.f32 %v826_v19, %v428_v0  ;;  %547 = vst [vmem:[%s831_s28 + $0xd8] sm:$0xff] %v501_v63  ;;  %v493_v3 = vadd.f32 %v826_v19, %v492_v2 }
  0xec   : > { %v690_v4 = vpop.f32.mrf.mxu0  ;;  %v706_v6 = vpop.f32.mrf.mxu1 }
  0xed   : > { %529 = vst [vmem:[%s831_s28 + $0x48] sm:$0xff] %v429_v1  ;;  %v450_v5 = vadd.f32 %v690_v4, %v826_v19  ;;  %545 = vst [vmem:[%s831_s28 + $0xc8] sm:$0xff] %v493_v3  ;;  %v514_v7 = vadd.f32 %v706_v6, %v826_v19 }
  0xee   : > { %v441_v8 = vpop.f32.mrf.mxu0  ;;  %v505_v10 = vpop.f32.mrf.mxu1 }
  0xef   : > { %534 = vst [vmem:[%s831_s28 + $0x70] sm:$0xff] %v450_v5  ;;  %v442_v9 = vadd.f32 %v826_v19, %v441_v8  ;;  %550 = vst [vmem:[%s831_s28 + $0xf0] sm:$0xff] %v514_v7  ;;  %v506_v11 = vadd.f32 %v826_v19, %v505_v10 }
  0xf0   : > { %v691_v12 = vpop.f32.mrf.mxu0  ;;  %v707_v14 = vpop.f32.mrf.mxu1 }
  0xf1   : > { %532 = vst [vmem:[%s831_s28 + $0x60] sm:$0xff] %v442_v9  ;;  %v453_v13 = vadd.f32 %v691_v12, %v826_v19  ;;  %548 = vst [vmem:[%s831_s28 + $0xe0] sm:$0xff] %v506_v11  ;;  %v517_v15 = vadd.f32 %v707_v14, %v826_v19 }
  0xf2   : > { %v444_v16 = vpop.f32.mrf.mxu0  ;;  %v508_v18 = vpop.f32.mrf.mxu1 }
  0xf3   : > { %535 = vst [vmem:[%s831_s28 + $0x78] sm:$0xff] %v453_v13  ;;  %v445_v17 = vadd.f32 %v826_v19, %v444_v16  ;;  %551 = vst [vmem:[%s831_s28 + $0xf8] sm:$0xff] %v517_v15  ;;  %v509_v20 = vadd.f32 %v826_v19, %v508_v18 }
  0xf5   : > { %533 = vst [vmem:[%s831_s28 + $0x68] sm:$0xff] %v445_v17  ;;  %549 = vst [vmem:[%s831_s28 + $0xe8] sm:$0xff] %v509_v20 }
  0xf6 PF: > { %s13_s12 = sadd.s32 1, %s746_s12  }
  0xf7   : > { %p10_p4 = scmp.ge.s32.totalorder %s13_s12, 4  }
  0xf9   :  { %12 = sbr.rel (!%p10_p4) target bundleno = 1 (0x1), region = 62 }

// kernel: run.70
= control target key start
LH: loop header
LB: loop body
LE: loop exit
PB: predicated region body
PF: predicated region fallthrough
CT: control target
= control target key end

     0   :  { %s668_s20 = smov 0   ;;  %s1013_s0 = inlined_call_operand.vmem [shape: f32[512,128], index: 0, kind: input, shape index: {}]   ;;  %s1014_s1 = inlined_call_operand.vmem [shape: f32[1,128], index: 1, kind: input, shape index: {}]   ;;  %s1015_s2 = inlined_call_operand.vmem [shape: f32[1,128], index: 2, kind: input, shape index: {}]   ;;  %s1016_s3 = inlined_call_operand.<no memory space> [shape: f32[1,1], index: 3, kind: input, shape index: {}]   ;;  %s1017_s4 = inlined_call_operand.vmem [shape: f32[512,128], index: 4, kind: input, shape index: {}]   ;;  %s1018_s5 = inlined_call_operand.vmem [shape: f32[512,128], index: 5, kind: output, shape index: {}]  }
   0x1   :  { %v10_v0 = vstv %s1016_s3 }
   0x2   :  { %11 = vst [vmem:[#allocation2] sm:$0x1] %v10_v0 }
   0x3 LB: > { %s600_s21 = sadd.s32 4294967295, %s632_s20   ;;  %p604_p0 = scmp.ge.s32.totalorder %s632_s20, 1  ;;  %s632_s20 = sphi %s668_s20, %s17_s20  }
   0x4   : > { %p201_p1 = scmp.lt.s32.totalorder %s632_s20, 3 }
   0x6   : > { %p202_p2 = pnand %p604_p0, %p201_p1 }
   0x8   : > { %205 = sbr.rel (%p202_p2) target bundleno = 166 (0xa6), region = 40 }
   0xd   : > { %v613_v1 = vld [vmem:[#allocation2] ss:$0 sm:$0xff]  ;;  %v634_v2 = vmov 0   ;;  %s605_s3 = sshll.u32 %s600_s21, 5 }
   0xe   : > { %625 = vset.pattern.permute.xlu0 %v634_v2  ;;  %p235_p3 = scmp.lt.s32.totalorder %s605_s3, 63  ;;  %v688_v4 = vld [vmem:[%s1014_s1] ss:$0 sm:$0xff] }
   0xf   : > { %433 = vperm.xlu0 %625, %v613_v1   ;;  %v697_v9 = vld [vmem:[%s1015_s2] ss:$0 sm:$0xff] }
  0x10   : > { %s1022_s3 = smov (!%p235_p3, %s605_s3), 63 }
  0x11   : > { %s676_s22 = sshll.u32 %s1022_s3, 3 }
  0x12   : > { %s682_s25 = scalar_lea.vmem %s1013_s0, %s676_s22  ;;  %s890_s7 = scalar_lea.vmem %s1017_s4, %s676_s22 }
  0x13   : > { %v252_v3 = vld [vmem:[%s682_s25] sm:$0xff]  ;;  %v253_v5 = vld [vmem:[%s682_s25 + $0x8] sm:$0xff]  ;;  %v254_v6 = vld [vmem:[%s682_s25 + $0x10] sm:$0xff]  ;;  %s934_s10 = scalar_lea.vmem %s1018_s5, %s676_s22 }
  0x14   : > { %v255_v7 = vld [vmem:[%s682_s25 + $0x18] sm:$0xff]  ;;  %v256_v8 = vld [vmem:[%s682_s25 + $0x20] sm:$0xff]  ;;  %v257_v10 = vld [vmem:[%s682_s25 + $0x28] sm:$0xff]  ;;  %v291_v13 = vmul.f32 %v688_v4, %v252_v3  ;;  %v292_v17 = vmul.f32 %v688_v4, %v253_v5  ;;  %v293_v21 = vmul.f32 %v688_v4, %v254_v6 }
  0x15   : > { %v258_v11 = vld [vmem:[%s682_s25 + $0x30] sm:$0xff]  ;;  %v259_v12 = vld [vmem:[%s682_s25 + $0x38] sm:$0xff]  ;;  %v260_v14 = vld [vmem:[%s682_s25 + $0x40] sm:$0xff]  ;;  %v294_v22 = vmul.f32 %v688_v4, %v255_v7  ;;  %v295_v26 = vmul.f32 %v688_v4, %v256_v8  ;;  %v296_v27 = vmul.f32 %v688_v4, %v257_v10 }
  0x16   : > { %v261_v15 = vld [vmem:[%s682_s25 + $0x48] sm:$0xff]  ;;  %v262_v16 = vld [vmem:[%s682_s25 + $0x50] sm:$0xff]  ;;  %v263_v18 = vld [vmem:[%s682_s25 + $0x58] sm:$0xff]  ;;  %v297_v28 = vmul.f32 %v688_v4, %v258_v11  ;;  %v298_v29 = vmul.f32 %v688_v4, %v259_v12  ;;  %v299_v33 = vmul.f32 %v688_v4, %v260_v14  ;;  %v726_v36 = vadd.f32 %v697_v9, %v291_v13 }
  0x17   : > { %v264_v19 = vld [vmem:[%s682_s25 + $0x60] sm:$0xff]  ;;  %v265_v20 = vld [vmem:[%s682_s25 + $0x68] sm:$0xff]  ;;  %v266_v23 = vld [vmem:[%s682_s25 + $0x70] sm:$0xff]  ;;  %v300_v34 = vmul.f32 %v688_v4, %v261_v15  ;;  %v301_v35 = vmul.f32 %v688_v4, %v262_v16  ;;  %v302_v40 = vmul.f32 %v688_v4, %v263_v18  ;;  %v735_v43 = vadd.f32 %v697_v9, %v292_v17 }
  0x18   : > { %v267_v24 = vld [vmem:[%s682_s25 + $0x78] sm:$0xff]  ;;  %v268_v25 = vld [vmem:[%s682_s25 + $0x80] sm:$0xff]  ;;  %v269_v30 = vld [vmem:[%s682_s25 + $0x88] sm:$0xff]  ;;  %v303_v41 = vmul.f32 %v688_v4, %v264_v19  ;;  %v304_v42 = vmul.f32 %v688_v4, %v265_v20  ;;  %v305_v47 = vmul.f32 %v688_v4, %v266_v23  ;;  %v744_v50 = vadd.f32 %v697_v9, %v293_v21 }
  0x19   : > { %v270_v31 = vld [vmem:[%s682_s25 + $0x90] sm:$0xff]  ;;  %v271_v32 = vld [vmem:[%s682_s25 + $0x98] sm:$0xff]  ;;  %v272_v37 = vld [vmem:[%s682_s25 + $0xa0] sm:$0xff]  ;;  %v306_v48 = vmul.f32 %v688_v4, %v267_v24  ;;  %v307_v49 = vmul.f32 %v688_v4, %v268_v25  ;;  %v308_v54 = vmul.f32 %v688_v4, %v269_v30  ;;  %v753_v57 = vadd.f32 %v697_v9, %v294_v22 }
  0x1a   : > { %v273_v38 = vld [vmem:[%s682_s25 + $0xa8] sm:$0xff]  ;;  %v274_v39 = vld [vmem:[%s682_s25 + $0xb0] sm:$0xff]  ;;  %v275_v44 = vld [vmem:[%s682_s25 + $0xb8] sm:$0xff]  ;;  %v309_v55 = vmul.f32 %v688_v4, %v270_v31  ;;  %v310_v56 = vmul.f32 %v688_v4, %v271_v32  ;;  %v311_v61 = vmul.f32 %v688_v4, %v272_v37  ;;  %v762_v0 = vadd.f32 %v697_v9, %v295_v26 }
  0x1b   : > { %v276_v45 = vld [vmem:[%s682_s25 + $0xc0] sm:$0xff]  ;;  %v277_v46 = vld [vmem:[%s682_s25 + $0xc8] sm:$0xff]  ;;  %v278_v51 = vld [vmem:[%s682_s25 + $0xd0] sm:$0xff]  ;;  %v312_v62 = vmul.f32 %v688_v4, %v273_v38  ;;  %v313_v63 = vmul.f32 %v688_v4, %v274_v39  ;;  %v314_v1 = vmul.f32 %v688_v4, %v275_v44  ;;  %v768_v5 = vadd.f32 %v697_v9, %v296_v27 }
  0x1c   : > { %v279_v52 = vld [vmem:[%s682_s25 + $0xd8] sm:$0xff]  ;;  %v280_v53 = vld [vmem:[%s682_s25 + $0xe0] sm:$0xff]  ;;  %v281_v58 = vld [vmem:[%s682_s25 + $0xe8] sm:$0xff]  ;;  %v315_v2 = vmul.f32 %v688_v4, %v276_v45  ;;  %v316_v3 = vmul.f32 %v688_v4, %v277_v46  ;;  %v317_v6 = vmul.f32 %v688_v4, %v278_v51  ;;  %v774_v10 = vadd.f32 %v697_v9, %v297_v28 }
  0x1d   : > { %v282_v59 = vld [vmem:[%s682_s25 + $0xf0] sm:$0xff]  ;;  %v283_v60 = vld [vmem:[%s682_s25 + $0xf8] sm:$0xff]  ;;  %v318_v7 = vmul.f32 %v688_v4, %v279_v52  ;;  %v319_v8 = vmul.f32 %v688_v4, %v280_v53  ;;  %v320_v11 = vmul.f32 %v688_v4, %v281_v58  ;;  %v780_v14 = vadd.f32 %v697_v9, %v298_v29 }
  0x1e   : > { %v321_v12 = vmul.f32 %v688_v4, %v282_v59  ;;  %v322_v13 = vmul.f32 %v688_v4, %v283_v60  ;;  %v783_v15 = vadd.f32 %v697_v9, %v299_v33  ;;  %v786_v16 = vadd.f32 %v697_v9, %v300_v34 }
  0x1f   : > { %v789_v17 = vadd.f32 %v697_v9, %v301_v35  ;;  %v792_v18 = vadd.f32 %v697_v9, %v302_v40  ;;  %v795_v19 = vadd.f32 %v697_v9, %v303_v41  ;;  %v798_v4 = vadd.f32 %v697_v9, %v304_v42 }
  0x20   : > { %v801_v20 = vadd.f32 %v697_v9, %v305_v47  ;;  %v804_v21 = vadd.f32 %v697_v9, %v306_v48  ;;  %v807_v22 = vadd.f32 %v697_v9, %v307_v49  ;;  %v810_v23 = vadd.f32 %v697_v9, %v308_v54 }
  0x21   : > { %v813_v24 = vadd.f32 %v697_v9, %v309_v55  ;;  %v816_v25 = vadd.f32 %v697_v9, %v310_v56  ;;  %v819_v26 = vadd.f32 %v697_v9, %v311_v61  ;;  %v822_v27 = vadd.f32 %v697_v9, %v312_v62 }
  0x22   : > { %v825_v28 = vadd.f32 %v697_v9, %v313_v63  ;;  %v828_v29 = vadd.f32 %v697_v9, %v314_v1  ;;  %v831_v30 = vadd.f32 %v697_v9, %v315_v2  ;;  %v834_v31 = vadd.f32 %v697_v9, %v316_v3 }
  0x23   : > { %v837_v32 = vadd.f32 %v697_v9, %v317_v6  ;;  %v840_v33 = vadd.f32 %v697_v9, %v318_v7  ;;  %v843_v34 = vadd.f32 %v697_v9, %v319_v8  ;;  %v846_v35 = vadd.f32 %v697_v9, %v320_v11 }
  0x24   : > { %v849_v37 = vadd.f32 %v697_v9, %v321_v12  ;;  %v852_v38 = vadd.f32 %v697_v9, %v322_v13  ;;  %v362_v39 = vmax.f32 %v726_v36, 0.0  ;;  %v363_v40 = vmax.f32 %v735_v43, 0.0 }
  0x25   : > { %v364_v41 = vmax.f32 %v744_v50, 0.0  ;;  %v365_v42 = vmax.f32 %v753_v57, 0.0  ;;  %v366_v44 = vmax.f32 %v762_v0, 0.0  ;;  %v367_v45 = vmax.f32 %v768_v5, 0.0 }
  0x26   : > { %v368_v46 = vmax.f32 %v774_v10, 0.0  ;;  %v369_v47 = vmax.f32 %v780_v14, 0.0  ;;  %v370_v48 = vmax.f32 %v783_v15, 0.0  ;;  %v371_v9 = vmax.f32 %v786_v16, 0.0 }
  0x27   : > { %v372_v36 = vmax.f32 %v789_v17, 0.0  ;;  %v373_v43 = vmax.f32 %v792_v18, 0.0  ;;  %v374_v49 = vmax.f32 %v795_v19, 0.0  ;;  %v375_v50 = vmax.f32 %v798_v4, 0.0  ;;  %v394_v4 = vld [vmem:[%s890_s7] sm:$0xff] }
  0x28   : > { %v376_v51 = vmax.f32 %v801_v20, 0.0  ;;  %v377_v52 = vmax.f32 %v804_v21, 0.0  ;;  %v378_v53 = vmax.f32 %v807_v22, 0.0  ;;  %v379_v54 = vmax.f32 %v810_v23, 0.0  ;;  %v395_v20 = vld [vmem:[%s890_s7 + $0x8] sm:$0xff]  ;;  %v396_v21 = vld [vmem:[%s890_s7 + $0x10] sm:$0xff] }
  0x29   : > { %v380_v55 = vmax.f32 %v813_v24, 0.0  ;;  %v381_v56 = vmax.f32 %v816_v25, 0.0  ;;  %v382_v57 = vmax.f32 %v819_v26, 0.0  ;;  %v383_v58 = vmax.f32 %v822_v27, 0.0  ;;  %v397_v22 = vld [vmem:[%s890_s7 + $0x18] sm:$0xff]  ;;  %v398_v27 = vld [vmem:[%s890_s7 + $0x20] sm:$0xff] }
  0x2a   : > { %v384_v59 = vmax.f32 %v825_v28, 0.0  ;;  %v385_v60 = vmax.f32 %v828_v29, 0.0  ;;  %v386_v61 = vmax.f32 %v831_v30, 0.0  ;;  %v387_v62 = vmax.f32 %v834_v31, 0.0  ;;  %v399_v28 = vld [vmem:[%s890_s7 + $0x28] sm:$0xff]  ;;  %v400_v29 = vld [vmem:[%s890_s7 + $0x30] sm:$0xff] }
  0x2b   : > { %v388_v63 = vmax.f32 %v837_v32, 0.0  ;;  %v389_v0 = vmax.f32 %v840_v33, 0.0  ;;  %v390_v2 = vmax.f32 %v843_v34, 0.0  ;;  %v391_v3 = vmax.f32 %v846_v35, 0.0  ;;  %v401_v30 = vld [vmem:[%s890_s7 + $0x38] sm:$0xff]  ;;  %v402_v35 = vld [vmem:[%s890_s7 + $0x40] sm:$0xff] }
  0x2c   : > { %v392_v5 = vmax.f32 %v849_v37, 0.0  ;;  %v393_v6 = vmax.f32 %v852_v38, 0.0  ;;  %v403_v37 = vld [vmem:[%s890_s7 + $0x48] sm:$0xff]  ;;  %v404_v38 = vld [vmem:[%s890_s7 + $0x50] sm:$0xff] }
  0x8a   : > { %v434_v1 = vpop.permute.xlu0 %433 }
  0x8b   : > { %v436_v7 = vmul.f32 %v434_v1, %v362_v39  ;;  %v437_v8 = vmul.f32 %v434_v1, %v363_v40  ;;  %v438_v10 = vmul.f32 %v434_v1, %v364_v41  ;;  %v439_v11 = vmul.f32 %v434_v1, %v365_v42 }
  0x8c   : > { %v440_v12 = vmul.f32 %v434_v1, %v366_v44  ;;  %v441_v13 = vmul.f32 %v434_v1, %v367_v45  ;;  %v442_v14 = vmul.f32 %v434_v1, %v368_v46  ;;  %v443_v15 = vmul.f32 %v434_v1, %v369_v47  ;;  %v405_v44 = vld [vmem:[%s890_s7 + $0x58] sm:$0xff]  ;;  %v406_v45 = vld [vmem:[%s890_s7 + $0x60] sm:$0xff]  ;;  %v407_v46 = vld [vmem:[%s890_s7 + $0x68] sm:$0xff] }
  0x8d   : > { %v444_v16 = vmul.f32 %v434_v1, %v370_v48  ;;  %v445_v17 = vmul.f32 %v434_v1, %v371_v9  ;;  %v446_v18 = vmul.f32 %v434_v1, %v372_v36  ;;  %v447_v19 = vmul.f32 %v434_v1, %v373_v43  ;;  %v408_v43 = vld [vmem:[%s890_s7 + $0x70] sm:$0xff] }
  0x8e   : > { %v448_v23 = vmul.f32 %v434_v1, %v374_v49  ;;  %v449_v24 = vmul.f32 %v434_v1, %v375_v50  ;;  %v450_v25 = vmul.f32 %v434_v1, %v376_v51  ;;  %v451_v26 = vmul.f32 %v434_v1, %v377_v52  ;;  %v409_v49 = vld [vmem:[%s890_s7 + $0x78] sm:$0xff]  ;;  %v410_v50 = vld [vmem:[%s890_s7 + $0x80] sm:$0xff] }
  0x8f   : > { %v900_v31 = vmul.f32 %v434_v1, %v378_v53  ;;  %v902_v32 = vmul.f32 %v434_v1, %v379_v54  ;;  %v904_v33 = vmul.f32 %v434_v1, %v380_v55  ;;  %v906_v34 = vmul.f32 %v434_v1, %v381_v56  ;;  %v411_v55 = vld [vmem:[%s890_s7 + $0x88] sm:$0xff]  ;;  %v412_v56 = vld [vmem:[%s890_s7 + $0x90] sm:$0xff] }
  0x90   : > { %v911_v39 = vmul.f32 %v434_v1, %v382_v57  ;;  %v913_v40 = vmul.f32 %v434_v1, %v383_v58  ;;  %v915_v41 = vmul.f32 %v434_v1, %v384_v59  ;;  %v917_v42 = vmul.f32 %v434_v1, %v385_v60  ;;  %v413_v57 = vld [vmem:[%s890_s7 + $0x98] sm:$0xff] }
  0x91   : > { %v922_v47 = vmul.f32 %v434_v1, %v386_v61  ;;  %v924_v48 = vmul.f32 %v434_v1, %v387_v62  ;;  %v926_v9 = vmul.f32 %v434_v1, %v388_v63  ;;  %v928_v36 = vmul.f32 %v434_v1, %v389_v0  ;;  %v414_v62 = vld [vmem:[%s890_s7 + $0xa0] sm:$0xff]  ;;  %v415_v63 = vld [vmem:[%s890_s7 + $0xa8] sm:$0xff]  ;;  %v416_v0 = vld [vmem:[%s890_s7 + $0xb0] sm:$0xff] }
  0x92   : > { %v939_v51 = vmul.f32 %v434_v1, %v390_v2  ;;  %v941_v52 = vmul.f32 %v434_v1, %v391_v3  ;;  %v943_v53 = vmul.f32 %v434_v1, %v392_v5  ;;  %v945_v54 = vmul.f32 %v434_v1, %v393_v6  ;;  %v417_v6 = vld [vmem:[%s890_s7 + $0xb8] sm:$0xff] }
  0x93   : > { %v468_v58 = vadd.f32 %v436_v7, %v394_v4  ;;  %v469_v59 = vadd.f32 %v437_v8, %v395_v20  ;;  %v470_v60 = vadd.f32 %v438_v10, %v396_v21  ;;  %v471_v61 = vadd.f32 %v439_v11, %v397_v22  ;;  %v419_v7 = vld [vmem:[%s890_s7 + $0xc8] sm:$0xff]  ;;  %v424_v20 = vld [vmem:[%s890_s7 + $0xf0] sm:$0xff]  ;;  %v425_v21 = vld [vmem:[%s890_s7 + $0xf8] sm:$0xff] }
  0x94   : > { %1019 = vst [vmem:[#allocation3_spill] sm:$0xff] %v945_v54  ;;  %v472_v2 = vadd.f32 %v440_v12, %v398_v27  ;;  %v473_v1 = vadd.f32 %v441_v13, %v399_v28  ;;  %v474_v3 = vadd.f32 %v442_v14, %v400_v29  ;;  %v475_v5 = vadd.f32 %v443_v15, %v401_v30  ;;  %v418_v54 = vld [vmem:[%s890_s7 + $0xc0] sm:$0xff]  ;;  %v420_v12 = vld [vmem:[%s890_s7 + $0xd0] sm:$0xff]  ;;  %v421_v13 = vld [vmem:[%s890_s7 + $0xd8] sm:$0xff] }
  0x95   : > { %v476_v8 = vadd.f32 %v444_v16, %v402_v35  ;;  %v477_v10 = vadd.f32 %v445_v17, %v403_v37  ;;  %v478_v11 = vadd.f32 %v446_v18, %v404_v38  ;;  %v479_v4 = vadd.f32 %v447_v19, %v405_v44  ;;  %500 = vst [vmem:[%s934_s10] sm:$0xff] %v468_v58  ;;  %v422_v14 = vld [vmem:[%s890_s7 + $0xe0] sm:$0xff]  ;;  %v423_v19 = vld [vmem:[%s890_s7 + $0xe8] sm:$0xff] }
  0x96   : > { %501 = vst [vmem:[%s934_s10 + $0x8] sm:$0xff] %v469_v59  ;;  %502 = vst [vmem:[%s934_s10 + $0x10] sm:$0xff] %v470_v60  ;;  %v480_v15 = vadd.f32 %v448_v23, %v406_v45  ;;  %v481_v16 = vadd.f32 %v449_v24, %v407_v46  ;;  %v482_v17 = vadd.f32 %v450_v25, %v408_v43 }
  0x97   : > { %503 = vst [vmem:[%s934_s10 + $0x18] sm:$0xff] %v471_v61  ;;  %v483_v18 = vadd.f32 %v451_v26, %v409_v49  ;;  %504 = vst [vmem:[%s934_s10 + $0x20] sm:$0xff] %v472_v2  ;;  %v484_v22 = vadd.f32 %v900_v31, %v410_v50  ;;  %v485_v23 = vadd.f32 %v902_v32, %v411_v55 }
  0x98   : > { %505 = vst [vmem:[%s934_s10 + $0x28] sm:$0xff] %v473_v1  ;;  %506 = vst [vmem:[%s934_s10 + $0x30] sm:$0xff] %v474_v3  ;;  %v486_v24 = vadd.f32 %v904_v33, %v412_v56  ;;  %v487_v25 = vadd.f32 %v906_v34, %v413_v57  ;;  %v488_v26 = vadd.f32 %v911_v39, %v414_v62 }
  0x99   : > { %507 = vst [vmem:[%s934_s10 + $0x38] sm:$0xff] %v475_v5  ;;  %508 = vst [vmem:[%s934_s10 + $0x40] sm:$0xff] %v476_v8  ;;  %v489_v27 = vadd.f32 %v913_v40, %v415_v63  ;;  %v490_v28 = vadd.f32 %v915_v41, %v416_v0  ;;  %v491_v29 = vadd.f32 %v917_v42, %v417_v6 }
  0x9a   : > { %509 = vst [vmem:[%s934_s10 + $0x48] sm:$0xff] %v477_v10  ;;  %510 = vst [vmem:[%s934_s10 + $0x50] sm:$0xff] %v478_v11  ;;  %v492_v30 = vadd.f32 %v922_v47, %v418_v54  ;;  %v493_v31 = vadd.f32 %v924_v48, %v419_v7  ;;  %v494_v32 = vadd.f32 %v926_v9, %v420_v12 }
  0x9b   : > { %511 = vst [vmem:[%s934_s10 + $0x58] sm:$0xff] %v479_v4  ;;  %512 = vst [vmem:[%s934_s10 + $0x60] sm:$0xff] %v480_v15  ;;  %v495_v33 = vadd.f32 %v928_v36, %v421_v13  ;;  %v496_v34 = vadd.f32 %v939_v51, %v422_v14  ;;  %v497_v35 = vadd.f32 %v941_v52, %v423_v19  ;;  %v1020_v38 = vld [vmem:[#allocation3_spill] sm:$0xff] }
  0x9c   : > { %513 = vst [vmem:[%s934_s10 + $0x68] sm:$0xff] %v481_v16  ;;  %514 = vst [vmem:[%s934_s10 + $0x70] sm:$0xff] %v482_v17  ;;  %v498_v37 = vadd.f32 %v943_v53, %v424_v20  ;;  %v499_v39 = vadd.f32 %v1020_v38, %v425_v21 }
  0x9d   : > { %515 = vst [vmem:[%s934_s10 + $0x78] sm:$0xff] %v483_v18  ;;  %516 = vst [vmem:[%s934_s10 + $0x80] sm:$0xff] %v484_v22 }
  0x9e   : > { %517 = vst [vmem:[%s934_s10 + $0x88] sm:$0xff] %v485_v23  ;;  %518 = vst [vmem:[%s934_s10 + $0x90] sm:$0xff] %v486_v24 }
  0x9f   : > { %519 = vst [vmem:[%s934_s10 + $0x98] sm:$0xff] %v487_v25  ;;  %520 = vst [vmem:[%s934_s10 + $0xa0] sm:$0xff] %v488_v26 }
  0xa0   : > { %521 = vst [vmem:[%s934_s10 + $0xa8] sm:$0xff] %v489_v27  ;;  %522 = vst [vmem:[%s934_s10 + $0xb0] sm:$0xff] %v490_v28 }
  0xa1   : > { %523 = vst [vmem:[%s934_s10 + $0xb8] sm:$0xff] %v491_v29  ;;  %524 = vst [vmem:[%s934_s10 + $0xc0] sm:$0xff] %v492_v30 }
  0xa2   : > { %525 = vst [vmem:[%s934_s10 + $0xc8] sm:$0xff] %v493_v31  ;;  %526 = vst [vmem:[%s934_s10 + $0xd0] sm:$0xff] %v494_v32 }
  0xa3   : > { %527 = vst [vmem:[%s934_s10 + $0xd8] sm:$0xff] %v495_v33  ;;  %528 = vst [vmem:[%s934_s10 + $0xe0] sm:$0xff] %v496_v34 }
  0xa4   : > { %529 = vst [vmem:[%s934_s10 + $0xe8] sm:$0xff] %v497_v35  ;;  %530 = vst [vmem:[%s934_s10 + $0xf0] sm:$0xff] %v498_v37 }
  0xa5   : > { %531 = vst [vmem:[%s934_s10 + $0xf8] sm:$0xff] %v499_v39 }
  0xa6 PF: > { %s17_s20 = sadd.s32 1, %s632_s20  }
  0xa7   : > { %p14_p4 = scmp.ge.s32.totalorder %s17_s20, 4  }
  0xa9   :  { %16 = sbr.rel (!%p14_p4) target bundleno = 3 (0x3), region = 73 }

// kernel: run.89
= control target key start
LH: loop header
LB: loop body
LE: loop exit
PB: predicated region body
PF: predicated region fallthrough
CT: control target
= control target key end

     0   :  { %s454_s12 = smov 0   ;;  %s645_s0 = inlined_call_operand.vmem [shape: f32[512,8], index: 0, kind: input, shape index: {}]   ;;  %s646_s1 = inlined_call_operand.vmem [shape: f32[1,8], index: 1, kind: input, shape index: {}]   ;;  %s647_s2 = inlined_call_operand.vmem [shape: f32[1,8], index: 2, kind: input, shape index: {}]   ;;  %s648_s3 = inlined_call_operand.vmem [shape: f32[512,8], index: 3, kind: output, shape index: {}]  }
   0x1 LB: > { %s405_s13 = sadd.s32 4294967295, %s432_s12   ;;  %p409_p0 = scmp.ge.s32.totalorder %s432_s12, 1  ;;  %s432_s12 = sphi %s454_s12, %s13_s12  }
   0x2   : > { %p138_p1 = scmp.lt.s32.totalorder %s432_s12, 3 }
   0x4   : > { %p139_p2 = pnand %p409_p0, %p138_p1 }
   0x5   : > { %s410_s14 = sshll.u32 (!%p139_p2), %s405_s13, 5 }
   0x6   : > { %142 = sbr.rel (%p139_p2) target bundleno = 44 (0x2c), region = 32  ;;  %p163_p3 = scmp.lt.s32.totalorder (!%p139_p2), %s410_s14, 63 }
   0xb   : > { %s650_s14 = smov (!%p163_p3, %s410_s14), 63  ;;  %v465_v0 = vld [vmem:[%s646_s1] ss:$0 sm:$0xff]  ;;  %vm316_vm0 = vcmask 64512  }
   0xc   : > { %s411_s15 = sshll.u32 %s650_s14, 3  ;;  %v475_v1 = vld [vmem:[%s647_s2] ss:$0 sm:$0xff] }
   0xd   : > { %s470_s20 = scalar_lea.vmem %s645_s0, %s411_s15  ;;  %s498_s25 = scalar_lea.vmem %s648_s3, %s411_s15 }
   0xe   : > { %v174_v2 = vld [vmem:[%s470_s20] sm:$0xff]  ;;  %v175_v3 = vld [vmem:[%s470_s20 + $0x8] sm:$0xff]  ;;  %v176_v4 = vld [vmem:[%s470_s20 + $0x10] sm:$0xff] }
   0xf   : > { %v213_v5 = vmul.f32 %v465_v0, %v174_v2  ;;  %v214_v6 = vmul.f32 %v465_v0, %v175_v3  ;;  %v215_v7 = vmul.f32 %v465_v0, %v176_v4  ;;  %v177_v8 = vld [vmem:[%s470_s20 + $0x18] sm:$0xff]  ;;  %v178_v9 = vld [vmem:[%s470_s20 + $0x20] sm:$0xff]  ;;  %v179_v10 = vld [vmem:[%s470_s20 + $0x28] sm:$0xff] }
  0x10   : > { %v216_v11 = vmul.f32 %v465_v0, %v177_v8  ;;  %v217_v12 = vmul.f32 %v465_v0, %v178_v9  ;;  %v218_v13 = vmul.f32 %v465_v0, %v179_v10  ;;  %v180_v14 = vld [vmem:[%s470_s20 + $0x30] sm:$0xff]  ;;  %v181_v15 = vld [vmem:[%s470_s20 + $0x38] sm:$0xff]  ;;  %v182_v24 = vld [vmem:[%s470_s20 + $0x40] sm:$0xff] }
  0x11   : > { %v252_v16 = vadd.f32 %v475_v1, %v213_v5  ;;  %v253_v17 = vadd.f32 %v475_v1, %v214_v6  ;;  %v254_v18 = vadd.f32 %v475_v1, %v215_v7  ;;  %v219_v19 = vmul.f32 %v465_v0, %v180_v14  ;;  %v183_v25 = vld [vmem:[%s470_s20 + $0x48] sm:$0xff]  ;;  %v184_v26 = vld [vmem:[%s470_s20 + $0x50] sm:$0xff]  ;;  %v185_v31 = vld [vmem:[%s470_s20 + $0x58] sm:$0xff] }
  0x12   : > { %v255_v20 = vadd.f32 %v475_v1, %v216_v11  ;;  %v256_v21 = vadd.f32 %v475_v1, %v217_v12  ;;  %v257_v22 = vadd.f32 %v475_v1, %v218_v13  ;;  %v220_v23 = vmul.f32 %v465_v0, %v181_v15  ;;  %v186_v32 = vld [vmem:[%s470_s20 + $0x60] sm:$0xff]  ;;  %v187_v33 = vld [vmem:[%s470_s20 + $0x68] sm:$0xff]  ;;  %v188_v38 = vld [vmem:[%s470_s20 + $0x70] sm:$0xff] }
  0x13   : > { %v284_v27 = vmax.f32 %v252_v16, 0.0  ;;  %v285_v28 = vmax.f32 %v253_v17, 0.0  ;;  %v286_v29 = vmax.f32 %v254_v18, 0.0  ;;  %v258_v30 = vadd.f32 %v475_v1, %v219_v19  ;;  %v189_v43 = vld [vmem:[%s470_s20 + $0x78] sm:$0xff]  ;;  %v190_v56 = vld [vmem:[%s470_s20 + $0x80] sm:$0xff]  ;;  %v191_v57 = vld [vmem:[%s470_s20 + $0x88] sm:$0xff] }
  0x14   : > { %v287_v34 = vmax.f32 %v255_v20, 0.0  ;;  %v288_v35 = vmax.f32 %v256_v21, 0.0  ;;  %v289_v36 = vmax.f32 %v257_v22, 0.0  ;;  %v259_v37 = vadd.f32 %v475_v1, %v220_v23  ;;  %v192_v58 = vld [vmem:[%s470_s20 + $0x90] sm:$0xff]  ;;  %v193_v63 = vld [vmem:[%s470_s20 + $0x98] sm:$0xff]  ;;  %v194_v2 = vld [vmem:[%s470_s20 + $0xa0] sm:$0xff] }
  0x15   : > { %317 = vst.msk [vmem:[%s498_s25] sm:$0xff] %vm316_vm0, %v284_v27  ;;  %318 = vst.msk [vmem:[%s498_s25 + $0x8] sm:$0xff] %vm316_vm0, %v285_v28  ;;  %v290_v39 = vmax.f32 %v258_v30, 0.0  ;;  %v221_v40 = vmul.f32 %v465_v0, %v182_v24  ;;  %v222_v41 = vmul.f32 %v465_v0, %v183_v25  ;;  %v223_v42 = vmul.f32 %v465_v0, %v184_v26  ;;  %v195_v3 = vld [vmem:[%s470_s20 + $0xa8] sm:$0xff]  ;;  %v196_v8 = vld [vmem:[%s470_s20 + $0xb0] sm:$0xff] }
  0x16   : > { %319 = vst.msk [vmem:[%s498_s25 + $0x10] sm:$0xff] %vm316_vm0, %v286_v29  ;;  %320 = vst.msk [vmem:[%s498_s25 + $0x18] sm:$0xff] %vm316_vm0, %v287_v34  ;;  %v291_v44 = vmax.f32 %v259_v37, 0.0  ;;  %v224_v45 = vmul.f32 %v465_v0, %v185_v31  ;;  %v225_v46 = vmul.f32 %v465_v0, %v186_v32  ;;  %v226_v47 = vmul.f32 %v465_v0, %v187_v33  ;;  %v197_v13 = vld [vmem:[%s470_s20 + $0xb8] sm:$0xff]  ;;  %v198_v26 = vld [vmem:[%s470_s20 + $0xc0] sm:$0xff] }
  0x17   : > { %321 = vst.msk [vmem:[%s498_s25 + $0x20] sm:$0xff] %vm316_vm0, %v288_v35  ;;  %322 = vst.msk [vmem:[%s498_s25 + $0x28] sm:$0xff] %vm316_vm0, %v289_v36  ;;  %v260_v48 = vadd.f32 %v475_v1, %v221_v40  ;;  %v261_v49 = vadd.f32 %v475_v1, %v222_v41  ;;  %v262_v50 = vadd.f32 %v475_v1, %v223_v42  ;;  %v199_v27 = vld [vmem:[%s470_s20 + $0xc8] sm:$0xff]  ;;  %v200_v28 = vld [vmem:[%s470_s20 + $0xd0] sm:$0xff] }
  0x18   : > { %323 = vst.msk [vmem:[%s498_s25 + $0x30] sm:$0xff] %vm316_vm0, %v290_v39  ;;  %v227_v51 = vmul.f32 %v465_v0, %v188_v38  ;;  %324 = vst.msk [vmem:[%s498_s25 + $0x38] sm:$0xff] %vm316_vm0, %v291_v44  ;;  %v263_v52 = vadd.f32 %v475_v1, %v224_v45  ;;  %v264_v53 = vadd.f32 %v475_v1, %v225_v46  ;;  %v201_v33 = vld [vmem:[%s470_s20 + $0xd8] sm:$0xff]  ;;  %v202_v34 = vld [vmem:[%s470_s20 + $0xe0] sm:$0xff] }
  0x19   : > { %v265_v54 = vadd.f32 %v475_v1, %v226_v47  ;;  %v228_v55 = vmul.f32 %v465_v0, %v189_v43  ;;  %v292_v59 = vmax.f32 %v260_v48, 0.0  ;;  %v293_v60 = vmax.f32 %v261_v49, 0.0  ;;  %v203_v35 = vld [vmem:[%s470_s20 + $0xe8] sm:$0xff]  ;;  %v204_v40 = vld [vmem:[%s470_s20 + $0xf0] sm:$0xff]  ;;  %v205_v45 = vld [vmem:[%s470_s20 + $0xf8] sm:$0xff] }
  0x1a   : > { %v294_v61 = vmax.f32 %v262_v50, 0.0  ;;  %v266_v62 = vadd.f32 %v475_v1, %v227_v51  ;;  %v295_v4 = vmax.f32 %v263_v52, 0.0  ;;  %v296_v5 = vmax.f32 %v264_v53, 0.0 }
  0x1b   : > { %v297_v6 = vmax.f32 %v265_v54, 0.0  ;;  %v267_v7 = vadd.f32 %v475_v1, %v228_v55  ;;  %325 = vst.msk [vmem:[%s498_s25 + $0x40] sm:$0xff] %vm316_vm0, %v292_v59  ;;  %326 = vst.msk [vmem:[%s498_s25 + $0x48] sm:$0xff] %vm316_vm0, %v293_v60  ;;  %v229_v10 = vmul.f32 %v465_v0, %v190_v56  ;;  %v230_v11 = vmul.f32 %v465_v0, %v191_v57 }
  0x1c   : > { %327 = vst.msk [vmem:[%s498_s25 + $0x50] sm:$0xff] %vm316_vm0, %v294_v61  ;;  %v298_v9 = vmax.f32 %v266_v62, 0.0  ;;  %v231_v12 = vmul.f32 %v465_v0, %v192_v58  ;;  %328 = vst.msk [vmem:[%s498_s25 + $0x58] sm:$0xff] %vm316_vm0, %v295_v4  ;;  %v232_v15 = vmul.f32 %v465_v0, %v193_v63  ;;  %v233_v16 = vmul.f32 %v465_v0, %v194_v2 }
  0x1d   : > { %329 = vst.msk [vmem:[%s498_s25 + $0x60] sm:$0xff] %vm316_vm0, %v296_v5  ;;  %330 = vst.msk [vmem:[%s498_s25 + $0x68] sm:$0xff] %vm316_vm0, %v297_v6  ;;  %v299_v14 = vmax.f32 %v267_v7, 0.0  ;;  %v234_v17 = vmul.f32 %v465_v0, %v195_v3  ;;  %v268_v18 = vadd.f32 %v475_v1, %v229_v10  ;;  %v269_v19 = vadd.f32 %v475_v1, %v230_v11 }
  0x1e   : > { %331 = vst.msk [vmem:[%s498_s25 + $0x70] sm:$0xff] %vm316_vm0, %v298_v9  ;;  %v270_v20 = vadd.f32 %v475_v1, %v231_v12  ;;  %v235_v21 = vmul.f32 %v465_v0, %v196_v8  ;;  %v271_v22 = vadd.f32 %v475_v1, %v232_v15  ;;  %v272_v23 = vadd.f32 %v475_v1, %v233_v16 }
  0x1f   : > { %332 = vst.msk [vmem:[%s498_s25 + $0x78] sm:$0xff] %vm316_vm0, %v299_v14  ;;  %v273_v24 = vadd.f32 %v475_v1, %v234_v17  ;;  %v236_v25 = vmul.f32 %v465_v0, %v197_v13  ;;  %v300_v29 = vmax.f32 %v268_v18, 0.0  ;;  %v301_v30 = vmax.f32 %v269_v19, 0.0 }
  0x20   : > { %v302_v31 = vmax.f32 %v270_v20, 0.0  ;;  %v274_v32 = vadd.f32 %v475_v1, %v235_v21  ;;  %v303_v36 = vmax.f32 %v271_v22, 0.0  ;;  %v304_v37 = vmax.f32 %v272_v23, 0.0 }
  0x21   : > { %v305_v38 = vmax.f32 %v273_v24, 0.0  ;;  %v275_v39 = vadd.f32 %v475_v1, %v236_v25  ;;  %333 = vst.msk [vmem:[%s498_s25 + $0x80] sm:$0xff] %vm316_vm0, %v300_v29  ;;  %334 = vst.msk [vmem:[%s498_s25 + $0x88] sm:$0xff] %vm316_vm0, %v301_v30  ;;  %v237_v42 = vmul.f32 %v465_v0, %v198_v26  ;;  %v238_v43 = vmul.f32 %v465_v0, %v199_v27 }
  0x22   : > { %335 = vst.msk [vmem:[%s498_s25 + $0x90] sm:$0xff] %vm316_vm0, %v302_v31  ;;  %v306_v41 = vmax.f32 %v274_v32, 0.0  ;;  %v239_v44 = vmul.f32 %v465_v0, %v200_v28  ;;  %336 = vst.msk [vmem:[%s498_s25 + $0x98] sm:$0xff] %vm316_vm0, %v303_v36  ;;  %v240_v47 = vmul.f32 %v465_v0, %v201_v33  ;;  %v241_v48 = vmul.f32 %v465_v0, %v202_v34 }
  0x23   : > { %337 = vst.msk [vmem:[%s498_s25 + $0xa0] sm:$0xff] %vm316_vm0, %v304_v37  ;;  %338 = vst.msk [vmem:[%s498_s25 + $0xa8] sm:$0xff] %vm316_vm0, %v305_v38  ;;  %v307_v46 = vmax.f32 %v275_v39, 0.0  ;;  %v242_v49 = vmul.f32 %v465_v0, %v203_v35  ;;  %v276_v50 = vadd.f32 %v475_v1, %v237_v42  ;;  %v277_v51 = vadd.f32 %v475_v1, %v238_v43 }
  0x24   : > { %339 = vst.msk [vmem:[%s498_s25 + $0xb0] sm:$0xff] %vm316_vm0, %v306_v41  ;;  %v278_v52 = vadd.f32 %v475_v1, %v239_v44  ;;  %v243_v53 = vmul.f32 %v465_v0, %v204_v40  ;;  %v279_v54 = vadd.f32 %v475_v1, %v240_v47  ;;  %v280_v55 = vadd.f32 %v475_v1, %v241_v48 }
  0x25   : > { %340 = vst.msk [vmem:[%s498_s25 + $0xb8] sm:$0xff] %vm316_vm0, %v307_v46  ;;  %v281_v56 = vadd.f32 %v475_v1, %v242_v49  ;;  %v244_v57 = vmul.f32 %v465_v0, %v205_v45  ;;  %v308_v58 = vmax.f32 %v276_v50, 0.0  ;;  %v309_v59 = vmax.f32 %v277_v51, 0.0 }
  0x26   : > { %v310_v60 = vmax.f32 %v278_v52, 0.0  ;;  %v282_v61 = vadd.f32 %v475_v1, %v243_v53  ;;  %v311_v62 = vmax.f32 %v279_v54, 0.0  ;;  %v312_v63 = vmax.f32 %v280_v55, 0.0 }
  0x27   : > { %v313_v2 = vmax.f32 %v281_v56, 0.0  ;;  %v283_v3 = vadd.f32 %v475_v1, %v244_v57  ;;  %341 = vst.msk [vmem:[%s498_s25 + $0xc0] sm:$0xff] %vm316_vm0, %v308_v58  ;;  %342 = vst.msk [vmem:[%s498_s25 + $0xc8] sm:$0xff] %vm316_vm0, %v309_v59 }
  0x28   : > { %343 = vst.msk [vmem:[%s498_s25 + $0xd0] sm:$0xff] %vm316_vm0, %v310_v60  ;;  %v314_v4 = vmax.f32 %v282_v61, 0.0  ;;  %344 = vst.msk [vmem:[%s498_s25 + $0xd8] sm:$0xff] %vm316_vm0, %v311_v62 }
  0x29   : > { %345 = vst.msk [vmem:[%s498_s25 + $0xe0] sm:$0xff] %vm316_vm0, %v312_v63  ;;  %346 = vst.msk [vmem:[%s498_s25 + $0xe8] sm:$0xff] %vm316_vm0, %v313_v2  ;;  %v315_v0 = vmax.f32 %v283_v3, 0.0 }
  0x2a   : > { %347 = vst.msk [vmem:[%s498_s25 + $0xf0] sm:$0xff] %vm316_vm0, %v314_v4 }
  0x2b   : > { %348 = vst.msk [vmem:[%s498_s25 + $0xf8] sm:$0xff] %vm316_vm0, %v315_v0 }
  0x2c PF: > { %s13_s12 = sadd.s32 1, %s432_s12  }
  0x2d   : > { %p10_p4 = scmp.ge.s32.totalorder %s13_s12, 4  }
  0x2f   :  { %12 = sbr.rel (!%p10_p4) target bundleno = 1 (0x1), region = 62 }

// kernel: run.119
= control target key start
LH: loop header
LB: loop body
LE: loop exit
PB: predicated region body
PF: predicated region fallthrough
CT: control target
= control target key end

     0   :  { %s862_s12 = smov 0   ;;  %s1006_s0 = inlined_call_operand.vmem [shape: bf16[512,81], index: 0, kind: input, shape index: {}]   ;;  %s1007_s1 = inlined_call_operand.vmem [shape: bf16[81,128], index: 1, kind: input, shape index: {}]   ;;  %s1008_s2 = inlined_call_operand.vmem [shape: f32[1,128], index: 2, kind: input, shape index: {}]   ;;  %s1009_s3 = inlined_call_operand.vmem [shape: f32[512,128], index: 3, kind: output, shape index: {}]  }
   0x1 LB: > { %s674_s13 = sadd.s32 4294967295, %s839_s12   ;;  %p678_p0 = scmp.ge.s32.totalorder %s839_s12, 1  ;;  %s839_s12 = sphi %s862_s12, %s13_s12  }
   0x2   : > { %p138_p1 = scmp.lt.s32.totalorder %s839_s12, 3 }
   0x4   : > { %p139_p2 = pnand %p678_p0, %p138_p1 }
   0x5   : > { %s679_s18 = sshll.u32 (!%p139_p2), %s674_s13, 5 }
   0x6   : > { %142 = sbr.rel (%p139_p2) target bundleno = 267 (0x10b), region = 32  ;;  %p163_p3 = scmp.lt.s32.totalorder (!%p139_p2), %s679_s18, 63 }
   0xb   : > { %v811_v0 = vld [vmem:[%s1007_s1 + $0x28] ss:$0 sps:$4 sm:$0x11]   ;;  %vm387_vm0 = vcmask 1040384   ;;  %v841_v1 = vmov 0   ;;  %v812_v4 = vld [vmem:[%s1007_s1 + $0x20] sm:$0xff]  }
   0xc   : > { %v389_v2 = vsel %vm387_vm0, 65535, %v841_v1  ;;  %s1011_s18 = smov (!%p163_p3, %s679_s18), 63  ;;  %v813_v5 = vld [vmem:[%s1007_s1 + $0x18] sm:$0xff]   ;;  %v814_v6 = vld [vmem:[%s1007_s1 + $0x10] sm:$0xff]   ;;  %vm338_vm1 = vcmask 662528   ;;  %v815_v9 = vld [vmem:[%s1007_s1 + $0x8] sm:$0xff]  }
   0xd   : > { %v391_v3 = vand.u32 %v811_v0, %v389_v2  ;;  %s680_s21 = sshll.u32 %s1011_s18, 2  ;;  %v816_v10 = vld [vmem:[%s1007_s1] sm:$0xff]   ;;  %s682_s6 = sshll.u32 %s1011_s18, 3 }
   0xe   : > { %s888_s26 = scalar_lea.vmem %s1006_s0, %s680_s21  ;;  %v931_v25 = vld [vmem:[%s1008_s2] ss:$0 sm:$0xff]  ;;  %s939_s9 = scalar_lea.vmem %s1009_s3, %s682_s6 }
   0xf   : > { %746 = vmatprep.subr.bf16.mxu0 %v391_v3  ;;  %790 = vmatprep.subr.bf16.mxu1 %v391_v3  ;;  %v817_v7 = vld [vmem:[%s888_s26] sm:$0xff]   ;;  %v819_v11 = vld [vmem:[%s888_s26 + $0x8] sm:$0xff]   ;;  %v821_v13 = vld [vmem:[%s888_s26 + $0x10] sm:$0xff]  }
  0x10   : > { %747 = vmatpush3.bf16.msra.mxu0 %v391_v3  ;;  %796 = vmatpush3.bf16.msra.mxu1 %v391_v3  ;;  %v818_v8 = vld [vmem:[%s888_s26 + $0x40] sm:$0xff]   ;;  %v820_v12 = vld [vmem:[%s888_s26 + $0x48] sm:$0xff]   ;;  %v822_v14 = vld [vmem:[%s888_s26 + $0x50] sm:$0xff]  }
  0x11   : > { %748 = vmatprep.subr.bf16.mxu0 %v812_v4  ;;  %791 = vmatprep.subr.bf16.mxu1 %v812_v4  ;;  %v823_v15 = vld [vmem:[%s888_s26 + $0x18] sm:$0xff]   ;;  %v825_v17 = vld [vmem:[%s888_s26 + $0x20] sm:$0xff]   ;;  %v827_v19 = vld [vmem:[%s888_s26 + $0x28] sm:$0xff]  }
  0x12   : > { %758 = vmatprep.mubr.msk.bf16.mxu0 %vm338_vm1, %v817_v7  ;;  %774 = vmatprep.mubr.msk.bf16.mxu1 %vm338_vm1, %v818_v8  ;;  %v824_v16 = vld [vmem:[%s888_s26 + $0x58] sm:$0xff]   ;;  %v826_v18 = vld [vmem:[%s888_s26 + $0x60] sm:$0xff]   ;;  %v828_v20 = vld [vmem:[%s888_s26 + $0x68] sm:$0xff]  }
  0x13   : > { %v829_v21 = vld [vmem:[%s888_s26 + $0x30] sm:$0xff]   ;;  %v831_v23 = vld [vmem:[%s888_s26 + $0x38] sm:$0xff]  }
  0x14   : > { %749 = vmatpush3.bf16.msra.mxu0 %v812_v4  ;;  %797 = vmatpush3.bf16.msra.mxu1 %v812_v4  ;;  %v830_v22 = vld [vmem:[%s888_s26 + $0x70] sm:$0xff]   ;;  %v832_v24 = vld [vmem:[%s888_s26 + $0x78] sm:$0xff]  }
  0x15   : > { %750 = vmatprep.subr.bf16.mxu0 %v813_v5  ;;  %792 = vmatprep.subr.bf16.mxu1 %v813_v5 }
  0x18   : > { %751 = vmatpush3.bf16.msra.mxu0 %v813_v5  ;;  %798 = vmatpush3.bf16.msra.mxu1 %v813_v5 }
  0x19   : > { %752 = vmatprep.subr.bf16.mxu0 %v814_v6  ;;  %793 = vmatprep.subr.bf16.mxu1 %v814_v6 }
  0x1c   : > { %753 = vmatpush3.bf16.msra.mxu0 %v814_v6  ;;  %799 = vmatpush3.bf16.msra.mxu1 %v814_v6 }
  0x1d   : > { %754 = vmatprep.subr.bf16.mxu0 %v815_v9  ;;  %794 = vmatprep.subr.bf16.mxu1 %v815_v9 }
  0x20   : > { %755 = vmatpush3.bf16.msra.mxu0 %v815_v9  ;;  %800 = vmatpush3.bf16.msra.mxu1 %v815_v9 }
  0x21   : > { %756 = vmatprep.subr.bf16.mxu0 %v816_v10  ;;  %795 = vmatprep.subr.bf16.mxu1 %v816_v10 }
  0x24   : > { %757 = vmatpush3.bf16.msra.mxu0 %v816_v10  ;;  %801 = vmatpush3.bf16.msra.mxu1 %v816_v10 }
  0x27   : > { %759 = vmatmul.mubr.msk.bf16.vlgmr.msra.gmra.mxu0 %vm338_vm1, %v819_v11  ;;  %775 = vmatmul.mubr.msk.bf16.vlgmr.msra.gmra.mxu1 %vm338_vm1, %v820_v12 }
  0x28   : > { %762 = vmatprep.mubr.msk.bf16.mxu0 %vm338_vm1, %v821_v13  ;;  %778 = vmatprep.mubr.msk.bf16.mxu1 %vm338_vm1, %v822_v14 }
  0x2f   : > { %763 = vmatmul.mubr.msk.bf16.gmra.mxu0 %vm338_vm1, %v823_v15  ;;  %779 = vmatmul.mubr.msk.bf16.gmra.mxu1 %vm338_vm1, %v824_v16 }
  0x30   : > { %766 = vmatprep.mubr.msk.bf16.mxu0 %vm338_vm1, %v825_v17  ;;  %782 = vmatprep.mubr.msk.bf16.mxu1 %vm338_vm1, %v826_v18 }
  0x37   : > { %767 = vmatmul.mubr.msk.bf16.gmra.mxu0 %vm338_vm1, %v827_v19  ;;  %783 = vmatmul.mubr.msk.bf16.gmra.mxu1 %vm338_vm1, %v828_v20 }
  0x38   : > { %770 = vmatprep.mubr.msk.bf16.mxu0 %vm338_vm1, %v829_v21  ;;  %786 = vmatprep.mubr.msk.bf16.mxu1 %vm338_vm1, %v830_v22 }
  0x3f   : > { %771 = vmatmul.mubr.msk.bf16.gmra.mxu0 %vm338_vm1, %v831_v23  ;;  %787 = vmatmul.mubr.msk.bf16.gmra.mxu1 %vm338_vm1, %v832_v24 }
  0xe7   : > { %v760_v26 = vpop.f32.mrf.mxu0  ;;  %v776_v27 = vpop.f32.mrf.mxu1 }
  0xe8   : > { %v436_v28 = vadd.f32 %v760_v26, %v931_v25  ;;  %v500_v29 = vadd.f32 %v776_v27, %v931_v25 }
  0xe9   : > { %v427_v30 = vpop.f32.mrf.mxu0  ;;  %v491_v31 = vpop.f32.mrf.mxu1 }
  0xea   : > { %v556_v32 = vmax.f32 %v436_v28, 0.0  ;;  %v572_v33 = vmax.f32 %v500_v29, 0.0  ;;  %v428_v34 = vadd.f32 %v931_v25, %v427_v30  ;;  %v492_v35 = vadd.f32 %v931_v25, %v491_v31 }
  0xeb   : > { %v761_v36 = vpop.f32.mrf.mxu0  ;;  %v777_v37 = vpop.f32.mrf.mxu1 }
  0xec   : > { %588 = vst [vmem:[%s939_s9 + $0x10] sm:$0xff] %v556_v32  ;;  %604 = vst [vmem:[%s939_s9 + $0x90] sm:$0xff] %v572_v33  ;;  %v554_v38 = vmax.f32 %v428_v34, 0.0  ;;  %v570_v39 = vmax.f32 %v492_v35, 0.0  ;;  %v439_v40 = vadd.f32 %v761_v36, %v931_v25  ;;  %v503_v41 = vadd.f32 %v777_v37, %v931_v25 }
  0xed   : > { %v430_v42 = vpop.f32.mrf.mxu0  ;;  %v494_v43 = vpop.f32.mrf.mxu1 }
  0xee   : > { %586 = vst [vmem:[%s939_s9] sm:$0xff] %v554_v38  ;;  %602 = vst [vmem:[%s939_s9 + $0x80] sm:$0xff] %v570_v39  ;;  %v557_v44 = vmax.f32 %v439_v40, 0.0  ;;  %v573_v45 = vmax.f32 %v503_v41, 0.0  ;;  %v431_v46 = vadd.f32 %v931_v25, %v430_v42  ;;  %v495_v47 = vadd.f32 %v931_v25, %v494_v43 }
  0xef   : > { %v764_v48 = vpop.f32.mrf.mxu0  ;;  %v780_v49 = vpop.f32.mrf.mxu1 }
  0xf0   : > { %589 = vst [vmem:[%s939_s9 + $0x18] sm:$0xff] %v557_v44  ;;  %605 = vst [vmem:[%s939_s9 + $0x98] sm:$0xff] %v573_v45  ;;  %v555_v50 = vmax.f32 %v431_v46, 0.0  ;;  %v571_v51 = vmax.f32 %v495_v47, 0.0  ;;  %v452_v52 = vadd.f32 %v764_v48, %v931_v25  ;;  %v516_v53 = vadd.f32 %v780_v49, %v931_v25 }
  0xf1   : > { %v443_v54 = vpop.f32.mrf.mxu0  ;;  %v507_v55 = vpop.f32.mrf.mxu1 }
  0xf2   : > { %587 = vst [vmem:[%s939_s9 + $0x8] sm:$0xff] %v555_v50  ;;  %603 = vst [vmem:[%s939_s9 + $0x88] sm:$0xff] %v571_v51  ;;  %v560_v56 = vmax.f32 %v452_v52, 0.0  ;;  %v576_v57 = vmax.f32 %v516_v53, 0.0  ;;  %v444_v58 = vadd.f32 %v931_v25, %v443_v54  ;;  %v508_v59 = vadd.f32 %v931_v25, %v507_v55 }
  0xf3   : > { %v765_v60 = vpop.f32.mrf.mxu0  ;;  %v781_v61 = vpop.f32.mrf.mxu1 }
  0xf4   : > { %592 = vst [vmem:[%s939_s9 + $0x30] sm:$0xff] %v560_v56  ;;  %608 = vst [vmem:[%s939_s9 + $0xb0] sm:$0xff] %v576_v57  ;;  %v558_v62 = vmax.f32 %v444_v58, 0.0  ;;  %v574_v63 = vmax.f32 %v508_v59, 0.0  ;;  %v455_v0 = vadd.f32 %v765_v60, %v931_v25  ;;  %v519_v1 = vadd.f32 %v781_v61, %v931_v25 }
  0xf5   : > { %v446_v2 = vpop.f32.mrf.mxu0  ;;  %v510_v3 = vpop.f32.mrf.mxu1 }
  0xf6   : > { %590 = vst [vmem:[%s939_s9 + $0x20] sm:$0xff] %v558_v62  ;;  %606 = vst [vmem:[%s939_s9 + $0xa0] sm:$0xff] %v574_v63  ;;  %v561_v4 = vmax.f32 %v455_v0, 0.0  ;;  %v577_v5 = vmax.f32 %v519_v1, 0.0  ;;  %v447_v6 = vadd.f32 %v931_v25, %v446_v2  ;;  %v511_v7 = vadd.f32 %v931_v25, %v510_v3 }
  0xf7   : > { %v768_v8 = vpop.f32.mrf.mxu0  ;;  %v784_v9 = vpop.f32.mrf.mxu1 }
  0xf8   : > { %593 = vst [vmem:[%s939_s9 + $0x38] sm:$0xff] %v561_v4  ;;  %609 = vst [vmem:[%s939_s9 + $0xb8] sm:$0xff] %v577_v5  ;;  %v559_v10 = vmax.f32 %v447_v6, 0.0  ;;  %v575_v11 = vmax.f32 %v511_v7, 0.0  ;;  %v468_v12 = vadd.f32 %v768_v8, %v931_v25  ;;  %v532_v13 = vadd.f32 %v784_v9, %v931_v25 }
  0xf9   : > { %v459_v14 = vpop.f32.mrf.mxu0  ;;  %v523_v15 = vpop.f32.mrf.mxu1 }
  0xfa   : > { %591 = vst [vmem:[%s939_s9 + $0x28] sm:$0xff] %v559_v10  ;;  %607 = vst [vmem:[%s939_s9 + $0xa8] sm:$0xff] %v575_v11  ;;  %v564_v16 = vmax.f32 %v468_v12, 0.0  ;;  %v580_v17 = vmax.f32 %v532_v13, 0.0  ;;  %v460_v18 = vadd.f32 %v931_v25, %v459_v14  ;;  %v524_v19 = vadd.f32 %v931_v25, %v523_v15 }
  0xfb   : > { %v769_v20 = vpop.f32.mrf.mxu0  ;;  %v785_v21 = vpop.f32.mrf.mxu1 }
  0xfc   : > { %596 = vst [vmem:[%s939_s9 + $0x50] sm:$0xff] %v564_v16  ;;  %612 = vst [vmem:[%s939_s9 + $0xd0] sm:$0xff] %v580_v17  ;;  %v562_v22 = vmax.f32 %v460_v18, 0.0  ;;  %v578_v23 = vmax.f32 %v524_v19, 0.0  ;;  %v471_v24 = vadd.f32 %v769_v20, %v931_v25  ;;  %v535_v26 = vadd.f32 %v785_v21, %v931_v25 }
  0xfd   : > { %v462_v27 = vpop.f32.mrf.mxu0  ;;  %v526_v28 = vpop.f32.mrf.mxu1 }
  0xfe   : > { %594 = vst [vmem:[%s939_s9 + $0x40] sm:$0xff] %v562_v22  ;;  %610 = vst [vmem:[%s939_s9 + $0xc0] sm:$0xff] %v578_v23  ;;  %v565_v29 = vmax.f32 %v471_v24, 0.0  ;;  %v581_v30 = vmax.f32 %v535_v26, 0.0  ;;  %v463_v31 = vadd.f32 %v931_v25, %v462_v27  ;;  %v527_v32 = vadd.f32 %v931_v25, %v526_v28 }
  0xff   : > { %v772_v33 = vpop.f32.mrf.mxu0  ;;  %v788_v34 = vpop.f32.mrf.mxu1 }
 0x100   : > { %597 = vst [vmem:[%s939_s9 + $0x58] sm:$0xff] %v565_v29  ;;  %613 = vst [vmem:[%s939_s9 + $0xd8] sm:$0xff] %v581_v30  ;;  %v563_v35 = vmax.f32 %v463_v31, 0.0  ;;  %v579_v36 = vmax.f32 %v527_v32, 0.0  ;;  %v484_v37 = vadd.f32 %v772_v33, %v931_v25  ;;  %v548_v38 = vadd.f32 %v788_v34, %v931_v25 }
 0x101   : > { %v475_v39 = vpop.f32.mrf.mxu0  ;;  %v539_v40 = vpop.f32.mrf.mxu1 }
 0x102   : > { %595 = vst [vmem:[%s939_s9 + $0x48] sm:$0xff] %v563_v35  ;;  %611 = vst [vmem:[%s939_s9 + $0xc8] sm:$0xff] %v579_v36  ;;  %v568_v41 = vmax.f32 %v484_v37, 0.0  ;;  %v584_v42 = vmax.f32 %v548_v38, 0.0  ;;  %v476_v43 = vadd.f32 %v931_v25, %v475_v39  ;;  %v540_v44 = vadd.f32 %v931_v25, %v539_v40 }
 0x103   : > { %v773_v45 = vpop.f32.mrf.mxu0  ;;  %v789_v46 = vpop.f32.mrf.mxu1 }
 0x104   : > { %600 = vst [vmem:[%s939_s9 + $0x70] sm:$0xff] %v568_v41  ;;  %616 = vst [vmem:[%s939_s9 + $0xf0] sm:$0xff] %v584_v42  ;;  %v566_v47 = vmax.f32 %v476_v43, 0.0  ;;  %v582_v48 = vmax.f32 %v540_v44, 0.0  ;;  %v487_v49 = vadd.f32 %v773_v45, %v931_v25  ;;  %v551_v50 = vadd.f32 %v789_v46, %v931_v25 }
 0x105   : > { %v478_v51 = vpop.f32.mrf.mxu0  ;;  %v542_v52 = vpop.f32.mrf.mxu1 }
 0x106   : > { %598 = vst [vmem:[%s939_s9 + $0x60] sm:$0xff] %v566_v47  ;;  %614 = vst [vmem:[%s939_s9 + $0xe0] sm:$0xff] %v582_v48  ;;  %v569_v53 = vmax.f32 %v487_v49, 0.0  ;;  %v585_v54 = vmax.f32 %v551_v50, 0.0  ;;  %v479_v55 = vadd.f32 %v931_v25, %v478_v51  ;;  %v543_v56 = vadd.f32 %v931_v25, %v542_v52 }
 0x108   : > { %601 = vst [vmem:[%s939_s9 + $0x78] sm:$0xff] %v569_v53  ;;  %617 = vst [vmem:[%s939_s9 + $0xf8] sm:$0xff] %v585_v54  ;;  %v567_v57 = vmax.f32 %v479_v55, 0.0  ;;  %v583_v58 = vmax.f32 %v543_v56, 0.0 }
 0x10a   : > { %599 = vst [vmem:[%s939_s9 + $0x68] sm:$0xff] %v567_v57  ;;  %615 = vst [vmem:[%s939_s9 + $0xe8] sm:$0xff] %v583_v58 }
 0x10b PF: > { %s13_s12 = sadd.s32 1, %s839_s12  }
 0x10c   : > { %p10_p4 = scmp.ge.s32.totalorder %s13_s12, 4  }
 0x10e   :  { %12 = sbr.rel (!%p10_p4) target bundleno = 1 (0x1), region = 62 }

// kernel: run.118
= control target key start
LH: loop header
LB: loop body
LE: loop exit
PB: predicated region body
PF: predicated region fallthrough
CT: control target
= control target key end

     0   :  { %s780_s12 = smov 0   ;;  %s909_s0 = inlined_call_operand.vmem [shape: bf16[512,8], index: 0, kind: input, shape index: {}]   ;;  %s910_s1 = inlined_call_operand.vmem [shape: bf16[8,128], index: 1, kind: input, shape index: {}]   ;;  %s911_s2 = inlined_call_operand.vmem [shape: f32[1,128], index: 2, kind: input, shape index: {}]   ;;  %s912_s3 = inlined_call_operand.vmem [shape: f32[512,128], index: 3, kind: output, shape index: {}]  }
   0x1 LB: > { %s629_s13 = sadd.s32 4294967295, %s758_s12   ;;  %p633_p0 = scmp.ge.s32.totalorder %s758_s12, 1  ;;  %s758_s12 = sphi %s780_s12, %s13_s12  }
   0x2   : > { %p138_p1 = scmp.lt.s32.totalorder %s758_s12, 3 }
   0x4   : > { %p139_p2 = pnand %p633_p0, %p138_p1 }
   0x5   : > { %s634_s16 = sshll.u32 (!%p139_p2), %s629_s13, 5 }
   0x6   : > { %142 = sbr.rel (%p139_p2) target bundleno = 245 (0xf5), region = 32  ;;  %p163_p3 = scmp.lt.s32.totalorder (!%p139_p2), %s634_s16, 63 }
   0xb   : > { %v207_v0 = vld [vmem:[%s910_s1] sm:$0xf]  ;;  %vm344_vm0 = vcmask 1043456   ;;  %s914_s16 = smov (!%p163_p3, %s634_s16), 63  ;;  %vm295_vm1 = vcmask 64512  }
   0xc   : > { %726 = vmatprep.subr.msk.bf16.mxu0 %vm344_vm0, %v207_v0  ;;  %727 = vmatprep.subr.msk.bf16.mxu1 %vm344_vm0, %v207_v0  ;;  %v346_v1 = vsel %vm344_vm0, %v207_v0, 0  ;;  %s635_s17 = sshll.u32 %s914_s16, 2  ;;  %v834_v18 = vld [vmem:[%s911_s2] ss:$0 sm:$0xff]  ;;  %s637_s23 = sshll.u32 %s914_s16, 3 }
   0xd   : > { %691 = vmatpush3.bf16.msra.mxu0 %v346_v1  ;;  %725 = vmatpush3.bf16.msra.mxu1 %v346_v1  ;;  %s797_s20 = scalar_lea.vmem %s909_s0, %s635_s17  ;;  %s841_s26 = scalar_lea.vmem %s912_s3, %s637_s23 }
   0xe   : > { %v736_v2 = vld [vmem:[%s797_s20] sm:$0xff]   ;;  %v738_v4 = vld [vmem:[%s797_s20 + $0x8] sm:$0xff]   ;;  %v740_v6 = vld [vmem:[%s797_s20 + $0x10] sm:$0xff]  }
   0xf   : > { %v737_v3 = vld [vmem:[%s797_s20 + $0x40] sm:$0xff]   ;;  %692 = vmatprep.mubr.msk.bf16.mxu0 %vm295_vm1, %v736_v2  ;;  %v739_v5 = vld [vmem:[%s797_s20 + $0x48] sm:$0xff]   ;;  %v741_v7 = vld [vmem:[%s797_s20 + $0x50] sm:$0xff]  }
  0x10   : > { %708 = vmatprep.mubr.msk.bf16.mxu1 %vm295_vm1, %v737_v3  ;;  %693 = vmatmul.mubr.msk.bf16.vlgmr.msra.gmra.mxu0 %vm295_vm1, %v738_v4  ;;  %v742_v8 = vld [vmem:[%s797_s20 + $0x18] sm:$0xff]   ;;  %v744_v10 = vld [vmem:[%s797_s20 + $0x20] sm:$0xff]   ;;  %v746_v12 = vld [vmem:[%s797_s20 + $0x28] sm:$0xff]  }
  0x11   : > { %709 = vmatmul.mubr.msk.bf16.vlgmr.msra.gmra.mxu1 %vm295_vm1, %v739_v5  ;;  %696 = vmatprep.mubr.msk.bf16.mxu0 %vm295_vm1, %v740_v6  ;;  %v743_v9 = vld [vmem:[%s797_s20 + $0x58] sm:$0xff]   ;;  %v745_v11 = vld [vmem:[%s797_s20 + $0x60] sm:$0xff]   ;;  %v747_v13 = vld [vmem:[%s797_s20 + $0x68] sm:$0xff]  }
  0x12   : > { %712 = vmatprep.mubr.msk.bf16.mxu1 %vm295_vm1, %v741_v7  ;;  %v748_v14 = vld [vmem:[%s797_s20 + $0x30] sm:$0xff]   ;;  %v750_v16 = vld [vmem:[%s797_s20 + $0x38] sm:$0xff]  }
  0x13   : > { %v749_v15 = vld [vmem:[%s797_s20 + $0x70] sm:$0xff]   ;;  %v751_v17 = vld [vmem:[%s797_s20 + $0x78] sm:$0xff]  }
  0x18   : > { %697 = vmatmul.mubr.msk.bf16.gmra.mxu0 %vm295_vm1, %v742_v8 }
  0x19   : > { %713 = vmatmul.mubr.msk.bf16.gmra.mxu1 %vm295_vm1, %v743_v9  ;;  %700 = vmatprep.mubr.msk.bf16.mxu0 %vm295_vm1, %v744_v10 }
  0x1a   : > { %716 = vmatprep.mubr.msk.bf16.mxu1 %vm295_vm1, %v745_v11 }
  0x20   : > { %701 = vmatmul.mubr.msk.bf16.gmra.mxu0 %vm295_vm1, %v746_v12 }
  0x21   : > { %717 = vmatmul.mubr.msk.bf16.gmra.mxu1 %vm295_vm1, %v747_v13  ;;  %704 = vmatprep.mubr.msk.bf16.mxu0 %vm295_vm1, %v748_v14 }
  0x22   : > { %720 = vmatprep.mubr.msk.bf16.mxu1 %vm295_vm1, %v749_v15 }
  0x28   : > { %705 = vmatmul.mubr.msk.bf16.gmra.mxu0 %vm295_vm1, %v750_v16 }
  0x29   : > { %721 = vmatmul.mubr.msk.bf16.gmra.mxu1 %vm295_vm1, %v751_v17 }
  0xd0   : > { %v694_v19 = vpop.f32.mrf.mxu0 }
  0xd1   : > { %v391_v20 = vadd.f32 %v694_v19, %v834_v18  ;;  %v710_v21 = vpop.f32.mrf.mxu1 }
  0xd2   : > { %v455_v22 = vadd.f32 %v710_v21, %v834_v18  ;;  %v382_v23 = vpop.f32.mrf.mxu0 }
  0xd3   : > { %v511_v24 = vmax.f32 %v391_v20, 0.0  ;;  %v383_v25 = vadd.f32 %v834_v18, %v382_v23  ;;  %v446_v26 = vpop.f32.mrf.mxu1 }
  0xd4   : > { %v527_v27 = vmax.f32 %v455_v22, 0.0  ;;  %v447_v28 = vadd.f32 %v834_v18, %v446_v26  ;;  %v695_v29 = vpop.f32.mrf.mxu0 }
  0xd5   : > { %543 = vst [vmem:[%s841_s26 + $0x10] sm:$0xff] %v511_v24  ;;  %v509_v30 = vmax.f32 %v383_v25, 0.0  ;;  %v394_v31 = vadd.f32 %v695_v29, %v834_v18  ;;  %v711_v32 = vpop.f32.mrf.mxu1 }
  0xd6   : > { %559 = vst [vmem:[%s841_s26 + $0x90] sm:$0xff] %v527_v27  ;;  %v525_v33 = vmax.f32 %v447_v28, 0.0  ;;  %v458_v34 = vadd.f32 %v711_v32, %v834_v18  ;;  %v385_v35 = vpop.f32.mrf.mxu0 }
  0xd7   : > { %541 = vst [vmem:[%s841_s26] sm:$0xff] %v509_v30  ;;  %v512_v36 = vmax.f32 %v394_v31, 0.0  ;;  %v386_v37 = vadd.f32 %v834_v18, %v385_v35  ;;  %v449_v38 = vpop.f32.mrf.mxu1 }
  0xd8   : > { %557 = vst [vmem:[%s841_s26 + $0x80] sm:$0xff] %v525_v33  ;;  %v528_v39 = vmax.f32 %v458_v34, 0.0  ;;  %v450_v40 = vadd.f32 %v834_v18, %v449_v38  ;;  %v698_v41 = vpop.f32.mrf.mxu0 }
  0xd9   : > { %544 = vst [vmem:[%s841_s26 + $0x18] sm:$0xff] %v512_v36  ;;  %v510_v42 = vmax.f32 %v386_v37, 0.0  ;;  %v407_v43 = vadd.f32 %v698_v41, %v834_v18  ;;  %v714_v44 = vpop.f32.mrf.mxu1 }
  0xda   : > { %560 = vst [vmem:[%s841_s26 + $0x98] sm:$0xff] %v528_v39  ;;  %v526_v45 = vmax.f32 %v450_v40, 0.0  ;;  %v471_v46 = vadd.f32 %v714_v44, %v834_v18  ;;  %v398_v47 = vpop.f32.mrf.mxu0 }
  0xdb   : > { %542 = vst [vmem:[%s841_s26 + $0x8] sm:$0xff] %v510_v42  ;;  %v515_v48 = vmax.f32 %v407_v43, 0.0  ;;  %v399_v49 = vadd.f32 %v834_v18, %v398_v47  ;;  %v462_v50 = vpop.f32.mrf.mxu1 }
  0xdc   : > { %558 = vst [vmem:[%s841_s26 + $0x88] sm:$0xff] %v526_v45  ;;  %v531_v51 = vmax.f32 %v471_v46, 0.0  ;;  %v463_v52 = vadd.f32 %v834_v18, %v462_v50  ;;  %v699_v53 = vpop.f32.mrf.mxu0 }
  0xdd   : > { %547 = vst [vmem:[%s841_s26 + $0x30] sm:$0xff] %v515_v48  ;;  %v513_v54 = vmax.f32 %v399_v49, 0.0  ;;  %v410_v55 = vadd.f32 %v699_v53, %v834_v18  ;;  %v715_v56 = vpop.f32.mrf.mxu1 }
  0xde   : > { %563 = vst [vmem:[%s841_s26 + $0xb0] sm:$0xff] %v531_v51  ;;  %v529_v57 = vmax.f32 %v463_v52, 0.0  ;;  %v474_v58 = vadd.f32 %v715_v56, %v834_v18  ;;  %v401_v59 = vpop.f32.mrf.mxu0 }
  0xdf   : > { %545 = vst [vmem:[%s841_s26 + $0x20] sm:$0xff] %v513_v54  ;;  %v516_v60 = vmax.f32 %v410_v55, 0.0  ;;  %v402_v61 = vadd.f32 %v834_v18, %v401_v59  ;;  %v465_v62 = vpop.f32.mrf.mxu1 }
  0xe0   : > { %561 = vst [vmem:[%s841_s26 + $0xa0] sm:$0xff] %v529_v57  ;;  %v532_v63 = vmax.f32 %v474_v58, 0.0  ;;  %v466_v0 = vadd.f32 %v834_v18, %v465_v62  ;;  %v702_v1 = vpop.f32.mrf.mxu0 }
  0xe1   : > { %548 = vst [vmem:[%s841_s26 + $0x38] sm:$0xff] %v516_v60  ;;  %v514_v2 = vmax.f32 %v402_v61, 0.0  ;;  %v423_v3 = vadd.f32 %v702_v1, %v834_v18  ;;  %v718_v4 = vpop.f32.mrf.mxu1 }
  0xe2   : > { %564 = vst [vmem:[%s841_s26 + $0xb8] sm:$0xff] %v532_v63  ;;  %v530_v5 = vmax.f32 %v466_v0, 0.0  ;;  %v487_v6 = vadd.f32 %v718_v4, %v834_v18  ;;  %v414_v7 = vpop.f32.mrf.mxu0 }
  0xe3   : > { %546 = vst [vmem:[%s841_s26 + $0x28] sm:$0xff] %v514_v2  ;;  %v519_v8 = vmax.f32 %v423_v3, 0.0  ;;  %v415_v9 = vadd.f32 %v834_v18, %v414_v7  ;;  %v478_v10 = vpop.f32.mrf.mxu1 }
  0xe4   : > { %562 = vst [vmem:[%s841_s26 + $0xa8] sm:$0xff] %v530_v5  ;;  %v535_v11 = vmax.f32 %v487_v6, 0.0  ;;  %v479_v12 = vadd.f32 %v834_v18, %v478_v10  ;;  %v703_v13 = vpop.f32.mrf.mxu0 }
  0xe5   : > { %551 = vst [vmem:[%s841_s26 + $0x50] sm:$0xff] %v519_v8  ;;  %v517_v14 = vmax.f32 %v415_v9, 0.0  ;;  %v426_v15 = vadd.f32 %v703_v13, %v834_v18  ;;  %v719_v16 = vpop.f32.mrf.mxu1 }
  0xe6   : > { %567 = vst [vmem:[%s841_s26 + $0xd0] sm:$0xff] %v535_v11  ;;  %v533_v17 = vmax.f32 %v479_v12, 0.0  ;;  %v490_v19 = vadd.f32 %v719_v16, %v834_v18  ;;  %v417_v20 = vpop.f32.mrf.mxu0 }
  0xe7   : > { %549 = vst [vmem:[%s841_s26 + $0x40] sm:$0xff] %v517_v14  ;;  %v520_v21 = vmax.f32 %v426_v15, 0.0  ;;  %v418_v22 = vadd.f32 %v834_v18, %v417_v20  ;;  %v481_v23 = vpop.f32.mrf.mxu1 }
  0xe8   : > { %565 = vst [vmem:[%s841_s26 + $0xc0] sm:$0xff] %v533_v17  ;;  %v536_v24 = vmax.f32 %v490_v19, 0.0  ;;  %v482_v25 = vadd.f32 %v834_v18, %v481_v23  ;;  %v706_v26 = vpop.f32.mrf.mxu0 }
  0xe9   : > { %552 = vst [vmem:[%s841_s26 + $0x58] sm:$0xff] %v520_v21  ;;  %v518_v27 = vmax.f32 %v418_v22, 0.0  ;;  %v439_v28 = vadd.f32 %v706_v26, %v834_v18  ;;  %v722_v29 = vpop.f32.mrf.mxu1 }
  0xea   : > { %568 = vst [vmem:[%s841_s26 + $0xd8] sm:$0xff] %v536_v24  ;;  %v534_v30 = vmax.f32 %v482_v25, 0.0  ;;  %v503_v31 = vadd.f32 %v722_v29, %v834_v18  ;;  %v430_v32 = vpop.f32.mrf.mxu0 }
  0xeb   : > { %550 = vst [vmem:[%s841_s26 + $0x48] sm:$0xff] %v518_v27  ;;  %v523_v33 = vmax.f32 %v439_v28, 0.0  ;;  %v431_v34 = vadd.f32 %v834_v18, %v430_v32  ;;  %v494_v35 = vpop.f32.mrf.mxu1 }
  0xec   : > { %566 = vst [vmem:[%s841_s26 + $0xc8] sm:$0xff] %v534_v30  ;;  %v539_v36 = vmax.f32 %v503_v31, 0.0  ;;  %v495_v37 = vadd.f32 %v834_v18, %v494_v35  ;;  %v707_v38 = vpop.f32.mrf.mxu0 }
  0xed   : > { %555 = vst [vmem:[%s841_s26 + $0x70] sm:$0xff] %v523_v33  ;;  %v521_v39 = vmax.f32 %v431_v34, 0.0  ;;  %v442_v40 = vadd.f32 %v707_v38, %v834_v18  ;;  %v723_v41 = vpop.f32.mrf.mxu1 }
  0xee   : > { %571 = vst [vmem:[%s841_s26 + $0xf0] sm:$0xff] %v539_v36  ;;  %v537_v42 = vmax.f32 %v495_v37, 0.0  ;;  %v506_v43 = vadd.f32 %v723_v41, %v834_v18  ;;  %v433_v44 = vpop.f32.mrf.mxu0 }
  0xef   : > { %553 = vst [vmem:[%s841_s26 + $0x60] sm:$0xff] %v521_v39  ;;  %v524_v45 = vmax.f32 %v442_v40, 0.0  ;;  %v434_v46 = vadd.f32 %v834_v18, %v433_v44  ;;  %v497_v47 = vpop.f32.mrf.mxu1 }
  0xf0   : > { %569 = vst [vmem:[%s841_s26 + $0xe0] sm:$0xff] %v537_v42  ;;  %v540_v48 = vmax.f32 %v506_v43, 0.0  ;;  %v498_v49 = vadd.f32 %v834_v18, %v497_v47 }
  0xf1   : > { %556 = vst [vmem:[%s841_s26 + $0x78] sm:$0xff] %v524_v45  ;;  %v522_v50 = vmax.f32 %v434_v46, 0.0 }
  0xf2   : > { %572 = vst [vmem:[%s841_s26 + $0xf8] sm:$0xff] %v540_v48  ;;  %v538_v51 = vmax.f32 %v498_v49, 0.0 }
  0xf3   : > { %554 = vst [vmem:[%s841_s26 + $0x68] sm:$0xff] %v522_v50 }
  0xf4   : > { %570 = vst [vmem:[%s841_s26 + $0xe8] sm:$0xff] %v538_v51 }
  0xf5 PF: > { %s13_s12 = sadd.s32 1, %s758_s12  }
  0xf6   : > { %p10_p4 = scmp.ge.s32.totalorder %s13_s12, 4  }
  0xf8   :  { %12 = sbr.rel (!%p10_p4) target bundleno = 1 (0x1), region = 62 }

// kernel: run.120
= control target key start
LH: loop header
LB: loop body
LE: loop exit
PB: predicated region body
PF: predicated region fallthrough
CT: control target
= control target key end

     0   :  { %s2123_s21 = smov 0   ;;  %s2398_s0 = inlined_call_operand.vmem [shape: bf16[512,72], index: 0, kind: input, shape index: {}]   ;;  %s2399_s1 = inlined_call_operand.vmem [shape: bf16[72,128], index: 1, kind: input, shape index: {}]   ;;  %s2400_s2 = inlined_call_operand.vmem [shape: f32[1,128], index: 2, kind: input, shape index: {}]   ;;  %s2401_s3 = inlined_call_operand.vmem [shape: f32[512,1], index: 3, kind: input, shape index: {}]   ;;  %s2402_s4 = inlined_call_operand.vmem [shape: f32[512,1], index: 4, kind: input, shape index: {}]   ;;  %s2403_s5 = inlined_call_operand.vmem [shape: f32[512,128], index: 5, kind: output, shape index: {0}]   ;;  %s2404_s6 = inlined_call_operand.vmem [shape: f32[512,128], index: 6, kind: output, shape index: {1}]  }
   0x1 LB: > { %s1597_s22 = sadd.s32 4294967295, %s2085_s21   ;;  %p1601_p0 = scmp.ge.s32.totalorder %s2085_s21, 1  ;;  %s2085_s21 = sphi %s2123_s21, %s17_s21  }
   0x2   : > { %p238_p1 = scmp.lt.s32.totalorder %s2085_s21, 3 }
   0x4   : > { %p239_p2 = pnand %p1601_p0, %p238_p1 }
   0x5   : > { %s1602_s27 = sshll.u32 (!%p239_p2), %s1597_s22, 5 }
   0x6   : > { %242 = sbr.rel (%p239_p2) target bundleno = 301 (0x12d), region = 40  ;;  %p284_p3 = scmp.lt.s32.totalorder (!%p239_p2), %s1602_s27, 63 }
   0xb   : > { %v1802_v0 = vld [vmem:[%s2399_s1 + $0x20] ss:$0 sps:$4 sm:$0xff]   ;;  %vm518_vm0 = vcmask 1043456   ;;  %v1803_v1 = vld [vmem:[%s2399_s1 + $0x18] sm:$0xff]   ;;  %v1804_v3 = vld [vmem:[%s2399_s1 + $0x10] sm:$0xff]   ;;  %v2087_v4 = vmov 0  }
   0xc   : > { %1789 = vmatprep.subr.msk.bf16.mxu0 %vm518_vm0, %v1802_v0  ;;  %1790 = vmatprep.subr.msk.bf16.mxu1 %vm518_vm0, %v1802_v0  ;;  %v520_v2 = vsel %vm518_vm0, %v1802_v0, 0  ;;  %s2406_s27 = smov (!%p284_p3, %s1602_s27), 63  ;;  %v1805_v5 = vld [vmem:[%s2399_s1 + $0x8] sm:$0xff]   ;;  %vm469_vm1 = vcmask 588800   ;;  %v1806_v8 = vld [vmem:[%s2399_s1] sm:$0xff]  }
   0xd   : > { %1738 = vmatpush3.bf16.msra.mxu0 %v520_v2  ;;  %1784 = vmatpush3.bf16.msra.mxu1 %v520_v2  ;;  %s1603_s8 = sshll.u32 %s2406_s27, 2  ;;  %s2155_s14 = sshll.u32 %s2406_s27, 3 }
   0xe   : > { %1739 = vmatprep.subr.bf16.mxu0 %v1803_v1  ;;  %1780 = vmatprep.subr.bf16.mxu1 %v1803_v1  ;;  %s2146_s11 = scalar_lea.vmem %s2398_s0, %s1603_s8  ;;  %s2164_s17 = scalar_lea.vmem %s2401_s3, %s2155_s14 }
   0xf   : > { %1801 = vset.pattern.permute.xlu1 %v2087_v4  ;;  %1800 = vset.pattern.permute.xlu0 %v2087_v4  ;;  %v1807_v6 = vld [vmem:[%s2146_s11] sm:$0xff]   ;;  %v1809_v9 = vld [vmem:[%s2146_s11 + $0x8] sm:$0xff]   ;;  %v1811_v11 = vld [vmem:[%s2146_s11 + $0x10] sm:$0xff]   ;;  %s2170_s20 = scalar_lea.vmem %s2402_s4, %s2155_s14  ;;  %s2276_s26 = scalar_lea.vmem %s2403_s5, %s2155_s14 }
  0x10   : > { %v1808_v7 = vld [vmem:[%s2146_s11 + $0x40] sm:$0xff]   ;;  %1747 = vmatprep.mubr.msk.bf16.mxu0 %vm469_vm1, %v1807_v6  ;;  %v1810_v10 = vld [vmem:[%s2146_s11 + $0x48] sm:$0xff]   ;;  %v1812_v12 = vld [vmem:[%s2146_s11 + $0x50] sm:$0xff]   ;;  %s2283_s29 = scalar_lea.vmem %s2404_s6, %s2155_s14 }
  0x11   : > { %1740 = vmatpush3.bf16.msra.mxu0 %v1803_v1  ;;  %1785 = vmatpush3.bf16.msra.mxu1 %v1803_v1  ;;  %v717_v13 = vld [vmem:[%s2164_s17 + $0x10] sm:$0xff]  ;;  %v715_v15 = vld [vmem:[%s2164_s17] sm:$0xff]  ;;  %v718_v20 = vld [vmem:[%s2164_s17 + $0x18] sm:$0xff] }
  0x12   : > { %1741 = vmatprep.subr.bf16.mxu0 %v1804_v3  ;;  %1781 = vmatprep.subr.bf16.mxu1 %v1804_v3  ;;  %v941_v14 = vld [vmem:[%s2170_s20 + $0x10] sm:$0xff]  ;;  %v1652_v16 = vmul.f32 -1.442695, %v717_v13  ;;  %v1650_v18 = vmul.f32 -1.442695, %v715_v15  ;;  %v939_v19 = vld [vmem:[%s2170_s20] sm:$0xff] }
  0x13   : > { %1763 = vmatprep.mubr.msk.bf16.mxu1 %vm469_vm1, %v1808_v7  ;;  %v1684_v17 = vmul.f32 -1.442695, %v941_v14  ;;  %v942_v21 = vld [vmem:[%s2170_s20 + $0x18] sm:$0xff]  ;;  %v1682_v24 = vmul.f32 -1.442695, %v939_v19  ;;  %v716_v27 = vld [vmem:[%s2164_s17 + $0x8] sm:$0xff] }
  0x14   : > { %v1813_v22 = vld [vmem:[%s2146_s11 + $0x18] sm:$0xff]   ;;  %1823 = vpow2.f32 %v1652_v16  ;;  %v1653_v25 = vmul.f32 -1.442695, %v718_v20  ;;  %v1685_v26 = vmul.f32 -1.442695, %v942_v21  ;;  %v940_v28 = vld [vmem:[%s2170_s20 + $0x8] sm:$0xff] }
  0x15   : > { %1742 = vmatpush3.bf16.msra.mxu0 %v1804_v3  ;;  %1786 = vmatpush3.bf16.msra.mxu1 %v1804_v3  ;;  %v1814_v23 = vld [vmem:[%s2146_s11 + $0x58] sm:$0xff]   ;;  %1825 = vpow2.f32 %v1684_v17  ;;  %v1815_v29 = vld [vmem:[%s2146_s11 + $0x20] sm:$0xff]   ;;  %v1651_v31 = vmul.f32 -1.442695, %v716_v27  ;;  %v1683_v32 = vmul.f32 -1.442695, %v940_v28 }
  0x16   : > { %1743 = vmatprep.subr.bf16.mxu0 %v1805_v5  ;;  %1782 = vmatprep.subr.bf16.mxu1 %v1805_v5  ;;  %v1816_v30 = vld [vmem:[%s2146_s11 + $0x60] sm:$0xff]   ;;  %1827 = vpow2.f32 %v1650_v18  ;;  %v720_v33 = vld [vmem:[%s2164_s17 + $0x28] sm:$0xff]  ;;  %v722_v41 = vld [vmem:[%s2164_s17 + $0x38] sm:$0xff] }
  0x17   : > { %1829 = vpow2.f32 %v1682_v24  ;;  %v944_v34 = vld [vmem:[%s2170_s20 + $0x28] sm:$0xff]  ;;  %v1655_v35 = vmul.f32 -1.442695, %v720_v33  ;;  %v719_v37 = vld [vmem:[%s2164_s17 + $0x20] sm:$0xff]  ;;  %v946_v42 = vld [vmem:[%s2170_s20 + $0x38] sm:$0xff] }
  0x18   : > { %1831 = vpow2.f32 %v1653_v25  ;;  %v1687_v36 = vmul.f32 -1.442695, %v944_v34  ;;  %v943_v38 = vld [vmem:[%s2170_s20 + $0x20] sm:$0xff]  ;;  %v1654_v39 = vmul.f32 -1.442695, %v719_v37  ;;  %v1817_v43 = vld [vmem:[%s2146_s11 + $0x28] sm:$0xff]  }
  0x19   : > { %1744 = vmatpush3.bf16.msra.mxu0 %v1805_v5  ;;  %1787 = vmatpush3.bf16.msra.mxu1 %v1805_v5  ;;  %1833 = vpow2.f32 %v1685_v26  ;;  %v1686_v40 = vmul.f32 -1.442695, %v943_v38  ;;  %v1818_v44 = vld [vmem:[%s2146_s11 + $0x68] sm:$0xff]   ;;  %v1657_v45 = vmul.f32 -1.442695, %v722_v41  ;;  %v721_v46 = vld [vmem:[%s2164_s17 + $0x30] sm:$0xff] }
  0x1a   : > { %1745 = vmatprep.subr.bf16.mxu0 %v1806_v8  ;;  %1783 = vmatprep.subr.bf16.mxu1 %v1806_v8  ;;  %1835 = vpow2.f32 %v1651_v31  ;;  %v1819_v47 = vld [vmem:[%s2146_s11 + $0x30] sm:$0xff]   ;;  %v1689_v49 = vmul.f32 -1.442695, %v946_v42  ;;  %v1656_v50 = vmul.f32 -1.442695, %v721_v46  ;;  %v1821_v60 = vld [vmem:[%s2146_s11 + $0x38] sm:$0xff]  }
  0x1b   : > { %1837 = vpow2.f32 %v1683_v32  ;;  %v1820_v48 = vld [vmem:[%s2146_s11 + $0x70] sm:$0xff]   ;;  %v1822_v61 = vld [vmem:[%s2146_s11 + $0x78] sm:$0xff]   ;;  %v724_v14 = vld [vmem:[%s2164_s17 + $0x48] sm:$0xff] }
  0x1c   : > { %1839 = vpow2.f32 %v1655_v35  ;;  %v945_v62 = vld [vmem:[%s2170_s20 + $0x30] sm:$0xff]  ;;  %v948_v17 = vld [vmem:[%s2170_s20 + $0x48] sm:$0xff]  ;;  %v723_v20 = vld [vmem:[%s2164_s17 + $0x40] sm:$0xff] }
  0x1d   : > { %1746 = vmatpush3.bf16.msra.mxu0 %v1806_v8  ;;  %1788 = vmatpush3.bf16.msra.mxu1 %v1806_v8  ;;  %1841 = vpow2.f32 %v1687_v36  ;;  %v1688_v5 = vmul.f32 -1.442695, %v945_v62  ;;  %v947_v24 = vld [vmem:[%s2170_s20 + $0x40] sm:$0xff]  ;;  %v1691_v27 = vmul.f32 -1.442695, %v948_v17  ;;  %v726_v28 = vld [vmem:[%s2164_s17 + $0x58] sm:$0xff] }
  0x1e   : > { %1843 = vpow2.f32 %v1654_v39  ;;  %v950_v31 = vld [vmem:[%s2170_s20 + $0x58] sm:$0xff]  ;;  %v1690_v34 = vmul.f32 -1.442695, %v947_v24  ;;  %v725_v35 = vld [vmem:[%s2164_s17 + $0x50] sm:$0xff]  ;;  %v1661_v37 = vmul.f32 -1.442695, %v726_v28 }
  0x1f   : > { %1845 = vpow2.f32 %v1686_v40  ;;  %v949_v38 = vld [vmem:[%s2170_s20 + $0x50] sm:$0xff]  ;;  %v1693_v41 = vmul.f32 -1.442695, %v950_v31 }
  0x20   : > { %1748 = vmatmul.mubr.msk.bf16.vlgmr.msra.gmra.mxu0 %vm469_vm1, %v1809_v9  ;;  %1764 = vmatmul.mubr.msk.bf16.vlgmr.msra.gmra.mxu1 %vm469_vm1, %v1810_v10  ;;  %1847 = vpow2.f32 %v1657_v45 }
  0x21   : > { %1751 = vmatprep.mubr.msk.bf16.mxu0 %vm469_vm1, %v1811_v11  ;;  %1767 = vmatprep.mubr.msk.bf16.mxu1 %vm469_vm1, %v1812_v12  ;;  %v1824_v51 = vpop.eup %1823  ;;  %1849 = vpow2.f32 %v1689_v49 }
  0x22   : > { %v1826_v52 = vpop.eup %1825  ;;  %v845_v53 = vadd.f32 1.0, %v1824_v51  ;;  %1851 = vpow2.f32 %v1656_v50  ;;  %v727_v50 = vld [vmem:[%s2164_s17 + $0x60] sm:$0xff] }
  0x23   : > { %v1828_v54 = vpop.eup %1827  ;;  %v1069_v55 = vadd.f32 1.0, %v1826_v52 }
  0x24   : > { %v1830_v56 = vpop.eup %1829  ;;  %1853 = vrcp.f32 %v845_v53  ;;  %v843_v57 = vadd.f32 1.0, %v1828_v54  ;;  %v951_v54 = vld [vmem:[%s2170_s20 + $0x60] sm:$0xff] }
  0x25   : > { %v1832_v58 = vpop.eup %1831  ;;  %1855 = vrcp.f32 %v1069_v55  ;;  %v1067_v59 = vadd.f32 1.0, %v1830_v56 }
  0x26   : > { %v1834_v63 = vpop.eup %1833  ;;  %1857 = vrcp.f32 %v843_v57  ;;  %v846_v0 = vadd.f32 1.0, %v1832_v58  ;;  %v730_v58 = vld [vmem:[%s2164_s17 + $0x78] sm:$0xff] }
  0x27   : > { %v1836_v1 = vpop.eup %1835  ;;  %1859 = vrcp.f32 %v1067_v59  ;;  %v1070_v2 = vadd.f32 1.0, %v1834_v63 }
  0x28   : > { %1752 = vmatmul.mubr.msk.bf16.gmra.mxu0 %vm469_vm1, %v1813_v22  ;;  %1768 = vmatmul.mubr.msk.bf16.gmra.mxu1 %vm469_vm1, %v1814_v23  ;;  %v1838_v3 = vpop.eup %1837  ;;  %1861 = vrcp.f32 %v846_v0  ;;  %v844_v4 = vadd.f32 1.0, %v1836_v1  ;;  %v1659_v23 = vmul.f32 -1.442695, %v724_v14  ;;  %v1694_v0 = vmul.f32 -1.442695, %v951_v54  ;;  %v729_v1 = vld [vmem:[%s2164_s17 + $0x70] sm:$0xff] }
  0x29   : > { %1755 = vmatprep.mubr.msk.bf16.mxu0 %vm469_vm1, %v1815_v29  ;;  %1771 = vmatprep.mubr.msk.bf16.mxu1 %vm469_vm1, %v1816_v30  ;;  %1863 = vrcp.f32 %v1070_v2  ;;  %v1068_v6 = vadd.f32 1.0, %v1838_v3  ;;  %v1840_v7 = vpop.eup %1839  ;;  %v1658_v30 = vmul.f32 -1.442695, %v723_v20  ;;  %v1665_v3 = vmul.f32 -1.442695, %v730_v58  ;;  %v953_v20 = vld [vmem:[%s2170_s20 + $0x70] sm:$0xff] }
  0x2a   : > { %1865 = vrcp.f32 %v844_v4  ;;  %v1842_v8 = vpop.eup %1841  ;;  %v848_v9 = vadd.f32 1.0, %v1840_v7 }
  0x2b   : > { %1867 = vrcp.f32 %v1068_v6  ;;  %v1844_v10 = vpop.eup %1843  ;;  %v1072_v11 = vadd.f32 1.0, %v1842_v8  ;;  %v1664_v8 = vmul.f32 -1.442695, %v729_v1 }
  0x2c   : > { %1869 = vpow2.f32 %v1688_v5  ;;  %v1846_v12 = vpop.eup %1845  ;;  %v847_v13 = vadd.f32 1.0, %v1844_v10 }
  0x2d   : > { %1871 = vrcp.f32 %v848_v9  ;;  %v1848_v15 = vpop.eup %1847  ;;  %v1071_v16 = vadd.f32 1.0, %v1846_v12 }
  0x2e   : > { %1873 = vrcp.f32 %v1072_v11  ;;  %v1850_v18 = vpop.eup %1849  ;;  %v850_v19 = vadd.f32 1.0, %v1848_v15 }
  0x2f   : > { %1875 = vrcp.f32 %v847_v13  ;;  %v1852_v21 = vpop.eup %1851  ;;  %v1074_v22 = vadd.f32 1.0, %v1850_v18 }
  0x30   : > { %1756 = vmatmul.mubr.msk.bf16.gmra.mxu0 %vm469_vm1, %v1817_v43  ;;  %1772 = vmatmul.mubr.msk.bf16.gmra.mxu1 %vm469_vm1, %v1818_v44  ;;  %1877 = vrcp.f32 %v1071_v16  ;;  %v849_v26 = vadd.f32 1.0, %v1852_v21  ;;  %v1660_v43 = vmul.f32 -1.442695, %v725_v35  ;;  %v728_v44 = vld [vmem:[%s2164_s17 + $0x68] sm:$0xff] }
  0x31   : > { %1759 = vmatprep.mubr.msk.bf16.mxu0 %vm469_vm1, %v1819_v47  ;;  %1775 = vmatprep.mubr.msk.bf16.mxu1 %vm469_vm1, %v1820_v48  ;;  %v1854_v25 = vpop.eup %1853  ;;  %1879 = vrcp.f32 %v850_v19  ;;  %v1692_v47 = vmul.f32 -1.442695, %v949_v38  ;;  %v952_v48 = vld [vmem:[%s2170_s20 + $0x68] sm:$0xff]  ;;  %v1663_v53 = vmul.f32 -1.442695, %v728_v44  ;;  %v731_v44 = vld [vmem:[%s2164_s17 + $0x80] sm:$0xff] }
  0x32   : > { %v1856_v29 = vpop.eup %1855  ;;  %1881 = vrcp.f32 %v1074_v22  ;;  %v1695_v57 = vmul.f32 -1.442695, %v952_v48  ;;  %v732_v38 = vld [vmem:[%s2164_s17 + $0x88] sm:$0xff]  ;;  %v955_v48 = vld [vmem:[%s2170_s20 + $0x80] sm:$0xff]  ;;  %v1666_v54 = vmul.f32 -1.442695, %v731_v44 }
  0x33   : > { %v1858_v32 = vpop.eup %1857  ;;  %v1165_v33 = vmul.f32 %v1856_v29, %v1854_v25  ;;  %1883 = vrcp.f32 %v849_v26  ;;  %v1698_v58 = vmul.f32 -1.442695, %v955_v48  ;;  %v961_v44 = vld [vmem:[%s2170_s20 + $0xb0] sm:$0xff] }
  0x34   : > { %v1860_v36 = vpop.eup %1859  ;;  %1885 = vpow2.f32 %v1659_v23 }
  0x35   : > { %v1862_v39 = vpop.eup %1861  ;;  %1207 = vperm.xlu1 %1801, %v1165_v33   ;;  %v1163_v40 = vmul.f32 %v1860_v36, %v1858_v32  ;;  %1887 = vpow2.f32 %v1691_v27  ;;  %v1696_v27 = vmul.f32 -1.442695, %v953_v20 }
  0x36   : > { %v1864_v42 = vpop.eup %1863  ;;  %1889 = vpow2.f32 %v1658_v30 }
  0x37   : > { %v1866_v45 = vpop.eup %1865  ;;  %1197 = vperm.xlu0 %1800, %v1163_v40   ;;  %v1166_v46 = vmul.f32 %v1864_v42, %v1862_v39  ;;  %1891 = vpow2.f32 %v1690_v34 }
  0x38   : > { %1760 = vmatmul.mubr.msk.bf16.gmra.mxu0 %vm469_vm1, %v1821_v60  ;;  %1776 = vmatmul.mubr.msk.bf16.gmra.mxu1 %vm469_vm1, %v1822_v61  ;;  %v1868_v49 = vpop.eup %1867  ;;  %1893 = vpow2.f32 %v1661_v37  ;;  %v1662_v60 = vmul.f32 -1.442695, %v727_v50  ;;  %v954_v61 = vld [vmem:[%s2170_s20 + $0x78] sm:$0xff] }
  0x39   : > { %v1870_v51 = vpop.eup %1869  ;;  %1212 = vperm.xlu1 %1801, %v1166_v46   ;;  %v1164_v52 = vmul.f32 %v1868_v49, %v1866_v45  ;;  %1895 = vpow2.f32 %v1693_v41  ;;  %v1697_v6 = vmul.f32 -1.442695, %v954_v61  ;;  %v956_v41 = vld [vmem:[%s2170_s20 + $0x88] sm:$0xff] }
  0x3a   : > { %v1872_v55 = vpop.eup %1871  ;;  %v1073_v56 = vadd.f32 1.0, %v1870_v51  ;;  %1897 = vpow2.f32 %v1660_v43  ;;  %v1699_v51 = vmul.f32 -1.442695, %v956_v41 }
  0x3b   : > { %v1874_v59 = vpop.eup %1873  ;;  %1202 = vperm.xlu0 %1800, %v1164_v52   ;;  %1899 = vpow2.f32 %v1692_v47  ;;  %v1667_v47 = vmul.f32 -1.442695, %v732_v38  ;;  %v734_v52 = vld [vmem:[%s2164_s17 + $0x98] sm:$0xff] }
  0x3c   : > { %v1876_v62 = vpop.eup %1875  ;;  %v1168_v63 = vmul.f32 %v1874_v59, %v1872_v55  ;;  %1901 = vrcp.f32 %v1073_v56  ;;  %v958_v55 = vld [vmem:[%s2170_s20 + $0x98] sm:$0xff]  ;;  %v733_v59 = vld [vmem:[%s2164_s17 + $0x90] sm:$0xff]  ;;  %v1669_v61 = vmul.f32 -1.442695, %v734_v52 }
  0x3d   : > { %v1878_v2 = vpop.eup %1877  ;;  %1903 = vpow2.f32 %v1663_v53  ;;  %v1701_v1 = vmul.f32 -1.442695, %v958_v55 }
  0x3e   : > { %v1880_v4 = vpop.eup %1879  ;;  %1222 = vperm.xlu1 %1801, %v1168_v63   ;;  %v1167_v5 = vmul.f32 %v1878_v2, %v1876_v62  ;;  %1905 = vpow2.f32 %v1695_v57  ;;  %v957_v62 = vld [vmem:[%s2170_s20 + $0x90] sm:$0xff] }
  0x3f   : > { %v1882_v7 = vpop.eup %1881  ;;  %1907 = vpow2.f32 %v1662_v60 }
  0x40   : > { %v1884_v9 = vpop.eup %1883  ;;  %1217 = vperm.xlu0 %1800, %v1167_v5   ;;  %v1170_v10 = vmul.f32 %v1882_v7, %v1880_v4  ;;  %1909 = vpow2.f32 %v1694_v0  ;;  %v736_v4 = vld [vmem:[%s2164_s17 + $0xa8] sm:$0xff]  ;;  %v1700_v7 = vmul.f32 -1.442695, %v957_v62 }
  0x41   : > { %v1886_v11 = vpop.eup %1885  ;;  %1911 = vpow2.f32 %v1665_v3  ;;  %v1668_v3 = vmul.f32 -1.442695, %v733_v59  ;;  %v740_v62 = vld [vmem:[%s2164_s17 + $0xc8] sm:$0xff] }
  0x42   : > { %v1888_v12 = vpop.eup %1887  ;;  %1232 = vperm.xlu1 %1801, %v1170_v10   ;;  %v852_v13 = vadd.f32 1.0, %v1886_v11  ;;  %1913 = vpow2.f32 %v1697_v6  ;;  %v735_v10 = vld [vmem:[%s2164_s17 + $0xa0] sm:$0xff] }
  0x43   : > { %v1890_v14 = vpop.eup %1889  ;;  %v1076_v15 = vadd.f32 1.0, %v1888_v12  ;;  %1915 = vpow2.f32 %v1664_v8  ;;  %v960_v8 = vld [vmem:[%s2170_s20 + $0xa8] sm:$0xff]  ;;  %v1670_v20 = vmul.f32 -1.442695, %v735_v10 }
  0x44   : > { %v1892_v16 = vpop.eup %1891  ;;  %1917 = vrcp.f32 %v852_v13  ;;  %v851_v17 = vadd.f32 1.0, %v1890_v14  ;;  %v1671_v13 = vmul.f32 -1.442695, %v736_v4  ;;  %v959_v14 = vld [vmem:[%s2170_s20 + $0xa0] sm:$0xff] }
  0x45   : > { %v1894_v18 = vpop.eup %1893  ;;  %1919 = vrcp.f32 %v1076_v15  ;;  %v1075_v19 = vadd.f32 1.0, %v1892_v16  ;;  %v739_v4 = vld [vmem:[%s2164_s17 + $0xc0] sm:$0xff] }
  0x46   : > { %v1896_v21 = vpop.eup %1895  ;;  %1921 = vrcp.f32 %v851_v17  ;;  %v854_v22 = vadd.f32 1.0, %v1894_v18  ;;  %v1703_v17 = vmul.f32 -1.442695, %v960_v8  ;;  %v738_v18 = vld [vmem:[%s2164_s17 + $0xb8] sm:$0xff]  ;;  %v963_v8 = vld [vmem:[%s2170_s20 + $0xc0] sm:$0xff] }
  0x47   : > { %v1898_v23 = vpop.eup %1897  ;;  %1923 = vrcp.f32 %v1075_v19  ;;  %v1078_v24 = vadd.f32 1.0, %v1896_v21  ;;  %v962_v21 = vld [vmem:[%s2170_s20 + $0xb8] sm:$0xff] }
  0x48   : > { %v1900_v25 = vpop.eup %1899  ;;  %1925 = vrcp.f32 %v854_v22  ;;  %v853_v26 = vadd.f32 1.0, %v1898_v23 }
  0x49   : > { %v1902_v28 = vpop.eup %1901  ;;  %1927 = vrcp.f32 %v1078_v24  ;;  %v1077_v29 = vadd.f32 1.0, %v1900_v25  ;;  %v1702_v24 = vmul.f32 -1.442695, %v959_v14  ;;  %v737_v25 = vld [vmem:[%s2164_s17 + $0xb0] sm:$0xff]  ;;  %v1674_v14 = vmul.f32 -1.442695, %v739_v4 }
  0x4a   : > { %v1904_v30 = vpop.eup %1903  ;;  %v1169_v31 = vmul.f32 %v1902_v28, %v1884_v9  ;;  %1929 = vrcp.f32 %v853_v26  ;;  %v969_v4 = vld [vmem:[%s2170_s20 + $0xf0] sm:$0xff] }
  0x4b   : > { %v1906_v32 = vpop.eup %1905  ;;  %1931 = vrcp.f32 %v1077_v29  ;;  %v856_v33 = vadd.f32 1.0, %v1904_v30  ;;  %v1705_v30 = vmul.f32 -1.442695, %v962_v21 }
  0x4c   : > { %v1908_v34 = vpop.eup %1907  ;;  %1227 = vperm.xlu0 %1800, %v1169_v31   ;;  %v1080_v35 = vadd.f32 1.0, %v1906_v32  ;;  %1933 = vpow2.f32 %v1696_v27  ;;  %v1673_v27 = vmul.f32 -1.442695, %v738_v18  ;;  %v1672_v32 = vmul.f32 -1.442695, %v737_v25 }
  0x4d   : > { %v1910_v36 = vpop.eup %1909  ;;  %1935 = vrcp.f32 %v856_v33  ;;  %v855_v37 = vadd.f32 1.0, %v1908_v34  ;;  %v1706_v18 = vmul.f32 -1.442695, %v963_v8 }
  0x4e   : > { %v1912_v39 = vpop.eup %1911  ;;  %1937 = vrcp.f32 %v1080_v35  ;;  %v1079_v40 = vadd.f32 1.0, %v1910_v36 }
  0x4f   : > { %v1914_v42 = vpop.eup %1913  ;;  %1939 = vrcp.f32 %v855_v37  ;;  %v858_v43 = vadd.f32 1.0, %v1912_v39 }
  0x50   : > { %v1916_v45 = vpop.eup %1915  ;;  %1941 = vrcp.f32 %v1079_v40  ;;  %v1082_v46 = vadd.f32 1.0, %v1914_v42 }
  0x51   : > { %v1918_v49 = vpop.eup %1917  ;;  %1943 = vrcp.f32 %v858_v43  ;;  %v857_v50 = vadd.f32 1.0, %v1916_v45 }
  0x52   : > { %v1920_v53 = vpop.eup %1919  ;;  %1945 = vrcp.f32 %v1082_v46 }
  0x53   : > { %v1922_v56 = vpop.eup %1921  ;;  %v1172_v57 = vmul.f32 %v1920_v53, %v1918_v49  ;;  %1947 = vrcp.f32 %v857_v50 }
  0x54   : > { %v1924_v60 = vpop.eup %1923  ;;  %1949 = vpow2.f32 %v1667_v47 }
  0x55   : > { %v1926_v63 = vpop.eup %1925  ;;  %1242 = vperm.xlu1 %1801, %v1172_v57   ;;  %v1171_v0 = vmul.f32 %v1924_v60, %v1922_v56  ;;  %1951 = vpow2.f32 %v1699_v51  ;;  %v1704_v51 = vmul.f32 -1.442695, %v961_v44 }
  0x56   : > { %v1928_v2 = vpop.eup %1927  ;;  %1953 = vpow2.f32 %v1666_v54 }
  0x57   : > { %v1930_v5 = vpop.eup %1929  ;;  %1237 = vperm.xlu0 %1800, %v1171_v0   ;;  %v1174_v6 = vmul.f32 %v1928_v2, %v1926_v63  ;;  %1955 = vpow2.f32 %v1698_v58 }
  0x58   : > { %v1932_v9 = vpop.eup %1931  ;;  %1957 = vpow2.f32 %v1669_v61 }
  0x59   : > { %v1934_v11 = vpop.eup %1933  ;;  %1252 = vperm.xlu1 %1801, %v1174_v6   ;;  %v1173_v12 = vmul.f32 %v1932_v9, %v1930_v5  ;;  %1959 = vpow2.f32 %v1701_v1  ;;  %v964_v1 = vld [vmem:[%s2170_s20 + $0xc8] sm:$0xff] }
  0x5a   : > { %v1936_v15 = vpop.eup %1935  ;;  %v1081_v16 = vadd.f32 1.0, %v1934_v11  ;;  %1961 = vpow2.f32 %v1668_v3  ;;  %v1707_v11 = vmul.f32 -1.442695, %v964_v1 }
  0x5b   : > { %v1938_v19 = vpop.eup %1937  ;;  %1247 = vperm.xlu0 %1800, %v1173_v12   ;;  %1963 = vpow2.f32 %v1700_v7  ;;  %v1675_v7 = vmul.f32 -1.442695, %v740_v62  ;;  %v742_v12 = vld [vmem:[%s2164_s17 + $0xd8] sm:$0xff] }
  0x5c   : > { %v1940_v22 = vpop.eup %1939  ;;  %v1176_v23 = vmul.f32 %v1938_v19, %v1936_v15  ;;  %1965 = vrcp.f32 %v1081_v16  ;;  %v966_v15 = vld [vmem:[%s2170_s20 + $0xd8] sm:$0xff]  ;;  %v741_v19 = vld [vmem:[%s2164_s17 + $0xd0] sm:$0xff]  ;;  %v1677_v21 = vmul.f32 -1.442695, %v742_v12 }
  0x5d   : > { %v1942_v26 = vpop.eup %1941  ;;  %1967 = vpow2.f32 %v1671_v13  ;;  %v1709_v25 = vmul.f32 -1.442695, %v966_v15 }
  0x5e   : > { %v1944_v28 = vpop.eup %1943  ;;  %1262 = vperm.xlu1 %1801, %v1176_v23   ;;  %v1175_v29 = vmul.f32 %v1942_v26, %v1940_v22  ;;  %1969 = vpow2.f32 %v1703_v17  ;;  %v965_v22 = vld [vmem:[%s2170_s20 + $0xd0] sm:$0xff] }
  0x5f   : > { %v1946_v31 = vpop.eup %1945  ;;  %1971 = vpow2.f32 %v1670_v20 }
  0x60   : > { %v1948_v33 = vpop.eup %1947  ;;  %1257 = vperm.xlu0 %1800, %v1175_v29   ;;  %v1178_v34 = vmul.f32 %v1946_v31, %v1944_v28  ;;  %1973 = vpow2.f32 %v1702_v24  ;;  %v744_v28 = vld [vmem:[%s2164_s17 + $0xe8] sm:$0xff]  ;;  %v1708_v31 = vmul.f32 -1.442695, %v965_v22 }
  0x61   : > { %v1950_v35 = vpop.eup %1949  ;;  %1975 = vpow2.f32 %v1673_v27  ;;  %v1676_v27 = vmul.f32 -1.442695, %v741_v19 }
  0x62   : > { %v1952_v36 = vpop.eup %1951  ;;  %1272 = vperm.xlu1 %1801, %v1178_v34   ;;  %v860_v37 = vadd.f32 1.0, %v1950_v35  ;;  %1977 = vpow2.f32 %v1705_v30  ;;  %v743_v34 = vld [vmem:[%s2164_s17 + $0xe0] sm:$0xff] }
  0x63   : > { %v1954_v38 = vpop.eup %1953  ;;  %v1084_v39 = vadd.f32 1.0, %v1952_v36  ;;  %1979 = vpow2.f32 %v1672_v32  ;;  %v968_v32 = vld [vmem:[%s2170_s20 + $0xe8] sm:$0xff]  ;;  %v1678_v44 = vmul.f32 -1.442695, %v743_v34 }
  0x64   : > { %v1956_v40 = vpop.eup %1955  ;;  %1981 = vrcp.f32 %v860_v37  ;;  %v859_v41 = vadd.f32 1.0, %v1954_v38  ;;  %v1679_v37 = vmul.f32 -1.442695, %v744_v28  ;;  %v967_v38 = vld [vmem:[%s2170_s20 + $0xe0] sm:$0xff] }
  0x65   : > { %v1958_v42 = vpop.eup %1957  ;;  %1983 = vrcp.f32 %v1084_v39  ;;  %v1083_v43 = vadd.f32 1.0, %v1956_v40 }
  0x66   : > { %v1960_v45 = vpop.eup %1959  ;;  %1985 = vrcp.f32 %v859_v41  ;;  %v862_v46 = vadd.f32 1.0, %v1958_v42  ;;  %v1711_v41 = vmul.f32 -1.442695, %v968_v32  ;;  %v746_v42 = vld [vmem:[%s2164_s17 + $0xf8] sm:$0xff] }
  0x67   : > { %v1962_v47 = vpop.eup %1961  ;;  %1987 = vrcp.f32 %v1083_v43  ;;  %v1086_v48 = vadd.f32 1.0, %v1960_v45  ;;  %v970_v45 = vld [vmem:[%s2170_s20 + $0xf8] sm:$0xff] }
  0x68   : > { %v1964_v49 = vpop.eup %1963  ;;  %1989 = vrcp.f32 %v862_v46  ;;  %v861_v50 = vadd.f32 1.0, %v1962_v47 }
  0x69   : > { %v1966_v52 = vpop.eup %1965  ;;  %1991 = vrcp.f32 %v1086_v48  ;;  %v1085_v53 = vadd.f32 1.0, %v1964_v49  ;;  %v1710_v48 = vmul.f32 -1.442695, %v967_v38  ;;  %v745_v49 = vld [vmem:[%s2164_s17 + $0xf0] sm:$0xff] }
  0x6a   : > { %v1968_v54 = vpop.eup %1967  ;;  %v1177_v55 = vmul.f32 %v1966_v52, %v1948_v33  ;;  %1993 = vrcp.f32 %v861_v50 }
  0x6b   : > { %v1970_v56 = vpop.eup %1969  ;;  %1995 = vrcp.f32 %v1085_v53  ;;  %v864_v57 = vadd.f32 1.0, %v1968_v54  ;;  %v1713_v54 = vmul.f32 -1.442695, %v970_v45 }
  0x6c   : > { %v1972_v58 = vpop.eup %1971  ;;  %1267 = vperm.xlu0 %1800, %v1177_v55   ;;  %v1088_v59 = vadd.f32 1.0, %v1970_v56  ;;  %1997 = vpow2.f32 %v1704_v51  ;;  %v1681_v51 = vmul.f32 -1.442695, %v746_v42  ;;  %v1680_v56 = vmul.f32 -1.442695, %v745_v49 }
  0x6d   : > { %v1974_v60 = vpop.eup %1973  ;;  %1999 = vrcp.f32 %v864_v57  ;;  %v863_v61 = vadd.f32 1.0, %v1972_v58 }
  0x6e   : > { %v1976_v63 = vpop.eup %1975  ;;  %2001 = vrcp.f32 %v1088_v59  ;;  %v1087_v0 = vadd.f32 1.0, %v1974_v60 }
  0x6f   : > { %v1978_v2 = vpop.eup %1977  ;;  %2003 = vrcp.f32 %v863_v61  ;;  %v866_v3 = vadd.f32 1.0, %v1976_v63 }
  0x70   : > { %v1980_v5 = vpop.eup %1979  ;;  %2005 = vrcp.f32 %v1087_v0  ;;  %v1090_v6 = vadd.f32 1.0, %v1978_v2 }
  0x71   : > { %v1982_v9 = vpop.eup %1981  ;;  %2007 = vrcp.f32 %v866_v3  ;;  %v865_v10 = vadd.f32 1.0, %v1980_v5 }
  0x72   : > { %v1984_v13 = vpop.eup %1983  ;;  %2009 = vrcp.f32 %v1090_v6 }
  0x73   : > { %v1986_v16 = vpop.eup %1985  ;;  %v1180_v17 = vmul.f32 %v1984_v13, %v1982_v9  ;;  %2011 = vrcp.f32 %v865_v10 }
  0x74   : > { %v1988_v20 = vpop.eup %1987  ;;  %2013 = vpow2.f32 %v1675_v7 }
  0x75   : > { %v1990_v23 = vpop.eup %1989  ;;  %1282 = vperm.xlu1 %1801, %v1180_v17   ;;  %v1179_v24 = vmul.f32 %v1988_v20, %v1986_v16  ;;  %2015 = vpow2.f32 %v1707_v11  ;;  %v1712_v11 = vmul.f32 -1.442695, %v969_v4 }
  0x76   : > { %v1992_v26 = vpop.eup %1991  ;;  %2017 = vpow2.f32 %v1674_v14 }
  0x77   : > { %v1994_v29 = vpop.eup %1993  ;;  %1277 = vperm.xlu0 %1800, %v1179_v24   ;;  %v1182_v30 = vmul.f32 %v1992_v26, %v1990_v23  ;;  %2019 = vpow2.f32 %v1706_v18 }
  0x78   : > { %v1996_v33 = vpop.eup %1995  ;;  %2021 = vpow2.f32 %v1677_v21 }
  0x79   : > { %v1998_v35 = vpop.eup %1997  ;;  %1292 = vperm.xlu1 %1801, %v1182_v30   ;;  %v1181_v36 = vmul.f32 %v1996_v33, %v1994_v29  ;;  %2023 = vpow2.f32 %v1709_v25 }
  0x7a   : > { %v2000_v39 = vpop.eup %1999  ;;  %v1089_v40 = vadd.f32 1.0, %v1998_v35  ;;  %2025 = vpow2.f32 %v1676_v27 }
  0x7b   : > { %v2002_v43 = vpop.eup %2001  ;;  %1287 = vperm.xlu0 %1800, %v1181_v36   ;;  %2027 = vpow2.f32 %v1708_v31 }
  0x7c   : > { %v2004_v46 = vpop.eup %2003  ;;  %v1184_v47 = vmul.f32 %v2002_v43, %v2000_v39  ;;  %2029 = vrcp.f32 %v1089_v40 }
  0x7d   : > { %v2006_v50 = vpop.eup %2005  ;;  %2031 = vpow2.f32 %v1679_v37 }
  0x7e   : > { %v2008_v52 = vpop.eup %2007  ;;  %1302 = vperm.xlu1 %1801, %v1184_v47   ;;  %v1183_v53 = vmul.f32 %v2006_v50, %v2004_v46  ;;  %2033 = vpow2.f32 %v1711_v41 }
  0x7f   : > { %v2010_v55 = vpop.eup %2009  ;;  %2035 = vpow2.f32 %v1678_v44 }
  0x80   : > { %v2012_v57 = vpop.eup %2011  ;;  %1297 = vperm.xlu0 %1800, %v1183_v53   ;;  %v1186_v58 = vmul.f32 %v2010_v55, %v2008_v52  ;;  %2037 = vpow2.f32 %v1710_v48 }
  0x81   : > { %v2014_v59 = vpop.eup %2013  ;;  %2039 = vpow2.f32 %v1681_v51 }
  0x82   : > { %v2016_v60 = vpop.eup %2015  ;;  %1312 = vperm.xlu1 %1801, %v1186_v58   ;;  %v868_v61 = vadd.f32 1.0, %v2014_v59  ;;  %2041 = vpow2.f32 %v1713_v54 }
  0x83   : > { %v2018_v62 = vpop.eup %2017  ;;  %v1092_v63 = vadd.f32 1.0, %v2016_v60  ;;  %2043 = vpow2.f32 %v1680_v56 }
  0x84   : > { %v2020_v0 = vpop.eup %2019  ;;  %2045 = vrcp.f32 %v868_v61  ;;  %v867_v1 = vadd.f32 1.0, %v2018_v62  ;;  %v2266_v61 = vld [vmem:[%s2400_s2] ss:$0 sm:$0xff] }
  0x85   : > { %v2022_v2 = vpop.eup %2021  ;;  %2047 = vrcp.f32 %v1092_v63  ;;  %v1091_v3 = vadd.f32 1.0, %v2020_v0 }
  0x86   : > { %v2024_v5 = vpop.eup %2023  ;;  %2049 = vrcp.f32 %v867_v1  ;;  %v870_v6 = vadd.f32 1.0, %v2022_v2 }
  0x87   : > { %v2026_v7 = vpop.eup %2025  ;;  %2051 = vrcp.f32 %v1091_v3  ;;  %v1094_v8 = vadd.f32 1.0, %v2024_v5 }
  0x88   : > { %v2028_v9 = vpop.eup %2027  ;;  %2053 = vrcp.f32 %v870_v6  ;;  %v869_v10 = vadd.f32 1.0, %v2026_v7 }
  0x89   : > { %v2030_v12 = vpop.eup %2029  ;;  %2055 = vrcp.f32 %v1094_v8  ;;  %v1093_v13 = vadd.f32 1.0, %v2028_v9 }
  0x8a   : > { %v2032_v14 = vpop.eup %2031  ;;  %v1185_v15 = vmul.f32 %v2030_v12, %v2012_v57  ;;  %2057 = vrcp.f32 %v869_v10 }
  0x8b   : > { %v2034_v16 = vpop.eup %2033  ;;  %2059 = vrcp.f32 %v1093_v13  ;;  %v872_v17 = vadd.f32 1.0, %v2032_v14 }
  0x8c   : > { %v2036_v18 = vpop.eup %2035  ;;  %1307 = vperm.xlu0 %1800, %v1185_v15   ;;  %v1096_v19 = vadd.f32 1.0, %v2034_v16  ;;  %2061 = vpow2.f32 %v1712_v11 }
  0x8d   : > { %v2038_v20 = vpop.eup %2037  ;;  %2063 = vrcp.f32 %v872_v17  ;;  %v871_v21 = vadd.f32 1.0, %v2036_v18 }
  0x8e   : > { %v2040_v22 = vpop.eup %2039  ;;  %2065 = vrcp.f32 %v1096_v19  ;;  %v1095_v23 = vadd.f32 1.0, %v2038_v20 }
  0x8f   : > { %v2042_v24 = vpop.eup %2041  ;;  %2067 = vrcp.f32 %v871_v21  ;;  %v874_v25 = vadd.f32 1.0, %v2040_v22 }
  0x90   : > { %v2044_v26 = vpop.eup %2043  ;;  %2069 = vrcp.f32 %v1095_v23  ;;  %v1098_v27 = vadd.f32 1.0, %v2042_v24 }
  0x91   : > { %v2046_v28 = vpop.eup %2045  ;;  %2071 = vrcp.f32 %v874_v25  ;;  %v873_v36 = vadd.f32 1.0, %v2044_v26 }
  0x92   : > { %v2048_v29 = vpop.eup %2047  ;;  %2073 = vrcp.f32 %v1098_v27 }
  0x93   : > { %v2050_v30 = vpop.eup %2049  ;;  %v1188_v31 = vmul.f32 %v2048_v29, %v2046_v28  ;;  %2075 = vrcp.f32 %v873_v36 }
  0x94   : > { %v2052_v32 = vpop.eup %2051 }
  0x95   : > { %v2054_v33 = vpop.eup %2053  ;;  %1322 = vperm.xlu1 %1801, %v1188_v31   ;;  %v1187_v34 = vmul.f32 %v2052_v32, %v2050_v30 }
  0x96   : > { %v2056_v35 = vpop.eup %2055 }
  0x97   : > { %v2058_v37 = vpop.eup %2057  ;;  %1317 = vperm.xlu0 %1800, %v1187_v34   ;;  %v1190_v38 = vmul.f32 %v2056_v35, %v2054_v33 }
  0x98   : > { %v2060_v39 = vpop.eup %2059 }
  0x99   : > { %v2062_v40 = vpop.eup %2061  ;;  %1332 = vperm.xlu1 %1801, %v1190_v38   ;;  %v1189_v41 = vmul.f32 %v2060_v39, %v2058_v37 }
  0x9a   : > { %v2064_v42 = vpop.eup %2063  ;;  %v1097_v43 = vadd.f32 1.0, %v2062_v40 }
  0x9b   : > { %v2066_v44 = vpop.eup %2065  ;;  %1327 = vperm.xlu0 %1800, %v1189_v41  }
  0x9c   : > { %v2068_v45 = vpop.eup %2067  ;;  %v1192_v46 = vmul.f32 %v2066_v44, %v2064_v42  ;;  %2077 = vrcp.f32 %v1097_v43 }
  0x9d   : > { %v2070_v47 = vpop.eup %2069 }
  0x9e   : > { %v2072_v48 = vpop.eup %2071  ;;  %1342 = vperm.xlu1 %1801, %v1192_v46   ;;  %v1191_v49 = vmul.f32 %v2070_v47, %v2068_v45 }
  0x9f   : > { %v2074_v50 = vpop.eup %2073 }
  0xa0   : > { %1337 = vperm.xlu0 %1800, %v1191_v49   ;;  %v1194_v51 = vmul.f32 %v2074_v50, %v2072_v48  ;;  %v2076_v52 = vpop.eup %2075 }
  0xa2   : > { %1352 = vperm.xlu1 %1801, %v1194_v51  }
  0xa9   : > { %v2078_v53 = vpop.eup %2077 }
  0xaa   : > { %v1193_v54 = vmul.f32 %v2078_v53, %v2076_v52 }
  0xac   : > { %1347 = vperm.xlu0 %1800, %v1193_v54  }
  0xb0   : > { %v1208_v55 = vpop.permute.xlu1 %1207 }
  0xb2   : > { %v1198_v56 = vpop.permute.xlu0 %1197 }
  0xb4   : > { %v1213_v57 = vpop.permute.xlu1 %1212 }
  0xb6   : > { %v1203_v58 = vpop.permute.xlu0 %1202 }
  0xb9   : > { %v2261_v59 = vpop.permute.xlu1 %1222 }
  0xbb   : > { %v1218_v60 = vpop.permute.xlu0 %1217 }
  0xbd   : > { %v1233_v63 = vpop.permute.xlu1 %1232 }
  0xc7   : > { %v1228_v3 = vpop.permute.xlu0 %1227 }
  0xd0   : > { %v2287_v12 = vpop.permute.xlu1 %1242 }
  0xd2   : > { %v1238_v18 = vpop.permute.xlu0 %1237 }
  0xd4   : > { %v1253_v30 = vpop.permute.xlu1 %1252 }
  0xd6   : > { %v1248_v37 = vpop.permute.xlu0 %1247 }
  0xd9   : > { %v2310_v49 = vpop.permute.xlu1 %1262 }
  0xe0   : > { %v1749_v62 = vpop.f32.mrf.mxu0  ;;  %v2269_v1 = vpop.f32.mrf.mxu1 }
  0xe1   : > { %v565_v0 = vadd.f32 %v1749_v62, %v2266_v61 }
  0xe2   : > { %v556_v2 = vpop.f32.mrf.mxu0  ;;  %v2285_v10 = vpop.f32.mrf.mxu1 }
  0xe3   : > { %v685_v4 = vmax.f32 %v565_v0, 0.0  ;;  %v557_v5 = vadd.f32 %v2266_v61, %v556_v2 }
  0xe4   : > { %v1750_v6 = vpop.f32.mrf.mxu0  ;;  %v2294_v23 = vpop.f32.mrf.mxu1 }
  0xe5   : > { %v1357_v7 = vmul.f32 %v1208_v55, %v685_v4  ;;  %v683_v8 = vmax.f32 %v557_v5, 0.0  ;;  %v568_v9 = vadd.f32 %v1750_v6, %v2266_v61  ;;  %v1258_v55 = vpop.permute.xlu0 %1257  ;;  %v1273_v6 = vpop.permute.xlu1 %1272 }
  0xe6   : > { %v559_v11 = vpop.f32.mrf.mxu0  ;;  %v623_v35 = vpop.f32.mrf.mxu1 }
  0xe7   : > { %1389 = vst [vmem:[%s2276_s26 + $0x10] sm:$0xff] %v1357_v7  ;;  %v1421_v13 = vadd.f32 %v1357_v7, %v685_v4  ;;  %v1355_v14 = vmul.f32 %v1198_v56, %v683_v8  ;;  %v686_v15 = vmax.f32 %v568_v9, 0.0  ;;  %v560_v16 = vadd.f32 %v2266_v61, %v559_v11 }
  0xe8   : > { %v1753_v17 = vpop.f32.mrf.mxu0  ;;  %v2308_v47 = vpop.f32.mrf.mxu1  ;;  %v624_v4 = vadd.f32 %v2266_v61, %v623_v35 }
  0xe9   : > { %1453 = vst [vmem:[%s2283_s29 + $0x10] sm:$0xff] %v1421_v13  ;;  %1387 = vst [vmem:[%s2276_s26] sm:$0xff] %v1355_v14  ;;  %v1419_v19 = vadd.f32 %v1355_v14, %v683_v8  ;;  %v1358_v20 = vmul.f32 %v1213_v57, %v686_v15  ;;  %v684_v21 = vmax.f32 %v560_v16, 0.0  ;;  %v581_v22 = vadd.f32 %v1753_v17, %v2266_v61  ;;  %v1268_v16 = vpop.permute.xlu0 %1267 }
  0xea   : > { %v572_v24 = vpop.f32.mrf.mxu0  ;;  %v636_v62 = vpop.f32.mrf.mxu1  ;;  %v621_v13 = vadd.f32 %v2266_v61, %v2285_v10 }
  0xeb   : > { %1451 = vst [vmem:[%s2283_s29] sm:$0xff] %v1419_v19  ;;  %1390 = vst [vmem:[%s2276_s26 + $0x18] sm:$0xff] %v1358_v20  ;;  %v1422_v25 = vadd.f32 %v1358_v20, %v686_v15  ;;  %v1356_v26 = vmul.f32 %v1203_v58, %v684_v21  ;;  %v689_v27 = vmax.f32 %v581_v22, 0.0  ;;  %v573_v28 = vadd.f32 %v2266_v61, %v572_v24 }
  0xec   : > { %v1754_v29 = vpop.f32.mrf.mxu0  ;;  %v1770_v14 = vpop.f32.mrf.mxu1  ;;  %v700_v22 = vmax.f32 %v624_v4, 0.0 }
  0xed   : > { %1454 = vst [vmem:[%s2283_s29 + $0x18] sm:$0xff] %v1422_v25  ;;  %1388 = vst [vmem:[%s2276_s26 + $0x8] sm:$0xff] %v1356_v26  ;;  %v1420_v31 = vadd.f32 %v1356_v26, %v684_v21  ;;  %v1361_v32 = vmul.f32 %v1228_v3, %v689_v27  ;;  %v687_v33 = vmax.f32 %v573_v28, 0.0  ;;  %v584_v34 = vadd.f32 %v1754_v29, %v2266_v61 }
  0xee   : > { %v575_v36 = vpop.f32.mrf.mxu0  ;;  %v632_v21 = vadd.f32 %v2294_v23, %v2266_v61  ;;  %v699_v28 = vmax.f32 %v621_v13, 0.0  ;;  %v639_v29 = vpop.f32.mrf.mxu1 }
  0xef   : > { %1452 = vst [vmem:[%s2283_s29 + $0x8] sm:$0xff] %v1420_v31  ;;  %1393 = vst [vmem:[%s2276_s26 + $0x30] sm:$0xff] %v1361_v32  ;;  %v1425_v38 = vadd.f32 %v1361_v32, %v689_v27  ;;  %v1359_v39 = vmul.f32 %v1218_v60, %v687_v33  ;;  %v690_v40 = vmax.f32 %v584_v34, 0.0  ;;  %v576_v41 = vadd.f32 %v2266_v61, %v575_v36 }
  0xf0   : > { %v1757_v42 = vpop.f32.mrf.mxu0  ;;  %v1283_v31 = vpop.permute.xlu1 %1282  ;;  %v702_v35 = vmax.f32 %v632_v21, 0.0 }
  0xf1   : > { %1457 = vst [vmem:[%s2283_s29 + $0x30] sm:$0xff] %v1425_v38  ;;  %1391 = vst [vmem:[%s2276_s26 + $0x20] sm:$0xff] %v1359_v39  ;;  %v1423_v43 = vadd.f32 %v1359_v39, %v687_v33  ;;  %v1362_v44 = vmul.f32 %v1233_v63, %v690_v40  ;;  %v688_v45 = vmax.f32 %v576_v41, 0.0  ;;  %v597_v46 = vadd.f32 %v1757_v42, %v2266_v61 }
  0xf2   : > { %v588_v48 = vpop.f32.mrf.mxu0  ;;  %v1372_v36 = vmul.f32 %v1283_v31, %v700_v22 }
  0xf3   : > { %1455 = vst [vmem:[%s2283_s29 + $0x20] sm:$0xff] %v1423_v43  ;;  %1394 = vst [vmem:[%s2276_s26 + $0x38] sm:$0xff] %v1362_v44  ;;  %v1426_v50 = vadd.f32 %v1362_v44, %v690_v40  ;;  %v1360_v51 = vmul.f32 %v2261_v59, %v688_v45  ;;  %v693_v52 = vmax.f32 %v597_v46, 0.0  ;;  %v589_v53 = vadd.f32 %v2266_v61, %v588_v48  ;;  %v1773_v44 = vpop.f32.mrf.mxu1 }
  0xf4   : > { %v1758_v54 = vpop.f32.mrf.mxu0  ;;  %1404 = vst [vmem:[%s2276_s26 + $0x88] sm:$0xff] %v1372_v36  ;;  %v1436_v43 = vadd.f32 %v1372_v36, %v700_v22  ;;  %v637_v46 = vadd.f32 %v2266_v61, %v636_v62 }
  0xf5   : > { %1458 = vst [vmem:[%s2283_s29 + $0x38] sm:$0xff] %v1426_v50  ;;  %1392 = vst [vmem:[%s2276_s26 + $0x28] sm:$0xff] %v1360_v51  ;;  %v1424_v56 = vadd.f32 %v1360_v51, %v688_v45  ;;  %v1365_v57 = vmul.f32 %v1248_v37, %v693_v52  ;;  %v691_v58 = vmax.f32 %v589_v53, 0.0  ;;  %v600_v60 = vadd.f32 %v1758_v54, %v2266_v61  ;;  %v1278_v37 = vpop.permute.xlu0 %1277  ;;  %v1293_v45 = vpop.permute.xlu1 %1292 }
  0xf6   : > { %v591_v63 = vpop.f32.mrf.mxu0  ;;  %v1371_v42 = vmul.f32 %v1278_v37, %v699_v28  ;;  %1468 = vst [vmem:[%s2283_s29 + $0x88] sm:$0xff] %v1436_v43  ;;  %v648_v54 = vadd.f32 %v1770_v14, %v2266_v61 }
  0xf7   : > { %1456 = vst [vmem:[%s2283_s29 + $0x28] sm:$0xff] %v1424_v56  ;;  %1397 = vst [vmem:[%s2276_s26 + $0x50] sm:$0xff] %v1365_v57  ;;  %v1429_v0 = vadd.f32 %v1365_v57, %v693_v52  ;;  %v1363_v59 = vmul.f32 %v1238_v18, %v691_v58  ;;  %v694_v2 = vmax.f32 %v600_v60, 0.0  ;;  %v592_v3 = vadd.f32 %v2266_v61, %v591_v63 }
  0xf8   : > { %v1761_v5 = vpop.f32.mrf.mxu0  ;;  %1403 = vst [vmem:[%s2276_s26 + $0x80] sm:$0xff] %v1371_v42  ;;  %v1435_v51 = vadd.f32 %v1371_v42, %v699_v28  ;;  %v1374_v52 = vmul.f32 %v1293_v45, %v702_v35  ;;  %v703_v60 = vmax.f32 %v637_v46, 0.0 }
  0xf9   : > { %1461 = vst [vmem:[%s2283_s29 + $0x50] sm:$0xff] %v1429_v0  ;;  %1395 = vst [vmem:[%s2276_s26 + $0x40] sm:$0xff] %v1363_v59  ;;  %v1427_v7 = vadd.f32 %v1363_v59, %v691_v58  ;;  %v1366_v8 = vmul.f32 %v1253_v30, %v694_v2  ;;  %v692_v9 = vmax.f32 %v592_v3, 0.0  ;;  %v613_v11 = vadd.f32 %v1761_v5, %v2266_v61  ;;  %v1288_v53 = vpop.permute.xlu0 %1287  ;;  %v652_v58 = vpop.f32.mrf.mxu1 }
  0xfa   : > { %v604_v15 = vpop.f32.mrf.mxu0  ;;  %1467 = vst [vmem:[%s2283_s29 + $0x80] sm:$0xff] %v1435_v51  ;;  %1406 = vst [vmem:[%s2276_s26 + $0x98] sm:$0xff] %v1374_v52  ;;  %v1303_v62 = vpop.permute.xlu1 %1302  ;;  %v706_v0 = vmax.f32 %v648_v54, 0.0  ;;  %v653_v21 = vadd.f32 %v2266_v61, %v652_v58 }
  0xfb   : > { %1459 = vst [vmem:[%s2283_s29 + $0x40] sm:$0xff] %v1427_v7  ;;  %1398 = vst [vmem:[%s2276_s26 + $0x58] sm:$0xff] %v1366_v8  ;;  %v1430_v17 = vadd.f32 %v1366_v8, %v694_v2  ;;  %v1364_v18 = vmul.f32 %v2287_v12, %v692_v9  ;;  %v697_v19 = vmax.f32 %v613_v11, 0.0  ;;  %v605_v20 = vadd.f32 %v2266_v61, %v604_v15  ;;  %v1774_v3 = vpop.f32.mrf.mxu1 }
  0xfc   : > { %v1762_v24 = vpop.f32.mrf.mxu0  ;;  %v629_v12 = vadd.f32 %v2269_v1, %v2266_v61  ;;  %v640_v1 = vadd.f32 %v2266_v61, %v639_v29  ;;  %v645_v11 = vadd.f32 %v2308_v47, %v2266_v61  ;;  %v664_v47 = vadd.f32 %v1774_v3, %v2266_v61 }
  0xfd   : > { %1462 = vst [vmem:[%s2283_s29 + $0x58] sm:$0xff] %v1430_v17  ;;  %1396 = vst [vmem:[%s2276_s26 + $0x48] sm:$0xff] %v1364_v18  ;;  %v1428_v10 = vadd.f32 %v1364_v18, %v692_v9  ;;  %v1369_v25 = vmul.f32 %v1268_v16, %v697_v19  ;;  %v695_v26 = vmax.f32 %v605_v20, 0.0  ;;  %v616_v27 = vadd.f32 %v1762_v24, %v2266_v61  ;;  %v1298_v2 = vpop.permute.xlu0 %1297  ;;  %v655_v9 = vpop.f32.mrf.mxu1 }
  0xfe   : > { %v607_v30 = vpop.f32.mrf.mxu0  ;;  %v701_v41 = vmax.f32 %v629_v12, 0.0  ;;  %v1375_v4 = vmul.f32 %v1298_v2, %v703_v60  ;;  %v705_v15 = vmax.f32 %v645_v11, 0.0  ;;  %v710_v12 = vmax.f32 %v664_v47, 0.0 }
  0xff   : > { %1460 = vst [vmem:[%s2283_s29 + $0x48] sm:$0xff] %v1428_v10  ;;  %1401 = vst [vmem:[%s2276_s26 + $0x70] sm:$0xff] %v1369_v25  ;;  %v1433_v23 = vadd.f32 %v1369_v25, %v697_v19  ;;  %v1367_v32 = vmul.f32 %v1258_v55, %v695_v26  ;;  %v698_v33 = vmax.f32 %v616_v27, 0.0  ;;  %v608_v34 = vadd.f32 %v2266_v61, %v607_v30  ;;  %v1777_v14 = vpop.f32.mrf.mxu1 }
 0x100   : > { %v704_v55 = vmax.f32 %v640_v1, 0.0  ;;  %v1373_v57 = vmul.f32 %v1288_v53, %v701_v41  ;;  %1407 = vst [vmem:[%s2276_s26 + $0xa0] sm:$0xff] %v1375_v4  ;;  %v1439_v7 = vadd.f32 %v1375_v4, %v703_v60  ;;  %v656_v19 = vadd.f32 %v2266_v61, %v655_v9 }
 0x101   : > { %1465 = vst [vmem:[%s2283_s29 + $0x70] sm:$0xff] %v1433_v23  ;;  %1399 = vst [vmem:[%s2276_s26 + $0x60] sm:$0xff] %v1367_v32  ;;  %v1431_v38 = vadd.f32 %v1367_v32, %v695_v26  ;;  %v1370_v39 = vmul.f32 %v1273_v6, %v698_v33  ;;  %v696_v40 = vmax.f32 %v608_v34, 0.0  ;;  %v1313_v6 = vpop.permute.xlu1 %1312  ;;  %v668_v17 = vpop.f32.mrf.mxu1  ;;  %v661_v10 = vadd.f32 %v1773_v44, %v2266_v61 }
 0x102   : > { %1405 = vst [vmem:[%s2276_s26 + $0x90] sm:$0xff] %v1373_v57  ;;  %v1437_v63 = vadd.f32 %v1373_v57, %v701_v41  ;;  %v1376_v59 = vmul.f32 %v1303_v62, %v704_v55  ;;  %v1378_v8 = vmul.f32 %v1313_v6, %v706_v0  ;;  %1471 = vst [vmem:[%s2283_s29 + $0xa0] sm:$0xff] %v1439_v7  ;;  %v708_v24 = vmax.f32 %v656_v19, 0.0 }
 0x103   : > { %1463 = vst [vmem:[%s2283_s29 + $0x60] sm:$0xff] %v1431_v38  ;;  %1402 = vst [vmem:[%s2276_s26 + $0x78] sm:$0xff] %v1370_v39  ;;  %v1434_v48 = vadd.f32 %v1370_v39, %v698_v33  ;;  %v1368_v50 = vmul.f32 %v2310_v49, %v696_v40  ;;  %v1438_v49 = vadd.f32 %v1374_v52, %v702_v35  ;;  %v1778_v22 = vpop.f32.mrf.mxu1  ;;  %v707_v25 = vmax.f32 %v653_v21, 0.0 }
 0x104   : > { %1469 = vst [vmem:[%s2283_s29 + $0x90] sm:$0xff] %v1437_v63  ;;  %1408 = vst [vmem:[%s2276_s26 + $0xa8] sm:$0xff] %v1376_v59  ;;  %v1440_v5 = vadd.f32 %v1376_v59, %v704_v55  ;;  %v1442_v13 = vadd.f32 %v1378_v8, %v706_v0  ;;  %v709_v31 = vmax.f32 %v661_v10, 0.0  ;;  %v669_v34 = vadd.f32 %v2266_v61, %v668_v17 }
 0x105   : > { %1466 = vst [vmem:[%s2283_s29 + $0x78] sm:$0xff] %v1434_v48  ;;  %1400 = vst [vmem:[%s2276_s26 + $0x68] sm:$0xff] %v1368_v50  ;;  %v1432_v56 = vadd.f32 %v1368_v50, %v696_v40  ;;  %v671_v26 = vpop.f32.mrf.mxu1  ;;  %v680_v1 = vadd.f32 %v1778_v22, %v2266_v61  ;;  %v677_v54 = vadd.f32 %v1777_v14, %v2266_v61 }
 0x106   : > { %1470 = vst [vmem:[%s2283_s29 + $0x98] sm:$0xff] %v1438_v49  ;;  %1472 = vst [vmem:[%s2283_s29 + $0xa8] sm:$0xff] %v1440_v5  ;;  %v672_v30 = vadd.f32 %v2266_v61, %v671_v26  ;;  %v711_v41 = vmax.f32 %v669_v34, 0.0 }
 0x107   : > { %1464 = vst [vmem:[%s2283_s29 + $0x68] sm:$0xff] %v1432_v56  ;;  %1410 = vst [vmem:[%s2276_s26 + $0xb8] sm:$0xff] %v1378_v8  ;;  %v1308_v16 = vpop.permute.xlu0 %1307  ;;  %v714_v44 = vmax.f32 %v680_v1, 0.0  ;;  %v713_v56 = vmax.f32 %v677_v54, 0.0 }
 0x108   : > { %1474 = vst [vmem:[%s2283_s29 + $0xb8] sm:$0xff] %v1442_v13  ;;  %v1377_v18 = vmul.f32 %v1308_v16, %v705_v15  ;;  %v712_v38 = vmax.f32 %v672_v30, 0.0 }
 0x10a   : > { %1409 = vst [vmem:[%s2276_s26 + $0xb0] sm:$0xff] %v1377_v18  ;;  %v1441_v20 = vadd.f32 %v1377_v18, %v705_v15 }
 0x10c   : > { %1473 = vst [vmem:[%s2283_s29 + $0xb0] sm:$0xff] %v1441_v20 }
 0x110   : > { %v1323_v27 = vpop.permute.xlu1 %1322 }
 0x111   : > { %v1380_v28 = vmul.f32 %v1323_v27, %v708_v24 }
 0x112   : > { %v1318_v29 = vpop.permute.xlu0 %1317 }
 0x113   : > { %v1379_v23 = vmul.f32 %v1318_v29, %v707_v25  ;;  %1412 = vst [vmem:[%s2276_s26 + $0xc8] sm:$0xff] %v1380_v28  ;;  %v1444_v32 = vadd.f32 %v1380_v28, %v708_v24 }
 0x114   : > { %v1333_v33 = vpop.permute.xlu1 %1332 }
 0x115   : > { %1411 = vst [vmem:[%s2276_s26 + $0xc0] sm:$0xff] %v1379_v23  ;;  %v1443_v35 = vadd.f32 %v1379_v23, %v707_v25  ;;  %v1382_v36 = vmul.f32 %v1333_v33, %v710_v12  ;;  %1476 = vst [vmem:[%s2283_s29 + $0xc8] sm:$0xff] %v1444_v32 }
 0x116   : > { %v1328_v37 = vpop.permute.xlu0 %1327 }
 0x117   : > { %v1381_v39 = vmul.f32 %v1328_v37, %v709_v31  ;;  %1475 = vst [vmem:[%s2283_s29 + $0xc0] sm:$0xff] %v1443_v35  ;;  %1414 = vst [vmem:[%s2276_s26 + $0xd8] sm:$0xff] %v1382_v36  ;;  %v1446_v40 = vadd.f32 %v1382_v36, %v710_v12 }
 0x119   : > { %v1343_v42 = vpop.permute.xlu1 %1342  ;;  %1413 = vst [vmem:[%s2276_s26 + $0xd0] sm:$0xff] %v1381_v39  ;;  %v1445_v43 = vadd.f32 %v1381_v39, %v709_v31  ;;  %1478 = vst [vmem:[%s2283_s29 + $0xd8] sm:$0xff] %v1446_v40 }
 0x11a   : > { %v1384_v45 = vmul.f32 %v1343_v42, %v712_v38 }
 0x11b   : > { %v1338_v46 = vpop.permute.xlu0 %1337  ;;  %1477 = vst [vmem:[%s2283_s29 + $0xd0] sm:$0xff] %v1445_v43 }
 0x11c   : > { %v1383_v48 = vmul.f32 %v1338_v46, %v711_v41  ;;  %1416 = vst [vmem:[%s2276_s26 + $0xe8] sm:$0xff] %v1384_v45  ;;  %v1448_v50 = vadd.f32 %v1384_v45, %v712_v38 }
 0x11d   : > { %v1353_v51 = vpop.permute.xlu1 %1352 }
 0x11e   : > { %1415 = vst [vmem:[%s2276_s26 + $0xe0] sm:$0xff] %v1383_v48  ;;  %v1447_v52 = vadd.f32 %v1383_v48, %v711_v41  ;;  %v1386_v53 = vmul.f32 %v1353_v51, %v714_v44  ;;  %1480 = vst [vmem:[%s2283_s29 + $0xe8] sm:$0xff] %v1448_v50 }
 0x120   : > { %1479 = vst [vmem:[%s2283_s29 + $0xe0] sm:$0xff] %v1447_v52  ;;  %1418 = vst [vmem:[%s2276_s26 + $0xf8] sm:$0xff] %v1386_v53  ;;  %v1450_v55 = vadd.f32 %v1386_v53, %v714_v44 }
 0x122   : > { %1482 = vst [vmem:[%s2283_s29 + $0xf8] sm:$0xff] %v1450_v55 }
 0x127   : > { %v1348_v57 = vpop.permute.xlu0 %1347 }
 0x128   : > { %v1385_v49 = vmul.f32 %v1348_v57, %v713_v56 }
 0x12a   : > { %1417 = vst [vmem:[%s2276_s26 + $0xf0] sm:$0xff] %v1385_v49  ;;  %v1449_v58 = vadd.f32 %v1385_v49, %v713_v56 }
 0x12c   : > { %1481 = vst [vmem:[%s2283_s29 + $0xf0] sm:$0xff] %v1449_v58 }
 0x12d PF: > { %s17_s21 = sadd.s32 1, %s2085_s21  }
 0x12e   : > { %p14_p4 = scmp.ge.s32.totalorder %s17_s21, 4  }
 0x130   :  { %16 = sbr.rel (!%p14_p4) target bundleno = 1 (0x1), region = 88 }

</bundles_post_ra>
